<compile_context>
chip_gen: v5e
topology: v5e:2x2
jax: 0.10.0
libtpu: 0.0.40
codegen_flags: <defaults>
</compile_context>

<pallas_src>
import functools

import jax
import jax.numpy as jnp
from jax import lax
from jax.experimental import pallas as pl
from jax.experimental.pallas import tpu as pltpu

F32 = jnp.float32
BF16 = jnp.bfloat16


# ---------------------------------------------------------------------------
# In-kernel building block: one GatedGraphConv layer (n_steps message passing
# + GRUCell) followed by ReLU, on values already resident in vregs/VMEM.
# ---------------------------------------------------------------------------
def _ggnn_layer(h, a_cat_b, wmsg, bmsg, wgru, bgru, *, n_steps, n_etypes, f_pad):
    """
    h       : (N, Fp)      f32   node state (padded lanes stay exactly 0)
    a_cat_b : (N, E*N)     bf16  dense adjacency, concatenated over edge types
    wmsg    : (Fp, E*Fp)   bf16  per-edge-type message weights, concat on lanes
    bmsg    : (1,  E*Fp)   f32
    wgru    : (2Fp, 6Fp)   bf16  block-diag [[w_ih, 0], [0, w_hh]]
    bgru    : (1,  6Fp)    f32   [b_ih | b_hh]
    """

    def step(_, h):
        h_b = h.astype(BF16)
        # all edge-type messages in one MXU push: (N,Fp) @ (Fp,E*Fp)
        msg = jnp.dot(h_b, wmsg, preferred_element_type=F32) + bmsg          # (N, E*Fp)
        # stack per-edge-type messages along sublanes (lane slices at 128 bounds)
        m_stack = jnp.concatenate(
            [msg[:, e * f_pad:(e + 1) * f_pad] for e in range(n_etypes)],
            axis=0).astype(BF16)                                             # (E*N, Fp)
        # sum over all incoming edges of every type in one matmul
        a = jnp.dot(a_cat_b, m_stack, preferred_element_type=F32)           # (N, Fp)

        # torch.nn.GRUCell(a, h): one block-diag matmul yields [gi | gh]
        x = jnp.concatenate([a, h], axis=1).astype(BF16)                     # (N, 2Fp)
        g = jnp.dot(x, wgru, preferred_element_type=F32) + bgru              # (N, 6Fp)
        gi = g[:, :3 * f_pad]
        gh = g[:, 3 * f_pad:]
        r = jax.nn.sigmoid(gi[:, :f_pad] + gh[:, :f_pad])
        z = jax.nn.sigmoid(gi[:, f_pad:2 * f_pad] + gh[:, f_pad:2 * f_pad])
        n = jnp.tanh(gi[:, 2 * f_pad:] + r * gh[:, 2 * f_pad:])
        return (1.0 - z) * n + z * h

    h = lax.fori_loop(0, n_steps, step, h, unroll=True)
    return jnp.maximum(h, 0.0)                                               # F.relu


# ---------------------------------------------------------------------------
# Fused forward kernel: one graph per grid step.
# ---------------------------------------------------------------------------
def graph_cls_ggnn_kernel(h0_ref, acat_ref,
                          wmsg1_ref, bmsg1_ref, wgru1_ref, bgru1_ref,
                          wmsg2_ref, bmsg2_ref, wgru2_ref, bgru2_ref,
                          wgate_ref, bgate_ref, wfc_ref, bfc_ref,
                          out_ref, *, n_steps, n_etypes, f_pad):
    h = h0_ref[...]                       # (N, Fp) f32, annotation zero-padded
    a_cat = acat_ref[...]                 # (N, E*N) bf16

    h = _ggnn_layer(h, a_cat, wmsg1_ref[...], bmsg1_ref[...],
                    wgru1_ref[...], bgru1_ref[...],
                    n_steps=n_steps, n_etypes=n_etypes, f_pad=f_pad)
    # TODO(synk): nn.Dropout(0.5) between the layers is identity in eval mode;
    # training-mode parity would need pltpu.prng_seed + prng_random_bits masking.
    h = _ggnn_layer(h, a_cat, wmsg2_ref[...], bmsg2_ref[...],
                    wgru2_ref[...], bgru2_ref[...],
                    n_steps=n_steps, n_etypes=n_etypes, f_pad=f_pad)

    # GlobalAttentionPooling: gate = Linear(F, 1), softmax over this graph's nodes.
    h_b = h.astype(BF16)
    gate = jnp.dot(h_b, wgate_ref[...], preferred_element_type=F32) + bgate_ref[...]  # (N,1)
    gate = gate - jnp.max(gate, axis=0, keepdims=True)
    e = jnp.exp(gate)
    alpha = e / jnp.sum(e, axis=0, keepdims=True)                            # (N, 1)

    # fc(readout): (alpha^T @ h) @ Wfc == alpha^T @ (h @ Wfc) — big contraction on MXU.
    hw = jnp.dot(h_b, wfc_ref[...], preferred_element_type=F32)              # (N, Cp)
    y = jnp.sum(alpha * hw, axis=0, keepdims=True) + bfc_ref[...]            # (1, Cp)
    out_ref[...] = jnp.broadcast_to(y, out_ref.shape)


# ---------------------------------------------------------------------------
# Parameter packing: pad to 128 lanes, fuse per-edge-type / GRU weights, bf16.
# ---------------------------------------------------------------------------
def _pad2(w, rows, cols):
    return jnp.pad(w, ((0, rows - w.shape[0]), (0, cols - w.shape[1])))


def _pack_layer(p, *, out_feats, f_pad, n_etypes):
    F, Fp, E = out_feats, f_pad, n_etypes
    wmsg = jnp.concatenate([_pad2(p["w_msg"][e], Fp, Fp) for e in range(E)], axis=1)
    bmsg = jnp.concatenate([_pad2(p["b_msg"][e], 1, Fp) for e in range(E)], axis=1)

    def pad_gates(w):        # (F, 3F) -> (Fp, 3Fp), each [r|z|n] chunk 128-aligned
        return jnp.concatenate(
            [_pad2(w[:, k * F:(k + 1) * F], Fp, Fp) for k in range(3)], axis=1)

    def pad_gate_bias(b):    # (1, 3F) -> (1, 3Fp)
        return jnp.concatenate(
            [_pad2(b[:, k * F:(k + 1) * F], 1, Fp) for k in range(3)], axis=1)

    wih, whh = pad_gates(p["w_ih"]), pad_gates(p["w_hh"])
    zero = jnp.zeros((Fp, 3 * Fp), F32)
    wgru = jnp.concatenate([jnp.concatenate([wih, zero], axis=1),
                            jnp.concatenate([zero, whh], axis=1)], axis=0)   # (2Fp, 6Fp)
    bgru = jnp.concatenate([pad_gate_bias(p["b_ih"]), pad_gate_bias(p["b_hh"])], axis=1)
    return wmsg.astype(BF16), bmsg.astype(F32), wgru.astype(BF16), bgru.astype(F32)


# ---------------------------------------------------------------------------
# Wrapper
# ---------------------------------------------------------------------------
def graph_cls_ggnn_forward(feat, adj, params, *, n_steps, n_etypes, out_feats, num_cls,
                           f_pad=128, c_pad=128):
    B, N, ann = feat.shape
    E = n_etypes
    assert adj.shape == (B, E, N, N)

    # GatedGraphConv zero-pads the annotation up to out_feats; pad on to the 128-lane
    # tile width so every matmul / store is lane dense (padded lanes stay exactly 0).
    h0 = jnp.pad(feat.astype(F32), ((0, 0), (0, 0), (0, f_pad - ann)))
    # Dense adjacency concatenated over edge types: a_cat[b, dst, e*N + src].
    a_cat = jnp.transpose(adj, (0, 2, 1, 3)).reshape(B, N, E * N).astype(BF16)

    wmsg1, bmsg1, wgru1, bgru1 = _pack_layer(
        params["ggnn1"], out_feats=out_feats, f_pad=f_pad, n_etypes=E)
    wmsg2, bmsg2, wgru2, bgru2 = _pack_layer(
        params["ggnn2"], out_feats=out_feats, f_pad=f_pad, n_etypes=E)
    wgate = _pad2(params["w_gate"], f_pad, 1).astype(BF16)
    bgate = params["b_gate"].astype(F32)
    wfc = _pad2(params["w_fc"], f_pad, c_pad).astype(BF16)
    bfc = _pad2(params["b_fc"], 1, c_pad).astype(F32)

    rep2 = lambda b: (0, 0)   # replicated (weight) blocks: same block every grid step

    out = pl.pallas_call(
        functools.partial(graph_cls_ggnn_kernel,
                          n_steps=n_steps, n_etypes=E, f_pad=f_pad),
        out_shape=jax.ShapeDtypeStruct((B, 8, c_pad), F32),
        grid=(B,),
        in_specs=[
            pl.BlockSpec((None, N, f_pad), lambda b: (b, 0, 0)),    # h0 (per graph)
            pl.BlockSpec((None, N, E * N), lambda b: (b, 0, 0)),    # a_cat (per graph)
            pl.BlockSpec(wmsg1.shape, rep2), pl.BlockSpec(bmsg1.shape, rep2),
            pl.BlockSpec(wgru1.shape, rep2), pl.BlockSpec(bgru1.shape, rep2),
            pl.BlockSpec(wmsg2.shape, rep2), pl.BlockSpec(bmsg2.shape, rep2),
            pl.BlockSpec(wgru2.shape, rep2), pl.BlockSpec(bgru2.shape, rep2),
            pl.BlockSpec(wgate.shape, rep2), pl.BlockSpec(bgate.shape, rep2),
            pl.BlockSpec(wfc.shape, rep2), pl.BlockSpec(bfc.shape, rep2),
        ],
        out_specs=pl.BlockSpec((None, 8, c_pad), lambda b: (b, 0, 0)),
        compiler_params=pltpu.CompilerParams(dimension_semantics=("parallel",)),
    )(h0, a_cat, wmsg1, bmsg1, wgru1, bgru1, wmsg2, bmsg2, wgru2, bgru2,
      wgate, bgate, wfc, bfc)

    return out[:, 0, :num_cls]


# ---------------------------------------------------------------------------
# Deterministic parameter init (logical shapes per the PyTorch module __init__)
# ---------------------------------------------------------------------------
def init_params(key, *, out_feats, n_etypes, num_cls):
    def nrm(k, shape, scale=0.1):
        return (scale * jax.random.normal(k, shape)).astype(F32)

    ks = jax.random.split(key, 14)

    def ggnn_layer_params(k0, k1, k2, k3, k4, k5):
        return dict(
            # message Linear(out_feats, out_feats) per edge type, stored transposed: y = x @ W
            w_msg=nrm(k0, (n_etypes, out_feats, out_feats)),
            b_msg=nrm(k1, (n_etypes, 1, out_feats)),
            # GRUCell weights stored transposed: (out, 3*out), gate order [r, z, n]
            w_ih=nrm(k2, (out_feats, 3 * out_feats)),
            w_hh=nrm(k3, (out_feats, 3 * out_feats)),
            b_ih=nrm(k4, (1, 3 * out_feats)),
            b_hh=nrm(k5, (1, 3 * out_feats)),
        )

    return dict(
        ggnn1=ggnn_layer_params(*ks[0:6]),
        ggnn2=ggnn_layer_params(*ks[6:12]),
        w_gate=nrm(ks[12], (out_feats, 1)),          # GlobalAttentionPooling gate
        b_gate=jnp.zeros((1, 1), F32),
        w_fc=nrm(ks[13], (out_feats, num_cls)),       # fc, stored transposed
        b_fc=jnp.zeros((1, num_cls), F32),
    )


# ---------------------------------------------------------------------------
# Pure-JAX f32 reference (for a loose numerical sanity check)
# ---------------------------------------------------------------------------
def _reference_forward(feat, adj, params, *, n_steps, n_etypes, out_feats, num_cls):
    B, N, ann = feat.shape

    def gru(a, h, p):
        gi = a @ p["w_ih"] + p["b_ih"]
        gh = h @ p["w_hh"] + p["b_hh"]
        F = out_feats
        r = jax.nn.sigmoid(gi[:, :F] + gh[:, :F])
        z = jax.nn.sigmoid(gi[:, F:2 * F] + gh[:, F:2 * F])
        n = jnp.tanh(gi[:, 2 * F:] + r * gh[:, 2 * F:])
        return (1.0 - z) * n + z * h

    def layer(h, A, p):
        for _ in range(n_steps):
            a = jnp.zeros_like(h)
            for e in range(n_etypes):
                a = a + A[e] @ (h @ p["w_msg"][e] + p["b_msg"][e])
            h = gru(a, h, p)
        return jax.nn.relu(h)

    outs = []
    for b in range(B):
        h = jnp.concatenate([feat[b], jnp.zeros((N, out_feats - ann), F32)], axis=1)
        h = layer(h, adj[b], params["ggnn1"])
        h = layer(h, adj[b], params["ggnn2"])
        gate = h @ params["w_gate"] + params["b_gate"]
        alpha = jax.nn.softmax(gate, axis=0)
        hg = jnp.sum(alpha * h, axis=0, keepdims=True)
        outs.append(hg @ params["w_fc"] + params["b_fc"])
    return jnp.concatenate(outs, axis=0)


if __name__ == "__main__":
    annotation_size = 8
    out_feats = 32
    n_steps = 3
    n_etypes = 2
    num_cls = 4
    B, N = 2, 16   # two graphs, 16 nodes each

    key = jax.random.PRNGKey(0)
    k_feat, k_adj, k_par = jax.random.split(key, 3)

    feat = jax.random.normal(k_feat, (B, N, annotation_size), dtype=jnp.float32)
    # dense per-edge-type adjacency, adj[b, e, dst, src] in {0, 1}
    adj = (jax.random.uniform(k_adj, (B, n_etypes, N, N)) < 0.2).astype(jnp.float32)

    params = init_params(k_par, out_feats=out_feats, n_etypes=n_etypes, num_cls=num_cls)

    fwd = jax.jit(functools.partial(graph_cls_ggnn_forward,
                                    n_steps=n_steps, n_etypes=n_etypes,
                                    out_feats=out_feats, num_cls=num_cls))
    out = jax.block_until_ready(fwd(feat, adj, params))

    assert out.shape == (B, num_cls) and out.dtype == jnp.float32
    ref = _reference_forward(feat, adj, params, n_steps=n_steps, n_etypes=n_etypes,
                             out_feats=out_feats, num_cls=num_cls)
    assert jnp.allclose(out, ref, atol=5e-2, rtol=5e-2)
    print("KERNEL_OK")
</pallas_src>

<mosaic_0001>
module attributes {stable_mosaic.version = 11 : i64} {
  func.func @graph_cls_ggnn_kernel(%arg0: i32, %arg1: memref<1x16x128xf32, #tpu.memory_space<vmem>>, %arg2: memref<1x16x32xbf16, #tpu.memory_space<vmem>>, %arg3: memref<128x256xbf16, #tpu.memory_space<vmem>>, %arg4: memref<1x256xf32, #tpu.memory_space<vmem>>, %arg5: memref<256x768xbf16, #tpu.memory_space<vmem>>, %arg6: memref<1x768xf32, #tpu.memory_space<vmem>>, %arg7: memref<128x256xbf16, #tpu.memory_space<vmem>>, %arg8: memref<1x256xf32, #tpu.memory_space<vmem>>, %arg9: memref<256x768xbf16, #tpu.memory_space<vmem>>, %arg10: memref<1x768xf32, #tpu.memory_space<vmem>>, %arg11: memref<128x1xbf16, #tpu.memory_space<vmem>>, %arg12: memref<1x1xf32, #tpu.memory_space<vmem>>, %arg13: memref<128x128xbf16, #tpu.memory_space<vmem>>, %arg14: memref<1x128xf32, #tpu.memory_space<vmem>>, %arg15: memref<1x8x128xf32, #tpu.memory_space<vmem>>) attributes {dimension_semantics = [#tpu.dimension_semantics<parallel>], iteration_bounds = array<i64: 2>, scalar_prefetch = 0 : i64, scratch_operands = 0 : i64, tpu.core_type = #tpu.core_type<tc>, window_params = [{transform_indices = @transform_0, window_bounds = array<i64: 1, 16, 128>}, {transform_indices = @transform_1, window_bounds = array<i64: 1, 16, 32>}, {pipeline_mode = #tpu.pipeline_mode<synchronous>, transform_indices = @transform_2, window_bounds = array<i64: 128, 256>}, {pipeline_mode = #tpu.pipeline_mode<synchronous>, transform_indices = @transform_3, window_bounds = array<i64: 1, 256>}, {pipeline_mode = #tpu.pipeline_mode<synchronous>, transform_indices = @transform_4, window_bounds = array<i64: 256, 768>}, {pipeline_mode = #tpu.pipeline_mode<synchronous>, transform_indices = @transform_5, window_bounds = array<i64: 1, 768>}, {pipeline_mode = #tpu.pipeline_mode<synchronous>, transform_indices = @transform_6, window_bounds = array<i64: 128, 256>}, {pipeline_mode = #tpu.pipeline_mode<synchronous>, transform_indices = @transform_7, window_bounds = array<i64: 1, 256>}, {pipeline_mode = #tpu.pipeline_mode<synchronous>, transform_indices = @transform_8, window_bounds = array<i64: 256, 768>}, {pipeline_mode = #tpu.pipeline_mode<synchronous>, transform_indices = @transform_9, window_bounds = array<i64: 1, 768>}, {pipeline_mode = #tpu.pipeline_mode<synchronous>, transform_indices = @transform_10, window_bounds = array<i64: 128, 1>}, {pipeline_mode = #tpu.pipeline_mode<synchronous>, transform_indices = @transform_11, window_bounds = array<i64: 1, 1>}, {pipeline_mode = #tpu.pipeline_mode<synchronous>, transform_indices = @transform_12, window_bounds = array<i64: 128, 128>}, {pipeline_mode = #tpu.pipeline_mode<synchronous>, transform_indices = @transform_13, window_bounds = array<i64: 1, 128>}, {transform_indices = @transform_14, window_bounds = array<i64: 1, 8, 128>}]} {
    %c0 = arith.constant 0 : index
    %c0_0 = arith.constant 0 : index
    %c0_1 = arith.constant 0 : index
    %0 = vector.load %arg1[%c0, %c0_0, %c0_1] : memref<1x16x128xf32, #tpu.memory_space<vmem>>, vector<1x16x128xf32>
    %1 = vector.shape_cast %0 : vector<1x16x128xf32> to vector<16x128xf32>
    %c0_2 = arith.constant 0 : index
    %c0_3 = arith.constant 0 : index
    %c0_4 = arith.constant 0 : index
    %2 = vector.load %arg2[%c0_2, %c0_3, %c0_4] : memref<1x16x32xbf16, #tpu.memory_space<vmem>>, vector<1x16x32xbf16>
    %3 = vector.shape_cast %2 : vector<1x16x32xbf16> to vector<16x32xbf16>
    %c0_5 = arith.constant 0 : index
    %c0_6 = arith.constant 0 : index
    %4 = vector.load %arg3[%c0_5, %c0_6] : memref<128x256xbf16, #tpu.memory_space<vmem>>, vector<128x256xbf16>
    %c0_7 = arith.constant 0 : index
    %c0_8 = arith.constant 0 : index
    %5 = vector.load %arg4[%c0_7, %c0_8] : memref<1x256xf32, #tpu.memory_space<vmem>>, vector<1x256xf32>
    %c0_9 = arith.constant 0 : index
    %c0_10 = arith.constant 0 : index
    %6 = vector.load %arg5[%c0_9, %c0_10] : memref<256x768xbf16, #tpu.memory_space<vmem>>, vector<256x768xbf16>
    %c0_11 = arith.constant 0 : index
    %c0_12 = arith.constant 0 : index
    %7 = vector.load %arg6[%c0_11, %c0_12] : memref<1x768xf32, #tpu.memory_space<vmem>>, vector<1x768xf32>
    %c0_i32 = arith.constant 0 : i32
    %8 = arith.truncf %1 : vector<16x128xf32> to vector<16x128xbf16>
    %cst = arith.constant dense<0.000000e+00> : vector<16x256xf32>
    %9 = tpu.matmul %8, %4, %cst {dimension_numbers = #tpu.dot_dimension_numbers<[1], [0], [0], [1], [0, 0, 1, 1], [], []>} : vector<16x128xbf16>, vector<128x256xbf16>, vector<16x256xf32> -> vector<16x256xf32>
    %10 = vector.broadcast %5 : vector<1x256xf32> to vector<16x256xf32>
    %11 = arith.addf %9, %10 : vector<16x256xf32>
    %12 = vector.extract_strided_slice %11 {offsets = [0, 0], sizes = [16, 128], strides = [1, 1]} : vector<16x256xf32> to vector<16x128xf32>
    %13 = vector.extract_strided_slice %11 {offsets = [0, 128], sizes = [16, 128], strides = [1, 1]} : vector<16x256xf32> to vector<16x128xf32>
    %14 = tpu.concatenate %12, %13 in 0 : vector<16x128xf32>, vector<16x128xf32> -> vector<32x128xf32>
    %15 = arith.truncf %14 : vector<32x128xf32> to vector<32x128xbf16>
    %cst_13 = arith.constant dense<0.000000e+00> : vector<16x128xf32>
    %16 = tpu.matmul %3, %15, %cst_13 {dimension_numbers = #tpu.dot_dimension_numbers<[1], [0], [0], [1], [0, 0, 1, 1], [], []>} : vector<16x32xbf16>, vector<32x128xbf16>, vector<16x128xf32> -> vector<16x128xf32>
    %17 = tpu.concatenate %16, %1 in 1 : vector<16x128xf32>, vector<16x128xf32> -> vector<16x256xf32>
    %18 = arith.truncf %17 : vector<16x256xf32> to vector<16x256xbf16>
    %cst_14 = arith.constant dense<0.000000e+00> : vector<16x768xf32>
    %19 = tpu.matmul %18, %6, %cst_14 {dimension_numbers = #tpu.dot_dimension_numbers<[1], [0], [0], [1], [0, 0, 1, 1], [], []>} : vector<16x256xbf16>, vector<256x768xbf16>, vector<16x768xf32> -> vector<16x768xf32>
    %20 = vector.broadcast %7 : vector<1x768xf32> to vector<16x768xf32>
    %21 = arith.addf %19, %20 : vector<16x768xf32>
    %22 = vector.extract_strided_slice %21 {offsets = [0, 0], sizes = [16, 384], strides = [1, 1]} : vector<16x768xf32> to vector<16x384xf32>
    %23 = vector.extract_strided_slice %21 {offsets = [0, 384], sizes = [16, 384], strides = [1, 1]} : vector<16x768xf32> to vector<16x384xf32>
    %24 = vector.extract_strided_slice %22 {offsets = [0, 0], sizes = [16, 128], strides = [1, 1]} : vector<16x384xf32> to vector<16x128xf32>
    %25 = vector.extract_strided_slice %23 {offsets = [0, 0], sizes = [16, 128], strides = [1, 1]} : vector<16x384xf32> to vector<16x128xf32>
    %26 = arith.addf %24, %25 : vector<16x128xf32>
    %27 = arith.negf %26 : vector<16x128xf32>
    %28 = math.exp %27 : vector<16x128xf32>
    %cst_15 = arith.constant 1.000000e+00 : f32
    %29 = vector.broadcast %cst_15 : f32 to vector<16x128xf32>
    %30 = arith.addf %29, %28 : vector<16x128xf32>
    %31 = arith.divf %29, %30 : vector<16x128xf32>
    %32 = vector.extract_strided_slice %22 {offsets = [0, 128], sizes = [16, 128], strides = [1, 1]} : vector<16x384xf32> to vector<16x128xf32>
    %33 = vector.extract_strided_slice %23 {offsets = [0, 128], sizes = [16, 128], strides = [1, 1]} : vector<16x384xf32> to vector<16x128xf32>
    %34 = arith.addf %32, %33 : vector<16x128xf32>
    %35 = arith.negf %34 : vector<16x128xf32>
    %36 = math.exp %35 : vector<16x128xf32>
    %cst_16 = arith.constant 1.000000e+00 : f32
    %37 = vector.broadcast %cst_16 : f32 to vector<16x128xf32>
    %38 = arith.addf %37, %36 : vector<16x128xf32>
    %39 = arith.divf %37, %38 : vector<16x128xf32>
    %40 = vector.extract_strided_slice %22 {offsets = [0, 256], sizes = [16, 128], strides = [1, 1]} : vector<16x384xf32> to vector<16x128xf32>
    %41 = vector.extract_strided_slice %23 {offsets = [0, 256], sizes = [16, 128], strides = [1, 1]} : vector<16x384xf32> to vector<16x128xf32>
    %42 = arith.mulf %31, %41 : vector<16x128xf32>
    %43 = arith.addf %40, %42 : vector<16x128xf32>
    %44 = math.tanh %43 : vector<16x128xf32>
    %cst_17 = arith.constant 1.000000e+00 : f32
    %45 = vector.broadcast %cst_17 : f32 to vector<16x128xf32>
    %46 = arith.subf %45, %39 : vector<16x128xf32>
    %47 = arith.mulf %46, %44 : vector<16x128xf32>
    %48 = arith.mulf %39, %1 : vector<16x128xf32>
    %49 = arith.addf %47, %48 : vector<16x128xf32>
    %c1_i32 = arith.constant 1 : i32
    %50 = arith.truncf %49 : vector<16x128xf32> to vector<16x128xbf16>
    %cst_18 = arith.constant dense<0.000000e+00> : vector<16x256xf32>
    %51 = tpu.matmul %50, %4, %cst_18 {dimension_numbers = #tpu.dot_dimension_numbers<[1], [0], [0], [1], [0, 0, 1, 1], [], []>} : vector<16x128xbf16>, vector<128x256xbf16>, vector<16x256xf32> -> vector<16x256xf32>
    %52 = vector.broadcast %5 : vector<1x256xf32> to vector<16x256xf32>
    %53 = arith.addf %51, %52 : vector<16x256xf32>
    %54 = vector.extract_strided_slice %53 {offsets = [0, 0], sizes = [16, 128], strides = [1, 1]} : vector<16x256xf32> to vector<16x128xf32>
    %55 = vector.extract_strided_slice %53 {offsets = [0, 128], sizes = [16, 128], strides = [1, 1]} : vector<16x256xf32> to vector<16x128xf32>
    %56 = tpu.concatenate %54, %55 in 0 : vector<16x128xf32>, vector<16x128xf32> -> vector<32x128xf32>
    %57 = arith.truncf %56 : vector<32x128xf32> to vector<32x128xbf16>
    %cst_19 = arith.constant dense<0.000000e+00> : vector<16x128xf32>
    %58 = tpu.matmul %3, %57, %cst_19 {dimension_numbers = #tpu.dot_dimension_numbers<[1], [0], [0], [1], [0, 0, 1, 1], [], []>} : vector<16x32xbf16>, vector<32x128xbf16>, vector<16x128xf32> -> vector<16x128xf32>
    %59 = tpu.concatenate %58, %49 in 1 : vector<16x128xf32>, vector<16x128xf32> -> vector<16x256xf32>
    %60 = arith.truncf %59 : vector<16x256xf32> to vector<16x256xbf16>
    %cst_20 = arith.constant dense<0.000000e+00> : vector<16x768xf32>
    %61 = tpu.matmul %60, %6, %cst_20 {dimension_numbers = #tpu.dot_dimension_numbers<[1], [0], [0], [1], [0, 0, 1, 1], [], []>} : vector<16x256xbf16>, vector<256x768xbf16>, vector<16x768xf32> -> vector<16x768xf32>
    %62 = vector.broadcast %7 : vector<1x768xf32> to vector<16x768xf32>
    %63 = arith.addf %61, %62 : vector<16x768xf32>
    %64 = vector.extract_strided_slice %63 {offsets = [0, 0], sizes = [16, 384], strides = [1, 1]} : vector<16x768xf32> to vector<16x384xf32>
    %65 = vector.extract_strided_slice %63 {offsets = [0, 384], sizes = [16, 384], strides = [1, 1]} : vector<16x768xf32> to vector<16x384xf32>
    %66 = vector.extract_strided_slice %64 {offsets = [0, 0], sizes = [16, 128], strides = [1, 1]} : vector<16x384xf32> to vector<16x128xf32>
    %67 = vector.extract_strided_slice %65 {offsets = [0, 0], sizes = [16, 128], strides = [1, 1]} : vector<16x384xf32> to vector<16x128xf32>
    %68 = arith.addf %66, %67 : vector<16x128xf32>
    %69 = arith.negf %68 : vector<16x128xf32>
    %70 = math.exp %69 : vector<16x128xf32>
    %cst_21 = arith.constant 1.000000e+00 : f32
    %71 = vector.broadcast %cst_21 : f32 to vector<16x128xf32>
    %72 = arith.addf %71, %70 : vector<16x128xf32>
    %73 = arith.divf %71, %72 : vector<16x128xf32>
    %74 = vector.extract_strided_slice %64 {offsets = [0, 128], sizes = [16, 128], strides = [1, 1]} : vector<16x384xf32> to vector<16x128xf32>
    %75 = vector.extract_strided_slice %65 {offsets = [0, 128], sizes = [16, 128], strides = [1, 1]} : vector<16x384xf32> to vector<16x128xf32>
    %76 = arith.addf %74, %75 : vector<16x128xf32>
    %77 = arith.negf %76 : vector<16x128xf32>
    %78 = math.exp %77 : vector<16x128xf32>
    %cst_22 = arith.constant 1.000000e+00 : f32
    %79 = vector.broadcast %cst_22 : f32 to vector<16x128xf32>
    %80 = arith.addf %79, %78 : vector<16x128xf32>
    %81 = arith.divf %79, %80 : vector<16x128xf32>
    %82 = vector.extract_strided_slice %64 {offsets = [0, 256], sizes = [16, 128], strides = [1, 1]} : vector<16x384xf32> to vector<16x128xf32>
    %83 = vector.extract_strided_slice %65 {offsets = [0, 256], sizes = [16, 128], strides = [1, 1]} : vector<16x384xf32> to vector<16x128xf32>
    %84 = arith.mulf %73, %83 : vector<16x128xf32>
    %85 = arith.addf %82, %84 : vector<16x128xf32>
    %86 = math.tanh %85 : vector<16x128xf32>
    %cst_23 = arith.constant 1.000000e+00 : f32
    %87 = vector.broadcast %cst_23 : f32 to vector<16x128xf32>
    %88 = arith.subf %87, %81 : vector<16x128xf32>
    %89 = arith.mulf %88, %86 : vector<16x128xf32>
    %90 = arith.mulf %81, %49 : vector<16x128xf32>
    %91 = arith.addf %89, %90 : vector<16x128xf32>
    %c2_i32 = arith.constant 2 : i32
    %92 = arith.truncf %91 : vector<16x128xf32> to vector<16x128xbf16>
    %cst_24 = arith.constant dense<0.000000e+00> : vector<16x256xf32>
    %93 = tpu.matmul %92, %4, %cst_24 {dimension_numbers = #tpu.dot_dimension_numbers<[1], [0], [0], [1], [0, 0, 1, 1], [], []>} : vector<16x128xbf16>, vector<128x256xbf16>, vector<16x256xf32> -> vector<16x256xf32>
    %94 = vector.broadcast %5 : vector<1x256xf32> to vector<16x256xf32>
    %95 = arith.addf %93, %94 : vector<16x256xf32>
    %96 = vector.extract_strided_slice %95 {offsets = [0, 0], sizes = [16, 128], strides = [1, 1]} : vector<16x256xf32> to vector<16x128xf32>
    %97 = vector.extract_strided_slice %95 {offsets = [0, 128], sizes = [16, 128], strides = [1, 1]} : vector<16x256xf32> to vector<16x128xf32>
    %98 = tpu.concatenate %96, %97 in 0 : vector<16x128xf32>, vector<16x128xf32> -> vector<32x128xf32>
    %99 = arith.truncf %98 : vector<32x128xf32> to vector<32x128xbf16>
    %cst_25 = arith.constant dense<0.000000e+00> : vector<16x128xf32>
    %100 = tpu.matmul %3, %99, %cst_25 {dimension_numbers = #tpu.dot_dimension_numbers<[1], [0], [0], [1], [0, 0, 1, 1], [], []>} : vector<16x32xbf16>, vector<32x128xbf16>, vector<16x128xf32> -> vector<16x128xf32>
    %101 = tpu.concatenate %100, %91 in 1 : vector<16x128xf32>, vector<16x128xf32> -> vector<16x256xf32>
    %102 = arith.truncf %101 : vector<16x256xf32> to vector<16x256xbf16>
    %cst_26 = arith.constant dense<0.000000e+00> : vector<16x768xf32>
    %103 = tpu.matmul %102, %6, %cst_26 {dimension_numbers = #tpu.dot_dimension_numbers<[1], [0], [0], [1], [0, 0, 1, 1], [], []>} : vector<16x256xbf16>, vector<256x768xbf16>, vector<16x768xf32> -> vector<16x768xf32>
    %104 = vector.broadcast %7 : vector<1x768xf32> to vector<16x768xf32>
    %105 = arith.addf %103, %104 : vector<16x768xf32>
    %106 = vector.extract_strided_slice %105 {offsets = [0, 0], sizes = [16, 384], strides = [1, 1]} : vector<16x768xf32> to vector<16x384xf32>
    %107 = vector.extract_strided_slice %105 {offsets = [0, 384], sizes = [16, 384], strides = [1, 1]} : vector<16x768xf32> to vector<16x384xf32>
    %108 = vector.extract_strided_slice %106 {offsets = [0, 0], sizes = [16, 128], strides = [1, 1]} : vector<16x384xf32> to vector<16x128xf32>
    %109 = vector.extract_strided_slice %107 {offsets = [0, 0], sizes = [16, 128], strides = [1, 1]} : vector<16x384xf32> to vector<16x128xf32>
    %110 = arith.addf %108, %109 : vector<16x128xf32>
    %111 = arith.negf %110 : vector<16x128xf32>
    %112 = math.exp %111 : vector<16x128xf32>
    %cst_27 = arith.constant 1.000000e+00 : f32
    %113 = vector.broadcast %cst_27 : f32 to vector<16x128xf32>
    %114 = arith.addf %113, %112 : vector<16x128xf32>
    %115 = arith.divf %113, %114 : vector<16x128xf32>
    %116 = vector.extract_strided_slice %106 {offsets = [0, 128], sizes = [16, 128], strides = [1, 1]} : vector<16x384xf32> to vector<16x128xf32>
    %117 = vector.extract_strided_slice %107 {offsets = [0, 128], sizes = [16, 128], strides = [1, 1]} : vector<16x384xf32> to vector<16x128xf32>
    %118 = arith.addf %116, %117 : vector<16x128xf32>
    %119 = arith.negf %118 : vector<16x128xf32>
    %120 = math.exp %119 : vector<16x128xf32>
    %cst_28 = arith.constant 1.000000e+00 : f32
    %121 = vector.broadcast %cst_28 : f32 to vector<16x128xf32>
    %122 = arith.addf %121, %120 : vector<16x128xf32>
    %123 = arith.divf %121, %122 : vector<16x128xf32>
    %124 = vector.extract_strided_slice %106 {offsets = [0, 256], sizes = [16, 128], strides = [1, 1]} : vector<16x384xf32> to vector<16x128xf32>
    %125 = vector.extract_strided_slice %107 {offsets = [0, 256], sizes = [16, 128], strides = [1, 1]} : vector<16x384xf32> to vector<16x128xf32>
    %126 = arith.mulf %115, %125 : vector<16x128xf32>
    %127 = arith.addf %124, %126 : vector<16x128xf32>
    %128 = math.tanh %127 : vector<16x128xf32>
    %cst_29 = arith.constant 1.000000e+00 : f32
    %129 = vector.broadcast %cst_29 : f32 to vector<16x128xf32>
    %130 = arith.subf %129, %123 : vector<16x128xf32>
    %131 = arith.mulf %130, %128 : vector<16x128xf32>
    %132 = arith.mulf %123, %91 : vector<16x128xf32>
    %133 = arith.addf %131, %132 : vector<16x128xf32>
    %cst_30 = arith.constant 0.000000e+00 : f32
    %134 = vector.broadcast %cst_30 : f32 to vector<16x128xf32>
    %135 = arith.maximumf %133, %134 : vector<16x128xf32>
    %c0_31 = arith.constant 0 : index
    %c0_32 = arith.constant 0 : index
    %136 = vector.load %arg7[%c0_31, %c0_32] : memref<128x256xbf16, #tpu.memory_space<vmem>>, vector<128x256xbf16>
    %c0_33 = arith.constant 0 : index
    %c0_34 = arith.constant 0 : index
    %137 = vector.load %arg8[%c0_33, %c0_34] : memref<1x256xf32, #tpu.memory_space<vmem>>, vector<1x256xf32>
    %c0_35 = arith.constant 0 : index
    %c0_36 = arith.constant 0 : index
    %138 = vector.load %arg9[%c0_35, %c0_36] : memref<256x768xbf16, #tpu.memory_space<vmem>>, vector<256x768xbf16>
    %c0_37 = arith.constant 0 : index
    %c0_38 = arith.constant 0 : index
    %139 = vector.load %arg10[%c0_37, %c0_38] : memref<1x768xf32, #tpu.memory_space<vmem>>, vector<1x768xf32>
    %c0_i32_39 = arith.constant 0 : i32
    %140 = arith.truncf %135 : vector<16x128xf32> to vector<16x128xbf16>
    %cst_40 = arith.constant dense<0.000000e+00> : vector<16x256xf32>
    %141 = tpu.matmul %140, %136, %cst_40 {dimension_numbers = #tpu.dot_dimension_numbers<[1], [0], [0], [1], [0, 0, 1, 1], [], []>} : vector<16x128xbf16>, vector<128x256xbf16>, vector<16x256xf32> -> vector<16x256xf32>
    %142 = vector.broadcast %137 : vector<1x256xf32> to vector<16x256xf32>
    %143 = arith.addf %141, %142 : vector<16x256xf32>
    %144 = vector.extract_strided_slice %143 {offsets = [0, 0], sizes = [16, 128], strides = [1, 1]} : vector<16x256xf32> to vector<16x128xf32>
    %145 = vector.extract_strided_slice %143 {offsets = [0, 128], sizes = [16, 128], strides = [1, 1]} : vector<16x256xf32> to vector<16x128xf32>
    %146 = tpu.concatenate %144, %145 in 0 : vector<16x128xf32>, vector<16x128xf32> -> vector<32x128xf32>
    %147 = arith.truncf %146 : vector<32x128xf32> to vector<32x128xbf16>
    %cst_41 = arith.constant dense<0.000000e+00> : vector<16x128xf32>
    %148 = tpu.matmul %3, %147, %cst_41 {dimension_numbers = #tpu.dot_dimension_numbers<[1], [0], [0], [1], [0, 0, 1, 1], [], []>} : vector<16x32xbf16>, vector<32x128xbf16>, vector<16x128xf32> -> vector<16x128xf32>
    %149 = tpu.concatenate %148, %135 in 1 : vector<16x128xf32>, vector<16x128xf32> -> vector<16x256xf32>
    %150 = arith.truncf %149 : vector<16x256xf32> to vector<16x256xbf16>
    %cst_42 = arith.constant dense<0.000000e+00> : vector<16x768xf32>
    %151 = tpu.matmul %150, %138, %cst_42 {dimension_numbers = #tpu.dot_dimension_numbers<[1], [0], [0], [1], [0, 0, 1, 1], [], []>} : vector<16x256xbf16>, vector<256x768xbf16>, vector<16x768xf32> -> vector<16x768xf32>
    %152 = vector.broadcast %139 : vector<1x768xf32> to vector<16x768xf32>
    %153 = arith.addf %151, %152 : vector<16x768xf32>
    %154 = vector.extract_strided_slice %153 {offsets = [0, 0], sizes = [16, 384], strides = [1, 1]} : vector<16x768xf32> to vector<16x384xf32>
    %155 = vector.extract_strided_slice %153 {offsets = [0, 384], sizes = [16, 384], strides = [1, 1]} : vector<16x768xf32> to vector<16x384xf32>
    %156 = vector.extract_strided_slice %154 {offsets = [0, 0], sizes = [16, 128], strides = [1, 1]} : vector<16x384xf32> to vector<16x128xf32>
    %157 = vector.extract_strided_slice %155 {offsets = [0, 0], sizes = [16, 128], strides = [1, 1]} : vector<16x384xf32> to vector<16x128xf32>
    %158 = arith.addf %156, %157 : vector<16x128xf32>
    %159 = arith.negf %158 : vector<16x128xf32>
    %160 = math.exp %159 : vector<16x128xf32>
    %cst_43 = arith.constant 1.000000e+00 : f32
    %161 = vector.broadcast %cst_43 : f32 to vector<16x128xf32>
    %162 = arith.addf %161, %160 : vector<16x128xf32>
    %163 = arith.divf %161, %162 : vector<16x128xf32>
    %164 = vector.extract_strided_slice %154 {offsets = [0, 128], sizes = [16, 128], strides = [1, 1]} : vector<16x384xf32> to vector<16x128xf32>
    %165 = vector.extract_strided_slice %155 {offsets = [0, 128], sizes = [16, 128], strides = [1, 1]} : vector<16x384xf32> to vector<16x128xf32>
    %166 = arith.addf %164, %165 : vector<16x128xf32>
    %167 = arith.negf %166 : vector<16x128xf32>
    %168 = math.exp %167 : vector<16x128xf32>
    %cst_44 = arith.constant 1.000000e+00 : f32
    %169 = vector.broadcast %cst_44 : f32 to vector<16x128xf32>
    %170 = arith.addf %169, %168 : vector<16x128xf32>
    %171 = arith.divf %169, %170 : vector<16x128xf32>
    %172 = vector.extract_strided_slice %154 {offsets = [0, 256], sizes = [16, 128], strides = [1, 1]} : vector<16x384xf32> to vector<16x128xf32>
    %173 = vector.extract_strided_slice %155 {offsets = [0, 256], sizes = [16, 128], strides = [1, 1]} : vector<16x384xf32> to vector<16x128xf32>
    %174 = arith.mulf %163, %173 : vector<16x128xf32>
    %175 = arith.addf %172, %174 : vector<16x128xf32>
    %176 = math.tanh %175 : vector<16x128xf32>
    %cst_45 = arith.constant 1.000000e+00 : f32
    %177 = vector.broadcast %cst_45 : f32 to vector<16x128xf32>
    %178 = arith.subf %177, %171 : vector<16x128xf32>
    %179 = arith.mulf %178, %176 : vector<16x128xf32>
    %180 = arith.mulf %171, %135 : vector<16x128xf32>
    %181 = arith.addf %179, %180 : vector<16x128xf32>
    %c1_i32_46 = arith.constant 1 : i32
    %182 = arith.truncf %181 : vector<16x128xf32> to vector<16x128xbf16>
    %cst_47 = arith.constant dense<0.000000e+00> : vector<16x256xf32>
    %183 = tpu.matmul %182, %136, %cst_47 {dimension_numbers = #tpu.dot_dimension_numbers<[1], [0], [0], [1], [0, 0, 1, 1], [], []>} : vector<16x128xbf16>, vector<128x256xbf16>, vector<16x256xf32> -> vector<16x256xf32>
    %184 = vector.broadcast %137 : vector<1x256xf32> to vector<16x256xf32>
    %185 = arith.addf %183, %184 : vector<16x256xf32>
    %186 = vector.extract_strided_slice %185 {offsets = [0, 0], sizes = [16, 128], strides = [1, 1]} : vector<16x256xf32> to vector<16x128xf32>
    %187 = vector.extract_strided_slice %185 {offsets = [0, 128], sizes = [16, 128], strides = [1, 1]} : vector<16x256xf32> to vector<16x128xf32>
    %188 = tpu.concatenate %186, %187 in 0 : vector<16x128xf32>, vector<16x128xf32> -> vector<32x128xf32>
    %189 = arith.truncf %188 : vector<32x128xf32> to vector<32x128xbf16>
    %cst_48 = arith.constant dense<0.000000e+00> : vector<16x128xf32>
    %190 = tpu.matmul %3, %189, %cst_48 {dimension_numbers = #tpu.dot_dimension_numbers<[1], [0], [0], [1], [0, 0, 1, 1], [], []>} : vector<16x32xbf16>, vector<32x128xbf16>, vector<16x128xf32> -> vector<16x128xf32>
    %191 = tpu.concatenate %190, %181 in 1 : vector<16x128xf32>, vector<16x128xf32> -> vector<16x256xf32>
    %192 = arith.truncf %191 : vector<16x256xf32> to vector<16x256xbf16>
    %cst_49 = arith.constant dense<0.000000e+00> : vector<16x768xf32>
    %193 = tpu.matmul %192, %138, %cst_49 {dimension_numbers = #tpu.dot_dimension_numbers<[1], [0], [0], [1], [0, 0, 1, 1], [], []>} : vector<16x256xbf16>, vector<256x768xbf16>, vector<16x768xf32> -> vector<16x768xf32>
    %194 = vector.broadcast %139 : vector<1x768xf32> to vector<16x768xf32>
    %195 = arith.addf %193, %194 : vector<16x768xf32>
    %196 = vector.extract_strided_slice %195 {offsets = [0, 0], sizes = [16, 384], strides = [1, 1]} : vector<16x768xf32> to vector<16x384xf32>
    %197 = vector.extract_strided_slice %195 {offsets = [0, 384], sizes = [16, 384], strides = [1, 1]} : vector<16x768xf32> to vector<16x384xf32>
    %198 = vector.extract_strided_slice %196 {offsets = [0, 0], sizes = [16, 128], strides = [1, 1]} : vector<16x384xf32> to vector<16x128xf32>
    %199 = vector.extract_strided_slice %197 {offsets = [0, 0], sizes = [16, 128], strides = [1, 1]} : vector<16x384xf32> to vector<16x128xf32>
    %200 = arith.addf %198, %199 : vector<16x128xf32>
    %201 = arith.negf %200 : vector<16x128xf32>
    %202 = math.exp %201 : vector<16x128xf32>
    %cst_50 = arith.constant 1.000000e+00 : f32
    %203 = vector.broadcast %cst_50 : f32 to vector<16x128xf32>
    %204 = arith.addf %203, %202 : vector<16x128xf32>
    %205 = arith.divf %203, %204 : vector<16x128xf32>
    %206 = vector.extract_strided_slice %196 {offsets = [0, 128], sizes = [16, 128], strides = [1, 1]} : vector<16x384xf32> to vector<16x128xf32>
    %207 = vector.extract_strided_slice %197 {offsets = [0, 128], sizes = [16, 128], strides = [1, 1]} : vector<16x384xf32> to vector<16x128xf32>
    %208 = arith.addf %206, %207 : vector<16x128xf32>
    %209 = arith.negf %208 : vector<16x128xf32>
    %210 = math.exp %209 : vector<16x128xf32>
    %cst_51 = arith.constant 1.000000e+00 : f32
    %211 = vector.broadcast %cst_51 : f32 to vector<16x128xf32>
    %212 = arith.addf %211, %210 : vector<16x128xf32>
    %213 = arith.divf %211, %212 : vector<16x128xf32>
    %214 = vector.extract_strided_slice %196 {offsets = [0, 256], sizes = [16, 128], strides = [1, 1]} : vector<16x384xf32> to vector<16x128xf32>
    %215 = vector.extract_strided_slice %197 {offsets = [0, 256], sizes = [16, 128], strides = [1, 1]} : vector<16x384xf32> to vector<16x128xf32>
    %216 = arith.mulf %205, %215 : vector<16x128xf32>
    %217 = arith.addf %214, %216 : vector<16x128xf32>
    %218 = math.tanh %217 : vector<16x128xf32>
    %cst_52 = arith.constant 1.000000e+00 : f32
    %219 = vector.broadcast %cst_52 : f32 to vector<16x128xf32>
    %220 = arith.subf %219, %213 : vector<16x128xf32>
    %221 = arith.mulf %220, %218 : vector<16x128xf32>
    %222 = arith.mulf %213, %181 : vector<16x128xf32>
    %223 = arith.addf %221, %222 : vector<16x128xf32>
    %c2_i32_53 = arith.constant 2 : i32
    %224 = arith.truncf %223 : vector<16x128xf32> to vector<16x128xbf16>
    %cst_54 = arith.constant dense<0.000000e+00> : vector<16x256xf32>
    %225 = tpu.matmul %224, %136, %cst_54 {dimension_numbers = #tpu.dot_dimension_numbers<[1], [0], [0], [1], [0, 0, 1, 1], [], []>} : vector<16x128xbf16>, vector<128x256xbf16>, vector<16x256xf32> -> vector<16x256xf32>
    %226 = vector.broadcast %137 : vector<1x256xf32> to vector<16x256xf32>
    %227 = arith.addf %225, %226 : vector<16x256xf32>
    %228 = vector.extract_strided_slice %227 {offsets = [0, 0], sizes = [16, 128], strides = [1, 1]} : vector<16x256xf32> to vector<16x128xf32>
    %229 = vector.extract_strided_slice %227 {offsets = [0, 128], sizes = [16, 128], strides = [1, 1]} : vector<16x256xf32> to vector<16x128xf32>
    %230 = tpu.concatenate %228, %229 in 0 : vector<16x128xf32>, vector<16x128xf32> -> vector<32x128xf32>
    %231 = arith.truncf %230 : vector<32x128xf32> to vector<32x128xbf16>
    %cst_55 = arith.constant dense<0.000000e+00> : vector<16x128xf32>
    %232 = tpu.matmul %3, %231, %cst_55 {dimension_numbers = #tpu.dot_dimension_numbers<[1], [0], [0], [1], [0, 0, 1, 1], [], []>} : vector<16x32xbf16>, vector<32x128xbf16>, vector<16x128xf32> -> vector<16x128xf32>
    %233 = tpu.concatenate %232, %223 in 1 : vector<16x128xf32>, vector<16x128xf32> -> vector<16x256xf32>
    %234 = arith.truncf %233 : vector<16x256xf32> to vector<16x256xbf16>
    %cst_56 = arith.constant dense<0.000000e+00> : vector<16x768xf32>
    %235 = tpu.matmul %234, %138, %cst_56 {dimension_numbers = #tpu.dot_dimension_numbers<[1], [0], [0], [1], [0, 0, 1, 1], [], []>} : vector<16x256xbf16>, vector<256x768xbf16>, vector<16x768xf32> -> vector<16x768xf32>
    %236 = vector.broadcast %139 : vector<1x768xf32> to vector<16x768xf32>
    %237 = arith.addf %235, %236 : vector<16x768xf32>
    %238 = vector.extract_strided_slice %237 {offsets = [0, 0], sizes = [16, 384], strides = [1, 1]} : vector<16x768xf32> to vector<16x384xf32>
    %239 = vector.extract_strided_slice %237 {offsets = [0, 384], sizes = [16, 384], strides = [1, 1]} : vector<16x768xf32> to vector<16x384xf32>
    %240 = vector.extract_strided_slice %238 {offsets = [0, 0], sizes = [16, 128], strides = [1, 1]} : vector<16x384xf32> to vector<16x128xf32>
    %241 = vector.extract_strided_slice %239 {offsets = [0, 0], sizes = [16, 128], strides = [1, 1]} : vector<16x384xf32> to vector<16x128xf32>
    %242 = arith.addf %240, %241 : vector<16x128xf32>
    %243 = arith.negf %242 : vector<16x128xf32>
    %244 = math.exp %243 : vector<16x128xf32>
    %cst_57 = arith.constant 1.000000e+00 : f32
    %245 = vector.broadcast %cst_57 : f32 to vector<16x128xf32>
    %246 = arith.addf %245, %244 : vector<16x128xf32>
    %247 = arith.divf %245, %246 : vector<16x128xf32>
    %248 = vector.extract_strided_slice %238 {offsets = [0, 128], sizes = [16, 128], strides = [1, 1]} : vector<16x384xf32> to vector<16x128xf32>
    %249 = vector.extract_strided_slice %239 {offsets = [0, 128], sizes = [16, 128], strides = [1, 1]} : vector<16x384xf32> to vector<16x128xf32>
    %250 = arith.addf %248, %249 : vector<16x128xf32>
    %251 = arith.negf %250 : vector<16x128xf32>
    %252 = math.exp %251 : vector<16x128xf32>
    %cst_58 = arith.constant 1.000000e+00 : f32
    %253 = vector.broadcast %cst_58 : f32 to vector<16x128xf32>
    %254 = arith.addf %253, %252 : vector<16x128xf32>
    %255 = arith.divf %253, %254 : vector<16x128xf32>
    %256 = vector.extract_strided_slice %238 {offsets = [0, 256], sizes = [16, 128], strides = [1, 1]} : vector<16x384xf32> to vector<16x128xf32>
    %257 = vector.extract_strided_slice %239 {offsets = [0, 256], sizes = [16, 128], strides = [1, 1]} : vector<16x384xf32> to vector<16x128xf32>
    %258 = arith.mulf %247, %257 : vector<16x128xf32>
    %259 = arith.addf %256, %258 : vector<16x128xf32>
    %260 = math.tanh %259 : vector<16x128xf32>
    %cst_59 = arith.constant 1.000000e+00 : f32
    %261 = vector.broadcast %cst_59 : f32 to vector<16x128xf32>
    %262 = arith.subf %261, %255 : vector<16x128xf32>
    %263 = arith.mulf %262, %260 : vector<16x128xf32>
    %264 = arith.mulf %255, %223 : vector<16x128xf32>
    %265 = arith.addf %263, %264 : vector<16x128xf32>
    %cst_60 = arith.constant 0.000000e+00 : f32
    %266 = vector.broadcast %cst_60 : f32 to vector<16x128xf32>
    %267 = arith.maximumf %265, %266 : vector<16x128xf32>
    %268 = arith.truncf %267 : vector<16x128xf32> to vector<16x128xbf16>
    %c0_61 = arith.constant 0 : index
    %c0_62 = arith.constant 0 : index
    %269 = vector.load %arg11[%c0_61, %c0_62] : memref<128x1xbf16, #tpu.memory_space<vmem>>, vector<128x1xbf16>
    %cst_63 = arith.constant dense<0.000000e+00> : vector<16x1xf32>
    %270 = tpu.matmul %268, %269, %cst_63 {dimension_numbers = #tpu.dot_dimension_numbers<[1], [0], [0], [1], [0, 0, 1, 1], [], []>} : vector<16x128xbf16>, vector<128x1xbf16>, vector<16x1xf32> -> vector<16x1xf32>
    %c0_64 = arith.constant 0 : index
    %c0_65 = arith.constant 0 : index
    %271 = vector.load %arg12[%c0_64, %c0_65] : memref<1x1xf32, #tpu.memory_space<vmem>>, vector<1x1xf32>
    %272 = vector.broadcast %271 : vector<1x1xf32> to vector<16x1xf32>
    %273 = arith.addf %270, %272 : vector<16x1xf32>
    %cst_66 = arith.constant dense<0xFF800000> : vector<1xf32>
    %274 = vector.multi_reduction <maximumf>, %273, %cst_66 [0] : vector<16x1xf32> to vector<1xf32>
    %275 = vector.shape_cast %274 : vector<1xf32> to vector<1x1xf32>
    %276 = vector.broadcast %275 : vector<1x1xf32> to vector<16x1xf32>
    %277 = arith.subf %273, %276 : vector<16x1xf32>
    %278 = math.exp %277 : vector<16x1xf32>
    %cst_67 = arith.constant dense<0.000000e+00> : vector<1xf32>
    %279 = vector.multi_reduction <add>, %278, %cst_67 [0] : vector<16x1xf32> to vector<1xf32>
    %280 = vector.shape_cast %279 : vector<1xf32> to vector<1x1xf32>
    %281 = vector.broadcast %280 : vector<1x1xf32> to vector<16x1xf32>
    %282 = arith.divf %278, %281 : vector<16x1xf32>
    %c0_68 = arith.constant 0 : index
    %c0_69 = arith.constant 0 : index
    %283 = vector.load %arg13[%c0_68, %c0_69] : memref<128x128xbf16, #tpu.memory_space<vmem>>, vector<128x128xbf16>
    %cst_70 = arith.constant dense<0.000000e+00> : vector<16x128xf32>
    %284 = tpu.matmul %268, %283, %cst_70 {dimension_numbers = #tpu.dot_dimension_numbers<[1], [0], [0], [1], [0, 0, 1, 1], [], []>} : vector<16x128xbf16>, vector<128x128xbf16>, vector<16x128xf32> -> vector<16x128xf32>
    %285 = vector.broadcast %282 : vector<16x1xf32> to vector<16x128xf32>
    %286 = arith.mulf %285, %284 : vector<16x128xf32>
    %cst_71 = arith.constant dense<0.000000e+00> : vector<128xf32>
    %287 = vector.multi_reduction <add>, %286, %cst_71 [0] : vector<16x128xf32> to vector<128xf32>
    %288 = vector.shape_cast %287 : vector<128xf32> to vector<1x128xf32>
    %c0_72 = arith.constant 0 : index
    %c0_73 = arith.constant 0 : index
    %289 = vector.load %arg14[%c0_72, %c0_73] : memref<1x128xf32, #tpu.memory_space<vmem>>, vector<1x128xf32>
    %290 = arith.addf %288, %289 : vector<1x128xf32>
    %291 = vector.shape_cast %290 : vector<1x128xf32> to vector<1x128xf32>
    %292 = vector.broadcast %291 : vector<1x128xf32> to vector<8x128xf32>
    %c0_74 = arith.constant 0 : index
    %c0_75 = arith.constant 0 : index
    %c0_76 = arith.constant 0 : index
    %293 = vector.load %arg15[%c0_74, %c0_75, %c0_76] : memref<1x8x128xf32, #tpu.memory_space<vmem>>, vector<1x8x128xf32>
    %294 = vector.shape_cast %293 : vector<1x8x128xf32> to vector<8x128xf32>
    %295 = vector.shape_cast %292 : vector<8x128xf32> to vector<1x8x128xf32>
    tpu.vector_store %arg15[%c0_74, %c0_75, %c0_76], %295 {strides = array<i32>} : memref<1x8x128xf32, #tpu.memory_space<vmem>>, vector<1x8x128xf32>,
    return
  }
  func.func @transform_0(%arg0: i32) -> (i32, i32, i32) {
    %c0_i32 = arith.constant 0 : i32
    %c0_i32_0 = arith.constant 0 : i32
    %c0_i32_1 = arith.constant 0 : i32
    return %arg0, %c0_i32, %c0_i32_0 : i32, i32, i32
  }
  func.func @transform_1(%arg0: i32) -> (i32, i32, i32) {
    %c0_i32 = arith.constant 0 : i32
    %c0_i32_0 = arith.constant 0 : i32
    %c0_i32_1 = arith.constant 0 : i32
    return %arg0, %c0_i32, %c0_i32_0 : i32, i32, i32
  }
  func.func @transform_2(%arg0: i32) -> (i32, i32) {
    %c0_i32 = arith.constant 0 : i32
    %c0_i32_0 = arith.constant 0 : i32
    %c0_i32_1 = arith.constant 0 : i32
    return %c0_i32, %c0_i32_0 : i32, i32
  }
  func.func @transform_3(%arg0: i32) -> (i32, i32) {
    %c0_i32 = arith.constant 0 : i32
    %c0_i32_0 = arith.constant 0 : i32
    %c0_i32_1 = arith.constant 0 : i32
    return %c0_i32, %c0_i32_0 : i32, i32
  }
  func.func @transform_4(%arg0: i32) -> (i32, i32) {
    %c0_i32 = arith.constant 0 : i32
    %c0_i32_0 = arith.constant 0 : i32
    %c0_i32_1 = arith.constant 0 : i32
    return %c0_i32, %c0_i32_0 : i32, i32
  }
  func.func @transform_5(%arg0: i32) -> (i32, i32) {
    %c0_i32 = arith.constant 0 : i32
    %c0_i32_0 = arith.constant 0 : i32
    %c0_i32_1 = arith.constant 0 : i32
    return %c0_i32, %c0_i32_0 : i32, i32
  }
  func.func @transform_6(%arg0: i32) -> (i32, i32) {
    %c0_i32 = arith.constant 0 : i32
    %c0_i32_0 = arith.constant 0 : i32
    %c0_i32_1 = arith.constant 0 : i32
    return %c0_i32, %c0_i32_0 : i32, i32
  }
  func.func @transform_7(%arg0: i32) -> (i32, i32) {
    %c0_i32 = arith.constant 0 : i32
    %c0_i32_0 = arith.constant 0 : i32
    %c0_i32_1 = arith.constant 0 : i32
    return %c0_i32, %c0_i32_0 : i32, i32
  }
  func.func @transform_8(%arg0: i32) -> (i32, i32) {
    %c0_i32 = arith.constant 0 : i32
    %c0_i32_0 = arith.constant 0 : i32
    %c0_i32_1 = arith.constant 0 : i32
    return %c0_i32, %c0_i32_0 : i32, i32
  }
  func.func @transform_9(%arg0: i32) -> (i32, i32) {
    %c0_i32 = arith.constant 0 : i32
    %c0_i32_0 = arith.constant 0 : i32
    %c0_i32_1 = arith.constant 0 : i32
    return %c0_i32, %c0_i32_0 : i32, i32
  }
  func.func @transform_10(%arg0: i32) -> (i32, i32) {
    %c0_i32 = arith.constant 0 : i32
    %c0_i32_0 = arith.constant 0 : i32
    %c0_i32_1 = arith.constant 0 : i32
    return %c0_i32, %c0_i32_0 : i32, i32
  }
  func.func @transform_11(%arg0: i32) -> (i32, i32) {
    %c0_i32 = arith.constant 0 : i32
    %c0_i32_0 = arith.constant 0 : i32
    %c0_i32_1 = arith.constant 0 : i32
    return %c0_i32, %c0_i32_0 : i32, i32
  }
  func.func @transform_12(%arg0: i32) -> (i32, i32) {
    %c0_i32 = arith.constant 0 : i32
    %c0_i32_0 = arith.constant 0 : i32
    %c0_i32_1 = arith.constant 0 : i32
    return %c0_i32, %c0_i32_0 : i32, i32
  }
  func.func @transform_13(%arg0: i32) -> (i32, i32) {
    %c0_i32 = arith.constant 0 : i32
    %c0_i32_0 = arith.constant 0 : i32
    %c0_i32_1 = arith.constant 0 : i32
    return %c0_i32, %c0_i32_0 : i32, i32
  }
  func.func @transform_14(%arg0: i32) -> (i32, i32, i32) {
    %c0_i32 = arith.constant 0 : i32
    %c0_i32_0 = arith.constant 0 : i32
    %c0_i32_1 = arith.constant 0 : i32
    return %arg0, %c0_i32, %c0_i32_0 : i32, i32, i32
  }
}

</mosaic_0001>

<bundles_post_ra>
// kernel: graph_cls_ggnn_forward.1
= control target key start
LH: loop header
LB: loop body
LE: loop exit
PB: predicated region body
PF: predicated region fallthrough
CT: control target
= control target key end

     0   :  { %s5506_s15 = smov 0   ;;  %s8498_s0 = inlined_call_operand.vmem [shape: f32[2,16,128], index: 0, kind: input, shape index: {}]   ;;  %s8499_s1 = inlined_call_operand.vmem [shape: bf16[2,16,32], index: 1, kind: input, shape index: {}]   ;;  %s8500_s2 = inlined_call_operand.vmem [shape: bf16[128,256], index: 2, kind: input, shape index: {}]   ;;  %s8501_s3 = inlined_call_operand.vmem [shape: f32[1,256], index: 3, kind: input, shape index: {}]   ;;  %s8502_s4 = inlined_call_operand.vmem [shape: bf16[256,768], index: 4, kind: input, shape index: {}]   ;;  %s8503_s5 = inlined_call_operand.vmem [shape: f32[1,768], index: 5, kind: input, shape index: {}]   ;;  %s8504_s6 = inlined_call_operand.vmem [shape: bf16[128,256], index: 6, kind: input, shape index: {}]   ;;  %s8505_s7 = inlined_call_operand.vmem [shape: f32[1,256], index: 7, kind: input, shape index: {}]   ;;  %s8506_s8 = inlined_call_operand.vmem [shape: bf16[256,768], index: 8, kind: input, shape index: {}]   ;;  %s8507_s9 = inlined_call_operand.vmem [shape: f32[1,768], index: 9, kind: input, shape index: {}]   ;;  %s8508_s10 = inlined_call_operand.vmem [shape: bf16[128,1], index: 10, kind: input, shape index: {}]   ;;  %s8509_s11 = inlined_call_operand.<no memory space> [shape: f32[1,1], index: 11, kind: input, shape index: {}]   ;;  %s8510_s12 = inlined_call_operand.vmem [shape: bf16[128,128], index: 12, kind: input, shape index: {}]   ;;  %s8511_s13 = inlined_call_operand.vmem [shape: f32[1,128], index: 13, kind: input, shape index: {}]   ;;  %s8512_s14 = inlined_call_operand.vmem [shape: f32[2,8,128], index: 14, kind: output, shape index: {}]  }
   0x1   :  { %v19_v0 = vstv %s8509_s11 }
   0x2   :  { %20 = vst [vmem:[#allocation2] sm:$0x1] %v19_v0 }
   0x3 LB: > { %s4028_s16 = sadd.s32 4294967295, %s5425_s15   ;;  %p4032_p0 = scmp.ge.s32.totalorder %s5425_s15, 1  ;;  %s5425_s15 = sphi %s5506_s15, %s26_s15  }
   0x4   : > { %p424_p1 = scmp.lt.s32.totalorder %s5425_s15, 3 }
   0x6   : > { %p425_p2 = pnand %p4032_p0, %p424_p1 }
   0x8   : > { %428 = sbr.rel (%p425_p2) target bundleno = 3395 (0xd43), region = 76 }
   0xd   : > { %v4096_v1 = vld [vmem:[%s8500_s2 + $0x70] sm:$0xf]  ;;  %v5052_v2 = vld [vmem:[%s8500_s2 + $0x74] sm:$0xf0]  ;;  %v5051_v3 = vld [vmem:[%s8500_s2 + $0x74] sm:$0xf] }
   0xe   : > { %v5523_v4 = vor.u32 %v5052_v2, %v4096_v1  ;;  %v4098_v5 = vld [vmem:[%s8500_s2 + $0x78] sm:$0xf0]  ;;  %v4088_v6 = vld [vmem:[%s8500_s2 + $0x60] sm:$0xf]  ;;  %v5050_v7 = vld [vmem:[%s8500_s2 + $0x64] sm:$0xf0] }
   0xf   : > { %v5534_v8 = vor.u32 %v5051_v3, %v4098_v5  ;;  %v5049_v9 = vld [vmem:[%s8500_s2 + $0x64] sm:$0xf]  ;;  %v4090_v10 = vld [vmem:[%s8500_s2 + $0x68] sm:$0xf0]  ;;  %v5543_v11 = vor.u32 %v5050_v7, %v4088_v6  ;;  %v4080_v13 = vld [vmem:[%s8500_s2 + $0x50] sm:$0xf] }
  0x10   : > { %8809 = vst [vmem:[#allocation3_spill] sm:$0xff] %v5523_v4  ;;  %693 = vmatpush.bf16.msra.mxu0 %v5523_v4  ;;  %v5546_v12 = vor.u32 %v5049_v9, %v4090_v10  ;;  %v5048_v14 = vld [vmem:[%s8500_s2 + $0x54] sm:$0xf0]  ;;  %v5047_v15 = vld [vmem:[%s8500_s2 + $0x54] sm:$0xf]  ;;  %p474_p3 = scmp.lt.s32.totalorder %s4028_s16, 1 }
  0x11   : > { %8810 = vst [vmem:[#allocation4_spill] sm:$0xff] %v5534_v8  ;;  %707 = vmatpush.bf16.msra.mxu1 %v5534_v8  ;;  %v4082_v16 = vld [vmem:[%s8500_s2 + $0x58] sm:$0xf0]  ;;  %v5561_v17 = vor.u32 %v5048_v14, %v4080_v13  ;;  %v4072_v19 = vld [vmem:[%s8500_s2 + $0x40] sm:$0xf]  ;;  %vm728_vm0 = vcmask 261120  }
  0x12   : > { %8811 = vst [vmem:[#allocation5_spill] sm:$0xff] %v5543_v11  ;;  %v5564_v18 = vor.u32 %v5047_v15, %v4082_v16  ;;  %v5046_v20 = vld [vmem:[%s8500_s2 + $0x44] sm:$0xf0]  ;;  %v5045_v21 = vld [vmem:[%s8500_s2 + $0x44] sm:$0xf]  ;;  %s9244_s16 = smov (!%p474_p3, %s4028_s16), 1 }
  0x13   : > { %8812 = vst [vmem:[#allocation6_spill] sm:$0xff] %v5561_v17  ;;  %v4074_v22 = vld [vmem:[%s8500_s2 + $0x48] sm:$0xf0]  ;;  %v5579_v23 = vor.u32 %v5046_v20, %v4072_v19  ;;  %v4064_v25 = vld [vmem:[%s8500_s2 + $0x30] sm:$0xf]  ;;  %s5034_s27 = sshll.u32 %s9244_s16, 4 }
  0x14   : > { %694 = vmatpush.bf16.msra.mxu0 %v5543_v11  ;;  %v5582_v24 = vor.u32 %v5045_v21, %v4074_v22  ;;  %v5044_v26 = vld [vmem:[%s8500_s2 + $0x34] sm:$0xf0]  ;;  %v5043_v27 = vld [vmem:[%s8500_s2 + $0x34] sm:$0xf]  ;;  %v4066_v28 = vld [vmem:[%s8500_s2 + $0x38] sm:$0xf0]  ;;  %s5654_s19 = scalar_lea.vmem %s8498_s0, %s5034_s27 }
  0x15   : > { %708 = vmatpush.bf16.msra.mxu1 %v5546_v12  ;;  %8813 = vst [vmem:[#allocation7_spill] sm:$0xff] %v5579_v23  ;;  %v5599_v29 = vor.u32 %v5044_v26, %v4064_v25  ;;  %v5602_v30 = vor.u32 %v5043_v27, %v4066_v28  ;;  %v4056_v31 = vld [vmem:[%s8500_s2 + $0x20] sm:$0xf]  ;;  %v5042_v32 = vld [vmem:[%s8500_s2 + $0x24] sm:$0xf0]  ;;  %s5035_s26 = sshll.u32 %s9244_s16, 3 }
  0x16   : > { %v5041_v33 = vld [vmem:[%s8500_s2 + $0x24] sm:$0xf]  ;;  %v4058_v34 = vld [vmem:[%s8500_s2 + $0x28] sm:$0xf0]  ;;  %v5621_v35 = vor.u32 %v5042_v32, %v4056_v31  ;;  %v4048_v37 = vld [vmem:[%s8500_s2 + $0x10] sm:$0xf]  ;;  %s5833_s25 = scalar_lea.vmem %s8499_s1, %s5035_s26  ;;  %s487_s24 = scalar_lea.vmem %s8512_s14, %s5035_s26 }
  0x17   : > { %8814 = vst [vmem:[#allocation8_spill] sm:$0xff] %v5599_v29  ;;  %v5624_v36 = vor.u32 %v5041_v33, %v4058_v34  ;;  %v5040_v38 = vld [vmem:[%s8500_s2 + $0x14] sm:$0xf0]  ;;  %v5039_v39 = vld [vmem:[%s8500_s2 + $0x14] sm:$0xf]  ;;  %v489_v48 = vld [vmem:[%s5654_s19] sm:$0xff] }
  0x18   : > { %695 = vmatpush.bf16.msra.mxu0 %v5561_v17  ;;  %8815 = vst [vmem:[#allocation9_spill] sm:$0xff] %v5621_v35  ;;  %v4050_v40 = vld [vmem:[%s8500_s2 + $0x18] sm:$0xf0]  ;;  %v5640_v41 = vor.u32 %v5040_v38, %v4048_v37  ;;  %v4040_v43 = vld [vmem:[%s8500_s2] sm:$0xf]  ;;  %v490_v49 = vld [vmem:[%s5654_s19 + $0x8] sm:$0xff] }
  0x19   : > { %709 = vmatpush.bf16.msra.mxu1 %v5564_v18  ;;  %v5643_v42 = vor.u32 %v5039_v39, %v4050_v40  ;;  %v5038_v44 = vld [vmem:[%s8500_s2 + $0x4] sm:$0xf0]  ;;  %v5037_v45 = vld [vmem:[%s8500_s2 + $0x4] sm:$0xf]  ;;  %v4042_v46 = vld [vmem:[%s8500_s2 + $0x8] sm:$0xf0]  ;;  %v5670_v51 = vpack.c.bf16 %v490_v49, %v489_v48 }
  0x1a   : > { %8816 = vst [vmem:[#allocation10_spill] sm:$0xff] %v5640_v41  ;;  %v5663_v47 = vor.u32 %v5038_v44, %v4040_v43  ;;  %v5668_v50 = vor.u32 %v5037_v45, %v4042_v46  ;;  %v4277_v52 = vld [vmem:[%s8502_s4 + $0x150] sm:$0xf]  ;;  %v5098_v53 = vld [vmem:[%s8502_s4 + $0x164] sm:$0xf0] }
  0x1b   : > { %v5095_v54 = vld [vmem:[%s8502_s4 + $0x154] sm:$0xf]  ;;  %v5685_v55 = vor.u32 %v5098_v53, %v4277_v52  ;;  %v4279_v56 = vld [vmem:[%s8502_s4 + $0x168] sm:$0xf0]  ;;  %v4253_v60 = vld [vmem:[%s8502_s4 + $0x120] sm:$0xf] }
  0x1c   : > { %696 = vmatpush.bf16.msra.mxu0 %v5579_v23  ;;  %8817 = vst [vmem:[#allocation11_spill] sm:$0xff] %v5663_v47  ;;  %v5690_v57 = vor.u32 %v5095_v54, %v4279_v56  ;;  %v5143_v58 = vld [vmem:[%s8502_s4 + $0x2d4] sm:$0xf]  ;;  %v4471_v59 = vld [vmem:[%s8502_s4 + $0x2e8] sm:$0xf0] }
  0x1d   : > { %710 = vmatpush.bf16.msra.mxu1 %v5582_v24  ;;  %1240 = vmatpush.bf16.msra.mxu3 %v5685_v55  ;;  %v5703_v61 = vor.u32 %v5143_v58, %v4471_v59  ;;  %v5092_v62 = vld [vmem:[%s8502_s4 + $0x134] sm:$0xf0]  ;;  %v5089_v63 = vld [vmem:[%s8502_s4 + $0x124] sm:$0xf]  ;;  %v4255_v0 = vld [vmem:[%s8502_s4 + $0x138] sm:$0xf0] }
  0x1e   : > { %8818 = vst [vmem:[#allocation12_spill] sm:$0xff] %v5690_v57  ;;  %v5714_v1 = vor.u32 %v5092_v62, %v4253_v60  ;;  %v5716_v2 = vor.u32 %v5089_v63, %v4255_v0  ;;  %v5137_v3 = vld [vmem:[%s8502_s4 + $0x2a4] sm:$0xf]  ;;  %v4447_v5 = vld [vmem:[%s8502_s4 + $0x2b8] sm:$0xf0] }
  0x1f   : > { %v4229_v6 = vld [vmem:[%s8502_s4 + $0xf0] sm:$0xf]  ;;  %v5730_v9 = vor.u32 %v5137_v3, %v4447_v5  ;;  %v5086_v10 = vld [vmem:[%s8502_s4 + $0x104] sm:$0xf0]  ;;  %v5083_v13 = vld [vmem:[%s8502_s4 + $0xf4] sm:$0xf] }
  0x20   : > { %697 = vmatpush.bf16.msra.mxu0 %v5599_v29  ;;  %8819 = vst [vmem:[#allocation13_spill] sm:$0xff] %v5716_v2  ;;  %v4231_v14 = vld [vmem:[%s8502_s4 + $0x108] sm:$0xf0]  ;;  %v5741_v16 = vor.u32 %v5086_v10, %v4229_v6  ;;  %v509_v20 = vld [vmem:[%s8501_s3] sm:$0x3] }
  0x21   : > { %711 = vmatpush.bf16.msra.mxu1 %v5602_v30  ;;  %1241 = vmatpush.bf16.msra.mxu3 %v5714_v1  ;;  %v5743_v19 = vor.u32 %v5083_v13, %v4231_v14  ;;  %v5131_v21 = vld [vmem:[%s8502_s4 + $0x274] sm:$0xf]  ;;  %v4423_v22 = vld [vmem:[%s8502_s4 + $0x288] sm:$0xf0]  ;;  %v4205_v25 = vld [vmem:[%s8502_s4 + $0xc0] sm:$0xf] }
  0x22   : > { %v5760_v26 = vor.u32 %v5131_v21, %v4423_v22  ;;  %v5080_v27 = vld [vmem:[%s8502_s4 + $0xd4] sm:$0xf0]  ;;  %v5077_v28 = vld [vmem:[%s8502_s4 + $0xc4] sm:$0xf]  ;;  %v4207_v31 = vld [vmem:[%s8502_s4 + $0xd8] sm:$0xf0] }
  0x23   : > { %8820 = vst [vmem:[#allocation14_spill] sm:$0xff] %v5743_v19  ;;  %v5771_v32 = vor.u32 %v5080_v27, %v4205_v25  ;;  %v5773_v33 = vor.u32 %v5077_v28, %v4207_v31  ;;  %v5775_v34 = vperm.slane %v509_v20, 1  ;;  %v5125_v37 = vld [vmem:[%s8502_s4 + $0x244] sm:$0xf]  ;;  %v4399_v38 = vld [vmem:[%s8502_s4 + $0x258] sm:$0xf0] }
  0x24   : > { %698 = vmatpush.bf16.msra.mxu0 %v5621_v35  ;;  %v4181_v39 = vld [vmem:[%s8502_s4 + $0x90] sm:$0xf]  ;;  %v5789_v40 = vor.u32 %v5125_v37, %v4399_v38  ;;  %v5074_v43 = vld [vmem:[%s8502_s4 + $0xa4] sm:$0xf0]  ;;  %v5071_v44 = vld [vmem:[%s8502_s4 + $0x94] sm:$0xf] }
  0x25   : > { %712 = vmatpush.bf16.msra.mxu1 %v5624_v36  ;;  %1242 = vmatpush.bf16.msra.mxu3 %v5741_v16  ;;  %8821 = vst [vmem:[#allocation15_spill] sm:$0xff] %v5773_v33  ;;  %v4183_v45 = vld [vmem:[%s8502_s4 + $0xa8] sm:$0xf0]  ;;  %v5801_v49 = vor.u32 %v5074_v43, %v4181_v39  ;;  %v5805_v53 = vperm.slane %v509_v20, 0  ;;  %v4469_v58 = vld [vmem:[%s8502_s4 + $0x2d0] sm:$0xf] }
  0x26   : > { %8822 = vst [vmem:[#allocation16_spill] sm:$0xff] %v5775_v34  ;;  %v5803_v52 = vor.u32 %v5071_v44, %v4183_v45  ;;  %v5146_v59 = vld [vmem:[%s8502_s4 + $0x2e4] sm:$0xf0]  ;;  %v5119_v60 = vld [vmem:[%s8502_s4 + $0x214] sm:$0xf]  ;;  %v5036_v21 = vld [vmem:[%s5833_s25] sm:$0xff] }
  0x27   : > { %8824 = vst [vmem:[#allocation18_spill] sm:$0xff] %v5805_v53  ;;  %v4375_v62 = vld [vmem:[%s8502_s4 + $0x228] sm:$0xf0]  ;;  %v4157_v63 = vld [vmem:[%s8502_s4 + $0x60] sm:$0xf]  ;;  %v5853_v22 = vor.u32 %v5146_v59, %v4469_v58 }
  0x28   : > { %699 = vmatpush.bf16.msra.mxu0 %v5640_v41  ;;  %8823 = vst [vmem:[#allocation17_spill] sm:$0xff] %v5803_v52  ;;  %v5835_v5 = vor.u32 %v5119_v60, %v4375_v62  ;;  %v5068_v6 = vld [vmem:[%s8502_s4 + $0x74] sm:$0xf0]  ;;  %v5065_v10 = vld [vmem:[%s8502_s4 + $0x64] sm:$0xf] }
  0x29   : > { %713 = vmatpush.bf16.msra.mxu1 %v5643_v42  ;;  %1243 = vmatpush.bf16.msra.mxu3 %v5771_v32  ;;  %v4159_v13 = vld [vmem:[%s8502_s4 + $0x78] sm:$0xf0]  ;;  %v5846_v14 = vor.u32 %v5068_v6, %v4157_v63  ;;  %8826 = vst [vmem:[#allocation20_spill] sm:$0xff] %v5853_v22  ;;  %v4445_v25 = vld [vmem:[%s8502_s4 + $0x2a0] sm:$0xf] }
  0x2a   : > { %v5113_v27 = vld [vmem:[%s8502_s4 + $0x1e4] sm:$0xf]  ;;  %v5140_v31 = vld [vmem:[%s8502_s4 + $0x2b4] sm:$0xf0]  ;;  %v4133_v38 = vld [vmem:[%s8502_s4 + $0x30] sm:$0xf] }
  0x2b   : > { %v5062_v39 = vld [vmem:[%s8502_s4 + $0x44] sm:$0xf0]  ;;  %v5059_v44 = vld [vmem:[%s8502_s4 + $0x34] sm:$0xf]  ;;  %v4135_v45 = vld [vmem:[%s8502_s4 + $0x48] sm:$0xf0] }
  0x2c   : > { %700 = vmatpush.bf16.msra.mxu0 %v5663_v47  ;;  %v5877_v43 = vor.u32 %v5062_v39, %v4133_v38  ;;  %v4421_v58 = vld [vmem:[%s8502_s4 + $0x270] sm:$0xf]  ;;  %v5134_v59 = vld [vmem:[%s8502_s4 + $0x284] sm:$0xf0]  ;;  %v4109_v62 = vld [vmem:[%s8502_s4] sm:$0xf] }
  0x2d   : > { %714 = vmatpush.bf16.msra.mxu1 %v5668_v50  ;;  %1244 = vmatpush.bf16.msra.mxu3 %v5801_v49  ;;  %v5056_v63 = vld [vmem:[%s8502_s4 + $0x14] sm:$0xf0]  ;;  %v4111_v6 = vld [vmem:[%s8502_s4 + $0x18] sm:$0xf0] }
  0x2e   : > { %v5128_v38 = vld [vmem:[%s8502_s4 + $0x254] sm:$0xf0] }
  0x2f   : > { %701 = vmatmul.bf16.vlgmr.msra.gmra.mxu0 %v5670_v51 }
  0x30   : > { %715 = vmatmul.bf16.vlgmr.msra.gmra.mxu1 %v5670_v51  ;;  %1268 = vmatpush.bf16.msrb.mxu0 %v5690_v57 }
  0x31   : > { %1282 = vmatpush.bf16.msrb.mxu1 %v5703_v61  ;;  %1245 = vmatpush.bf16.msra.mxu3 %v5846_v14 }
  0x34   : > { %1269 = vmatpush.bf16.msrb.mxu0 %v5716_v2  ;;  %v4333_v2 = vld [vmem:[%s8502_s4 + $0x1b8] sm:$0xf] }
  0x35   : > { %1283 = vmatpush.bf16.msrb.mxu1 %v5730_v9  ;;  %1246 = vmatpush.bf16.msra.mxu3 %v5877_v43 }
  0x38   : > { %1270 = vmatpush.bf16.msrb.mxu0 %v5743_v19  ;;  %v4357_v19 = vld [vmem:[%s8502_s4 + $0x1e8] sm:$0xf] }
  0x39   : > { %1284 = vmatpush.bf16.msrb.mxu1 %v5760_v26 }
  0x3c   : > { %1271 = vmatpush.bf16.msrb.mxu0 %v5773_v33 }
  0x3d   : > { %1285 = vmatpush.bf16.msrb.mxu1 %v5789_v40 }
  0x40   : > { %1272 = vmatpush.bf16.msrb.mxu0 %v5803_v52 }
  0x41   : > { %1286 = vmatpush.bf16.msrb.mxu1 %v5835_v5 }
  0xac   : > { %v702_v7 = vpop.f32.mrf.mxu0 }
  0xad   : > { %v716_v15 = vpop.f32.mrf.mxu1  ;;  %v703_v20 = vadd.f32 %v702_v7, %v5805_v53  ;;  %v4351_v7 = vld [vmem:[%s8502_s4 + $0x1f8] sm:$0xf0] }
  0xae   : > { %v717_v54 = vadd.f32 %v716_v15, %v5775_v34  ;;  %v5848_v15 = vor.u32 %v5065_v10, %v4159_v13  ;;  %v5869_v37 = vor.u32 %v5113_v27, %v4351_v7  ;;  %v4285_v10 = vld [vmem:[%s8502_s4 + $0x158] sm:$0xf]  ;;  %v5099_v13 = vld [vmem:[%s8502_s4 + $0x16c] sm:$0xf0]  ;;  %v4287_v27 = vld [vmem:[%s8502_s4 + $0x170] sm:$0xf0] }
  0xaf   : > { %v5101_v7 = vld [vmem:[%s8502_s4 + $0x184] sm:$0xf] }
  0xb0   : > { %8825 = vst [vmem:[#allocation19_spill] sm:$0xff] %v5848_v15  ;;  %1273 = vmatpush.bf16.msrb.mxu0 %v5848_v15  ;;  %1287 = vmatpush.bf16.msrb.mxu1 %v5869_v37 }
  0xb4   : > { %v704_v46 = vpop.f32.mrf.mxu0 }
  0xb5   : > { %v718_v48 = vpop.f32.mrf.mxu1  ;;  %v705_v0 = vadd.f32 %v704_v46, %v5805_v53  ;;  %v5107_v46 = vld [vmem:[%s8502_s4 + $0x1b4] sm:$0xf]  ;;  %v4165_v53 = vld [vmem:[%s8502_s4 + $0x68] sm:$0xf] }
  0xb6   : > { %v719_v56 = vadd.f32 %v718_v48, %v5775_v34  ;;  %v5889_v48 = vor.u32 %v5059_v44, %v4135_v45  ;;  %v4303_v44 = vld [vmem:[%s8502_s4 + $0x198] sm:$0xf0]  ;;  %v5069_v34 = vld [vmem:[%s8502_s4 + $0x7c] sm:$0xf0] }
  0xb7   : > { %v721_v28 = vpack.c.bf16 %v705_v0, %v703_v20  ;;  %v5053_v0 = vld [vmem:[%s8502_s4 + $0x4] sm:$0xf]  ;;  %v5959_v45 = vor.u32 %v5101_v7, %v4303_v44  ;;  %v5138_v7 = vld [vmem:[%s8502_s4 + $0x2ac] sm:$0xf] }
  0xb8   : > { %v722_v3 = vpack.c.bf16 %v719_v56, %v717_v54  ;;  %8827 = vst [vmem:[#allocation21_spill] sm:$0xff] %v5889_v48  ;;  %v4327_v54 = vld [vmem:[%s8502_s4 + $0x1c8] sm:$0xf0]  ;;  %v5895_v56 = vor.u32 %v5140_v31, %v4445_v25  ;;  %1274 = vmatpush.bf16.msrb.mxu0 %v5889_v48  ;;  %v5929_v20 = vor.u32 %v5053_v0, %v4111_v6  ;;  %v4397_v31 = vld [vmem:[%s8502_s4 + $0x240] sm:$0xf] }
  0xb9   : > { %v5904_v60 = vor.u32 %v5107_v46, %v4327_v54  ;;  %v5931_v25 = vor.u32 %v5099_v13, %v4285_v10  ;;  %8832 = vst [vmem:[#allocation26_spill] sm:$0xff] %v5959_v45  ;;  %v5144_v46 = vld [vmem:[%s8502_s4 + $0x2dc] sm:$0xf]  ;;  %v4479_v54 = vld [vmem:[%s8502_s4 + $0x2f0] sm:$0xf0]  ;;  %v5988_v13 = vor.u32 %v5128_v38, %v4397_v31 }
  0xba   : > { %738 = vmatpush.bf16.msra.mxu2 %v722_v3  ;;  %8828 = vst [vmem:[#allocation22_spill] sm:$0xff] %v5895_v56  ;;  %v5917_v3 = vor.u32 %v5056_v63, %v4109_v62  ;;  %v5093_v62 = vld [vmem:[%s8502_s4 + $0x13c] sm:$0xf0]  ;;  %v5090_v63 = vld [vmem:[%s8502_s4 + $0x12c] sm:$0xf] }
  0xbb   : > { %1288 = vmatpush.bf16.msrb.mxu1 %v5904_v60  ;;  %8829 = vst [vmem:[#allocation23_spill] sm:$0xff] %v5929_v20  ;;  %v4263_v0 = vld [vmem:[%s8502_s4 + $0x140] sm:$0xf0]  ;;  %v4237_v38 = vld [vmem:[%s8502_s4 + $0xf8] sm:$0xf] }
  0xbc   : > { %1247 = vmatpush.bf16.msra.mxu3 %v5917_v3  ;;  %1275 = vmatpush.bf16.msrb.mxu0 %v5929_v20  ;;  %v5985_v10 = vor.u32 %v5090_v63, %v4263_v0  ;;  %8835 = vst [vmem:[#allocation29_spill] sm:$0xff] %v5988_v13  ;;  %v4455_v31 = vld [vmem:[%s8502_s4 + $0x2c0] sm:$0xf0]  ;;  %v4191_v48 = vld [vmem:[%s8502_s4 + $0xb0] sm:$0xf0] }
  0xbd   : > { %v6008_v44 = vor.u32 %v5138_v7, %v4455_v31  ;;  %v4349_v7 = vld [vmem:[%s8502_s4 + $0x1e0] sm:$0xf]  ;;  %v5116_v31 = vld [vmem:[%s8502_s4 + $0x1f4] sm:$0xf0] }
  0xbe   : > { %739 = vmatpush.bf16.msra.mxu2 %v721_v28  ;;  %v5943_v28 = vor.u32 %v5134_v59, %v4421_v58  ;;  %v4261_v58 = vld [vmem:[%s8502_s4 + $0x128] sm:$0xf]  ;;  %v5971_v59 = vor.u32 %v5144_v46, %v4479_v54  ;;  %8834 = vst [vmem:[#allocation28_spill] sm:$0xff] %v5985_v10  ;;  %v5087_v46 = vld [vmem:[%s8502_s4 + $0x10c] sm:$0xf0] }
  0xbf   : > { %1289 = vmatpush.bf16.msrb.mxu1 %v5959_v45  ;;  %v5983_v6 = vor.u32 %v5093_v62, %v4261_v58  ;;  %8836 = vst [vmem:[#allocation30_spill] sm:$0xff] %v6008_v44  ;;  %v5084_v54 = vld [vmem:[%s8502_s4 + $0xfc] sm:$0xf]  ;;  %v4239_v58 = vld [vmem:[%s8502_s4 + $0x110] sm:$0xf0]  ;;  %v6020_v62 = vor.u32 %v5087_v46, %v4237_v38 }
  0xc0   : > { %8830 = vst [vmem:[#allocation24_spill] sm:$0xff] %v5943_v28  ;;  %1296 = vmatpush.bf16.msrb.mxu3 %v5931_v25  ;;  %v6022_v63 = vor.u32 %v5084_v54, %v4239_v58  ;;  %v5132_v38 = vld [vmem:[%s8502_s4 + $0x27c] sm:$0xf]  ;;  %v5081_v54 = vld [vmem:[%s8502_s4 + $0xdc] sm:$0xf0] }
  0xc1   : > { %4106 = vmatmul.msk.bf16.vlgmr.msra.gmra.mxu2 %vm728_vm0, %v5036_v21  ;;  %v5096_v21 = vld [vmem:[%s8502_s4 + $0x15c] sm:$0xf]  ;;  %8833 = vst [vmem:[#allocation27_spill] sm:$0xff] %v5971_v59  ;;  %v5078_v58 = vld [vmem:[%s8502_s4 + $0xcc] sm:$0xf] }
  0xc2   : > { %1254 = vmatpush.bf16.msrb.mxu2 %v5853_v22  ;;  %v5952_v39 = vor.u32 %v5096_v21, %v4287_v27  ;;  %v4373_v21 = vld [vmem:[%s8502_s4 + $0x210] sm:$0xf]  ;;  %v5122_v27 = vld [vmem:[%s8502_s4 + $0x224] sm:$0xf0]  ;;  %1290 = vmatmul.bf16.vlgmr.msrb.gmra.mxu1 %v5670_v51  ;;  %8837 = vst [vmem:[#allocation31_spill] sm:$0xff] %v6022_v63 }
  0xc3   : > { %1338 = vmatpush.bf16.msra.mxu1 %v5971_v59  ;;  %v6025_v0 = vor.u32 %v5122_v27, %v4373_v21  ;;  %v4431_v21 = vld [vmem:[%s8502_s4 + $0x290] sm:$0xf0]  ;;  %v4213_v27 = vld [vmem:[%s8502_s4 + $0xc8] sm:$0xf] }
  0xc4   : > { %8831 = vst [vmem:[#allocation25_spill] sm:$0xff] %v5952_v39  ;;  %1324 = vmatpush.bf16.msra.mxu0 %v5952_v39  ;;  %1297 = vmatpush.bf16.msrb.mxu3 %v5983_v6  ;;  %v6045_v46 = vor.u32 %v5132_v38, %v4431_v21  ;;  %v6056_v39 = vor.u32 %v5081_v54, %v4213_v27  ;;  %v4325_v21 = vld [vmem:[%s8502_s4 + $0x1b0] sm:$0xf] }
  0xc5   : > { %8838 = vst [vmem:[#allocation32_spill] sm:$0xff] %v6025_v0  ;;  %v6061_v38 = vor.u32 %v5116_v31, %v4349_v7  ;;  %v4407_v7 = vld [vmem:[%s8502_s4 + $0x260] sm:$0xf0]  ;;  %v4189_v31 = vld [vmem:[%s8502_s4 + $0x98] sm:$0xf] }
  0xc6   : > { %1255 = vmatpush.bf16.msrb.mxu2 %v5895_v56  ;;  %8839 = vst [vmem:[#allocation33_spill] sm:$0xff] %v6045_v46  ;;  %v5075_v54 = vld [vmem:[%s8502_s4 + $0xac] sm:$0xf0] }
  0xc7   : > { %1339 = vmatpush.bf16.msra.mxu1 %v6008_v44  ;;  %8841 = vst [vmem:[#allocation35_spill] sm:$0xff] %v6061_v38  ;;  %v6092_v15 = vor.u32 %v5075_v54, %v4189_v31  ;;  %v4453_v54 = vld [vmem:[%s8502_s4 + $0x2a8] sm:$0xf] }
  0xc8   : > { %1325 = vmatpush.bf16.msra.mxu0 %v5985_v10  ;;  %1298 = vmatpush.bf16.msrb.mxu3 %v6020_v62  ;;  %v4215_v10 = vld [vmem:[%s8502_s4 + $0xe0] sm:$0xf0] }
  0xc9   : > { %v6058_v20 = vor.u32 %v5078_v58, %v4215_v10  ;;  %v5126_v10 = vld [vmem:[%s8502_s4 + $0x24c] sm:$0xf]  ;;  %v5072_v58 = vld [vmem:[%s8502_s4 + $0x9c] sm:$0xf] }
  0xca   : > { %1256 = vmatpush.bf16.msrb.mxu2 %v5943_v28  ;;  %v6081_v27 = vor.u32 %v5126_v10, %v4407_v7  ;;  %v6094_v52 = vor.u32 %v5072_v58, %v4191_v48  ;;  %v4301_v7 = vld [vmem:[%s8502_s4 + $0x180] sm:$0xf]  ;;  %v4477_v48 = vld [vmem:[%s8502_s4 + $0x2d8] sm:$0xf] }
  0xcb   : > { %8840 = vst [vmem:[#allocation34_spill] sm:$0xff] %v6058_v20  ;;  %1340 = vmatpush.bf16.msra.mxu1 %v6045_v46  ;;  %v5141_v58 = vld [vmem:[%s8502_s4 + $0x2bc] sm:$0xf0] }
  0xcc   : > { %1326 = vmatpush.bf16.msra.mxu0 %v6022_v63  ;;  %v5110_v63 = vld [vmem:[%s8502_s4 + $0x1c4] sm:$0xf0]  ;;  %1299 = vmatpush.bf16.msrb.mxu3 %v6056_v39  ;;  %8842 = vst [vmem:[#allocation36_spill] sm:$0xff] %v6081_v27  ;;  %v6127_v33 = vor.u32 %v5141_v58, %v4453_v54  ;;  %v5129_v54 = vld [vmem:[%s8502_s4 + $0x25c] sm:$0xf0] }
  0xcd   : > { %8843 = vst [vmem:[#allocation37_spill] sm:$0xff] %v6094_v52  ;;  %v6097_v10 = vor.u32 %v5110_v63, %v4325_v21  ;;  %v5147_v63 = vld [vmem:[%s8502_s4 + $0x2ec] sm:$0xf0] }
  0xce   : > { %1257 = vmatpush.bf16.msrb.mxu2 %v5988_v13  ;;  %v6117_v31 = vor.u32 %v5147_v63, %v4477_v48  ;;  %8847 = vst [vmem:[#allocation41_spill] sm:$0xff] %v6127_v33  ;;  %v4405_v63 = vld [vmem:[%s8502_s4 + $0x248] sm:$0xf] }
  0xcf   : > { %8844 = vst [vmem:[#allocation38_spill] sm:$0xff] %v6097_v10  ;;  %1341 = vmatpush.bf16.msra.mxu1 %v6081_v27  ;;  %v6146_v58 = vor.u32 %v5129_v54, %v4405_v63  ;;  %v5117_v63 = vld [vmem:[%s8502_s4 + $0x1fc] sm:$0xf0] }
  0xd0   : > { %1327 = vmatpush.bf16.msra.mxu0 %v6058_v20  ;;  %v5104_v20 = vld [vmem:[%s8502_s4 + $0x194] sm:$0xf0]  ;;  %1300 = vmatpush.bf16.msrb.mxu3 %v6092_v15  ;;  %8846 = vst [vmem:[#allocation40_spill] sm:$0xff] %v6117_v31  ;;  %v6164_v54 = vor.u32 %v5117_v63, %v4357_v19  ;;  %v4383_v19 = vld [vmem:[%s8502_s4 + $0x230] sm:$0xf0] }
  0xd1   : > { %v6115_v21 = vor.u32 %v5104_v20, %v4301_v7  ;;  %v4429_v20 = vld [vmem:[%s8502_s4 + $0x278] sm:$0xf]  ;;  %v5135_v7 = vld [vmem:[%s8502_s4 + $0x28c] sm:$0xf0]  ;;  %8849 = vst [vmem:[#allocation43_spill] sm:$0xff] %v6146_v58 }
  0xd2   : > { %1258 = vmatpush.bf16.msrb.mxu2 %v6025_v0  ;;  %v6137_v48 = vor.u32 %v5135_v7, %v4429_v20  ;;  %v5123_v20 = vld [vmem:[%s8502_s4 + $0x22c] sm:$0xf0]  ;;  %8851 = vst [vmem:[#allocation45_spill] sm:$0xff] %v6164_v54 }
  0xd3   : > { %8845 = vst [vmem:[#allocation39_spill] sm:$0xff] %v6115_v21 }
  0xd4   : > { %1328 = vmatpush.bf16.msra.mxu0 %v6094_v52  ;;  %8848 = vst [vmem:[#allocation42_spill] sm:$0xff] %v6137_v48  ;;  %v4381_v52 = vld [vmem:[%s8502_s4 + $0x218] sm:$0xf] }
  0xd5   : > { %v6155_v7 = vor.u32 %v5123_v20, %v4381_v52  ;;  %v5111_v52 = vld [vmem:[%s8502_s4 + $0x1cc] sm:$0xf0]  ;;  %v5120_v20 = vld [vmem:[%s8502_s4 + $0x21c] sm:$0xf] }
  0xd6   : > { %1259 = vmatpush.bf16.msrb.mxu2 %v6061_v38  ;;  %v6176_v57 = vor.u32 %v5111_v52, %v4333_v2  ;;  %v6181_v63 = vor.u32 %v5120_v20, %v4383_v19  ;;  %v6193_v2 = vor.u32 %v5069_v34, %v4165_v53  ;;  %v4167_v52 = vld [vmem:[%s8502_s4 + $0x80] sm:$0xf0]  ;;  %v4309_v20 = vld [vmem:[%s8502_s4 + $0x188] sm:$0xf]  ;;  %v5105_v19 = vld [vmem:[%s8502_s4 + $0x19c] sm:$0xf0] }
  0xd7   : > { %8850 = vst [vmem:[#allocation44_spill] sm:$0xff] %v6155_v7  ;;  %v5114_v34 = vld [vmem:[%s8502_s4 + $0x1ec] sm:$0xf]  ;;  %v4359_v53 = vld [vmem:[%s8502_s4 + $0x200] sm:$0xf0] }
  0xd8   : > { %8852 = vst [vmem:[#allocation46_spill] sm:$0xff] %v6176_v57  ;;  %1342 = vmatpush.bf16.msra.mxu1 %v6181_v63  ;;  %1301 = vmatpush.bf16.msrb.mxu3 %v6193_v2  ;;  %v5091_v38 = vld [vmem:[%s8502_s4 + $0x134] sm:$0xf] }
  0xd9   : > { %8853 = vst [vmem:[#allocation47_spill] sm:$0xff] %v6181_v63 }
  0xda   : > { %1260 = vmatpush.bf16.msrb.mxu2 %v6097_v10  ;;  %v4269_v10 = vld [vmem:[%s8502_s4 + $0x130] sm:$0xf] }
  0xde   : > { %1261 = vmatpush.bf16.msrb.mxu2 %v6115_v21  ;;  %v4487_v21 = vld [vmem:[%s8502_s4 + $0x2f8] sm:$0xf0] }
  0xe1   : > { %1262 = vmatmul.bf16.vlgmr.msrb.gmra.mxu2 %v5670_v51 }
  0xe2   : > { %1310 = vmatpush.bf16.msra.mxu2 %v6117_v31 }
  0xe6   : > { %1311 = vmatpush.bf16.msra.mxu2 %v6127_v33 }
  0xea   : > { %1312 = vmatpush.bf16.msra.mxu2 %v6137_v48  ;;  %v6219_v48 = vor.u32 %v5114_v34, %v4359_v53  ;;  %v5060_v34 = vld [vmem:[%s8502_s4 + $0x3c] sm:$0xf]  ;;  %v4143_v53 = vld [vmem:[%s8502_s4 + $0x50] sm:$0xf0] }
  0xeb   : > { %v6242_v31 = vor.u32 %v5060_v34, %v4143_v53  ;;  %v5142_v34 = vld [vmem:[%s8502_s4 + $0x2c4] sm:$0xf0] }
  0xec   : > { %8856 = vst [vmem:[#allocation50_spill] sm:$0xff] %v6219_v48  ;;  %1343 = vmatpush.bf16.msra.mxu1 %v6219_v48  ;;  %v5094_v48 = vld [vmem:[%s8502_s4 + $0x144] sm:$0xf0] }
  0xed   : > { %8858 = vst [vmem:[#allocation52_spill] sm:$0xff] %v6242_v31 }
  0xee   : > { %1313 = vmatpush.bf16.msra.mxu2 %v6146_v58  ;;  %v6207_v58 = vor.u32 %v5105_v19, %v4309_v20  ;;  %v5063_v20 = vld [vmem:[%s8502_s4 + $0x4c] sm:$0xf0] }
  0xf0   : > { %8855 = vst [vmem:[#allocation49_spill] sm:$0xff] %v6207_v58 }
  0xf2   : > { %1314 = vmatpush.bf16.msra.mxu2 %v6155_v7 }
  0xf6   : > { %1315 = vmatpush.bf16.msra.mxu2 %v6164_v54  ;;  %v5066_v54 = vld [vmem:[%s8502_s4 + $0x6c] sm:$0xf] }
  0xf7   : > { %v6205_v7 = vor.u32 %v5066_v54, %v4167_v52  ;;  %v5148_v54 = vld [vmem:[%s8502_s4 + $0x2f4] sm:$0xf0] }
  0xf8   : > { %v4141_v52 = vld [vmem:[%s8502_s4 + $0x38] sm:$0xf] }
  0xf9   : > { %8854 = vst [vmem:[#allocation48_spill] sm:$0xff] %v6205_v7  ;;  %1329 = vmatpush.bf16.msra.mxu0 %v6205_v7  ;;  %v6233_v33 = vor.u32 %v5063_v20, %v4141_v52  ;;  %v4461_v20 = vld [vmem:[%s8502_s4 + $0x2b0] sm:$0xf]  ;;  %v4117_v7 = vld [vmem:[%s8502_s4 + $0x8] sm:$0xf] }
  0xfa   : > { %1316 = vmatpush.bf16.msra.mxu2 %v6176_v57  ;;  %v4485_v57 = vld [vmem:[%s8502_s4 + $0x2e0] sm:$0xf]  ;;  %v6262_v53 = vor.u32 %v5142_v34, %v4461_v20  ;;  %v4119_v20 = vld [vmem:[%s8502_s4 + $0x20] sm:$0xf0] }
  0xfb   : > { %v6231_v19 = vor.u32 %v5148_v54, %v4485_v57  ;;  %v5108_v57 = vld [vmem:[%s8502_s4 + $0x1bc] sm:$0xf]  ;;  %v4335_v54 = vld [vmem:[%s8502_s4 + $0x1d0] sm:$0xf0]  ;;  %1302 = vmatpush.bf16.msrb.mxu3 %v6233_v33 }
  0xfc   : > { %v6253_v52 = vor.u32 %v5108_v57, %v4335_v54  ;;  %8860 = vst [vmem:[#allocation54_spill] sm:$0xff] %v6262_v53  ;;  %v5057_v57 = vld [vmem:[%s8502_s4 + $0x1c] sm:$0xf0]  ;;  %v5054_v54 = vld [vmem:[%s8502_s4 + $0xc] sm:$0xf] }
  0xfd   : > { %8857 = vst [vmem:[#allocation51_spill] sm:$0xff] %v6231_v19  ;;  %1330 = vmatpush.bf16.msra.mxu0 %v6242_v31  ;;  %v6281_v34 = vor.u32 %v5054_v54, %v4119_v20  ;;  %v5102_v31 = vld [vmem:[%s8502_s4 + $0x18c] sm:$0xf] }
  0xfe   : > { %1317 = vmatpush.bf16.msra.mxu2 %v6207_v58  ;;  %8859 = vst [vmem:[#allocation53_spill] sm:$0xff] %v6253_v52  ;;  %1344 = vmatpush.bf16.msra.mxu1 %v6253_v52  ;;  %v5145_v58 = vld [vmem:[%s8502_s4 + $0x2e4] sm:$0xf] }
  0xff   : > { %8861 = vst [vmem:[#allocation55_spill] sm:$0xff] %v6281_v34  ;;  %v6307_v52 = vor.u32 %v5145_v58, %v4487_v21  ;;  %v4463_v58 = vld [vmem:[%s8502_s4 + $0x2c8] sm:$0xf0] }
 0x101   : > { %1318 = vmatmul.bf16.vlgmr.msra.gmra.mxu2 %v5670_v51  ;;  %1331 = vmatpush.bf16.msra.mxu0 %v6281_v34  ;;  %8864 = vst [vmem:[#allocation58_spill] sm:$0xff] %v6307_v52  ;;  %v4389_v34 = vld [vmem:[%s8502_s4 + $0x220] sm:$0xf] }
 0x102   : > { %1366 = vmatpush.bf16.msrb.mxu2 %v6231_v19  ;;  %v6274_v19 = vor.u32 %v5057_v57, %v4117_v7  ;;  %v4311_v7 = vld [vmem:[%s8502_s4 + $0x1a0] sm:$0xf0]  ;;  %v4437_v57 = vld [vmem:[%s8502_s4 + $0x280] sm:$0xf] }
 0x103   : > { %v6297_v54 = vor.u32 %v5102_v31, %v4311_v7  ;;  %v4413_v31 = vld [vmem:[%s8502_s4 + $0x250] sm:$0xf]  ;;  %v5139_v7 = vld [vmem:[%s8502_s4 + $0x2b4] sm:$0xf] }
 0x104   : > { %1303 = vmatpush.bf16.msrb.mxu3 %v6274_v19 }
 0x105   : > { %8862 = vst [vmem:[#allocation56_spill] sm:$0xff] %v6297_v54  ;;  %1345 = vmatpush.bf16.msra.mxu1 %v6297_v54 }
 0x106   : > { %1367 = vmatpush.bf16.msrb.mxu2 %v6262_v53  ;;  %v5136_v53 = vld [vmem:[%s8502_s4 + $0x294] sm:$0xf0] }
 0x107   : > { %v6299_v20 = vor.u32 %v5136_v53, %v4437_v57  ;;  %v5130_v53 = vld [vmem:[%s8502_s4 + $0x264] sm:$0xf0]  ;;  %v6326_v57 = vor.u32 %v5139_v7, %v4463_v58  ;;  %v4439_v58 = vld [vmem:[%s8502_s4 + $0x298] sm:$0xf0] }
 0x108   : > { %v6321_v21 = vor.u32 %v5130_v53, %v4413_v31  ;;  %1346 = vmatmul.bf16.vlgmr.msra.gmra.mxu1 %v5670_v51  ;;  %v5124_v31 = vld [vmem:[%s8502_s4 + $0x234] sm:$0xf0]  ;;  %v5133_v53 = vld [vmem:[%s8502_s4 + $0x284] sm:$0xf] }
 0x109   : > { %8863 = vst [vmem:[#allocation57_spill] sm:$0xff] %v6299_v20  ;;  %1394 = vmatpush.bf16.msrb.mxu1 %v6307_v52  ;;  %v6340_v7 = vor.u32 %v5124_v31, %v4389_v34  ;;  %v5127_v34 = vld [vmem:[%s8502_s4 + $0x254] sm:$0xf] }
 0x10a   : > { %1368 = vmatpush.bf16.msrb.mxu2 %v6299_v20  ;;  %8865 = vst [vmem:[#allocation59_spill] sm:$0xff] %v6321_v21  ;;  %v4365_v20 = vld [vmem:[%s8502_s4 + $0x1f0] sm:$0xf] }
 0x10b   : > { %8866 = vst [vmem:[#allocation60_spill] sm:$0xff] %v6326_v57 }
 0x10c   : > { %8867 = vst [vmem:[#allocation61_spill] sm:$0xff] %v6340_v7 }
 0x10d   : > { %1395 = vmatpush.bf16.msrb.mxu1 %v6326_v57  ;;  %v5118_v57 = vld [vmem:[%s8502_s4 + $0x204] sm:$0xf0] }
 0x10e   : > { %1369 = vmatpush.bf16.msrb.mxu2 %v6321_v21  ;;  %v6345_v21 = vor.u32 %v5133_v53, %v4439_v58  ;;  %v6358_v31 = vor.u32 %v5118_v57, %v4365_v20  ;;  %v4415_v53 = vld [vmem:[%s8502_s4 + $0x268] sm:$0xf0]  ;;  %v5121_v20 = vld [vmem:[%s8502_s4 + $0x224] sm:$0xf] }
 0x10f   : > { %v6363_v58 = vor.u32 %v5127_v34, %v4415_v53  ;;  %v4391_v34 = vld [vmem:[%s8502_s4 + $0x238] sm:$0xf0] }
 0x110   : > { %8868 = vst [vmem:[#allocation62_spill] sm:$0xff] %v6345_v21  ;;  %v6381_v53 = vor.u32 %v5121_v20, %v4391_v34  ;;  %v4367_v20 = vld [vmem:[%s8502_s4 + $0x208] sm:$0xf0] }
 0x111   : > { %1396 = vmatpush.bf16.msrb.mxu1 %v6345_v21  ;;  %8869 = vst [vmem:[#allocation63_spill] sm:$0xff] %v6358_v31  ;;  %v5112_v21 = vld [vmem:[%s8502_s4 + $0x1d4] sm:$0xf0] }
 0x112   : > { %1370 = vmatpush.bf16.msrb.mxu2 %v6340_v7  ;;  %8870 = vst [vmem:[#allocation64_spill] sm:$0xff] %v6363_v58  ;;  %v4341_v7 = vld [vmem:[%s8502_s4 + $0x1c0] sm:$0xf] }
 0x113   : > { %v6376_v57 = vor.u32 %v5112_v21, %v4341_v7  ;;  %8872 = vst [vmem:[#allocation66_spill] sm:$0xff] %v6381_v53  ;;  %v5115_v21 = vld [vmem:[%s8502_s4 + $0x1f4] sm:$0xf] }
 0x114   : > { %v6399_v34 = vor.u32 %v5115_v21, %v4367_v20  ;;  %v5100_v21 = vld [vmem:[%s8502_s4 + $0x174] sm:$0xf0]  ;;  %v5097_v20 = vld [vmem:[%s8502_s4 + $0x164] sm:$0xf] }
 0x115   : > { %1397 = vmatpush.bf16.msrb.mxu1 %v6363_v58  ;;  %8871 = vst [vmem:[#allocation65_spill] sm:$0xff] %v6376_v57  ;;  %v5106_v58 = vld [vmem:[%s8502_s4 + $0x1a4] sm:$0xf0] }
 0x116   : > { %1371 = vmatpush.bf16.msrb.mxu2 %v6358_v31  ;;  %v4317_v31 = vld [vmem:[%s8502_s4 + $0x190] sm:$0xf]  ;;  %8874 = vst [vmem:[#allocation68_spill] sm:$0xff] %v6399_v34 }
 0x117   : > { %v6394_v52 = vor.u32 %v5106_v58, %v4317_v31  ;;  %v4293_v31 = vld [vmem:[%s8502_s4 + $0x160] sm:$0xf] }
 0x119   : > { %1398 = vmatpush.bf16.msrb.mxu1 %v6381_v53  ;;  %8873 = vst [vmem:[#allocation67_spill] sm:$0xff] %v6394_v52  ;;  %v4343_v53 = vld [vmem:[%s8502_s4 + $0x1d8] sm:$0xf0] }
 0x11a   : > { %1372 = vmatpush.bf16.msrb.mxu2 %v6376_v57  ;;  %v5109_v57 = vld [vmem:[%s8502_s4 + $0x1c4] sm:$0xf] }
 0x11b   : > { %v6413_v58 = vor.u32 %v5109_v57, %v4343_v53  ;;  %v5103_v57 = vld [vmem:[%s8502_s4 + $0x194] sm:$0xf]  ;;  %v4319_v53 = vld [vmem:[%s8502_s4 + $0x1a8] sm:$0xf0] }
 0x11d   : > { %1399 = vmatpush.bf16.msrb.mxu1 %v6399_v34  ;;  %8875 = vst [vmem:[#allocation69_spill] sm:$0xff] %v6413_v58  ;;  %v6433_v34 = vor.u32 %v5100_v21, %v4293_v31  ;;  %v4271_v31 = vld [vmem:[%s8502_s4 + $0x148] sm:$0xf0]  ;;  %v4245_v21 = vld [vmem:[%s8502_s4 + $0x100] sm:$0xf] }
 0x11e   : > { %1373 = vmatpush.bf16.msrb.mxu2 %v6394_v52  ;;  %v4295_v52 = vld [vmem:[%s8502_s4 + $0x178] sm:$0xf0] }
 0x11f   : > { %8876 = vst [vmem:[#allocation70_spill] sm:$0xff] %v6433_v34  ;;  %v6435_v54 = vor.u32 %v5097_v20, %v4295_v52  ;;  %v6451_v52 = vor.u32 %v5103_v57, %v4319_v53  ;;  %v5088_v20 = vld [vmem:[%s8502_s4 + $0x114] sm:$0xf0]  ;;  %v5085_v57 = vld [vmem:[%s8502_s4 + $0x104] sm:$0xf] }
 0x120   : > { %v4247_v53 = vld [vmem:[%s8502_s4 + $0x118] sm:$0xf0] }
 0x121   : > { %1374 = vmatmul.bf16.vlgmr.msrb.gmra.mxu2 %v5670_v51  ;;  %1400 = vmatpush.bf16.msrb.mxu1 %v6413_v58  ;;  %8877 = vst [vmem:[#allocation71_spill] sm:$0xff] %v6435_v54 }
 0x122   : > { %1517 = vmatpush.bf16.msra.mxu2 %v5534_v8 }
 0x125   : > { %1401 = vmatpush.bf16.msrb.mxu1 %v6451_v52 }
 0x126   : > { %1518 = vmatpush.bf16.msra.mxu2 %v5546_v12 }
 0x128   : > { %1402 = vmatmul.bf16.vlgmr.msrb.gmra.mxu1 %v5670_v51  ;;  %v5076_v51 = vld [vmem:[%s8502_s4 + $0xb4] sm:$0xf0] }
 0x129   : > { %1548 = vmatpush.bf16.msra.mxu1 %v5685_v55 }
 0x12a   : > { %1519 = vmatpush.bf16.msra.mxu2 %v5564_v18 }
 0x12d   : > { %1549 = vmatpush.bf16.msra.mxu1 %v5714_v1 }
 0x12e   : > { %1520 = vmatpush.bf16.msra.mxu2 %v5582_v24 }
 0x131   : > { %1550 = vmatpush.bf16.msra.mxu1 %v5741_v16 }
 0x132   : > { %1521 = vmatpush.bf16.msra.mxu2 %v5602_v30 }
 0x135   : > { %1551 = vmatpush.bf16.msra.mxu1 %v5771_v32 }
 0x136   : > { %1522 = vmatpush.bf16.msra.mxu2 %v5624_v36 }
 0x139   : > { %1552 = vmatpush.bf16.msra.mxu1 %v5801_v49 }
 0x13a   : > { %1523 = vmatpush.bf16.msra.mxu2 %v5643_v42 }
 0x13d   : > { %1553 = vmatpush.bf16.msra.mxu1 %v5846_v14 }
 0x13e   : > { %1524 = vmatpush.bf16.msra.mxu2 %v5668_v50 }
 0x141   : > { %1554 = vmatpush.bf16.msra.mxu1 %v5877_v43 }
 0x144   : > { %v741_v7 = vpop.f32.mrf.mxu2 }
 0x145   : > { %1555 = vmatpush.bf16.msra.mxu1 %v5917_v3 }
 0x149   : > { %1604 = vmatpush.bf16.msrb.mxu1 %v5931_v25 }
 0x14c   : > { %v743_v8 = vpop.f32.mrf.mxu2 }
 0x14d   : > { %v6440_v58 = vpack.c.bf16 %v743_v8, %v741_v7  ;;  %v6457_v8 = vor.u32 %v5094_v48, %v4269_v10  ;;  %v6459_v7 = vor.u32 %v5091_v38, %v4271_v31  ;;  %v6478_v38 = vor.u32 %v5088_v20, %v4245_v21  ;;  %v4221_v48 = vld [vmem:[%s8502_s4 + $0xd0] sm:$0xf]  ;;  %v5082_v31 = vld [vmem:[%s8502_s4 + $0xe4] sm:$0xf0]  ;;  %1605 = vmatpush.bf16.msrb.mxu1 %v5983_v6 }
 0x14e   : > { %v6480_v10 = vor.u32 %v5085_v57, %v4247_v53  ;;  %v6499_v21 = vor.u32 %v5082_v31, %v4221_v48  ;;  %v4197_v57 = vld [vmem:[%s8502_s4 + $0xa0] sm:$0xf]  ;;  %v5073_v53 = vld [vmem:[%s8502_s4 + $0xa4] sm:$0xf]  ;;  %v4173_v48 = vld [vmem:[%s8502_s4 + $0x70] sm:$0xf] }
 0x14f   : > { %1248 = vmatmul.bf16.vlgmr.msra.gmra.mxu3 %v6440_v58  ;;  %1276 = vmatmul.bf16.vlgmr.msrb.gmra.mxu0 %v6440_v58  ;;  %8878 = vst [vmem:[#allocation72_spill] sm:$0xff] %v6457_v8  ;;  %v5070_v31 = vld [vmem:[%s8502_s4 + $0x84] sm:$0xf0] }
 0x150   : > { %1352 = vmatpush.bf16.msra.mxu3 %v6433_v34  ;;  %1380 = vmatpush.bf16.msrb.mxu0 %v6435_v54  ;;  %8879 = vst [vmem:[#allocation73_spill] sm:$0xff] %v6459_v7  ;;  %v5079_v54 = vld [vmem:[%s8502_s4 + $0xd4] sm:$0xf] }
 0x151   : > { %8880 = vst [vmem:[#allocation74_spill] sm:$0xff] %v6478_v38  ;;  %1606 = vmatpush.bf16.msrb.mxu1 %v6020_v62 }
 0x152   : > { %8881 = vst [vmem:[#allocation75_spill] sm:$0xff] %v6480_v10 }
 0x153   : > { %8882 = vst [vmem:[#allocation76_spill] sm:$0xff] %v6499_v21 }
 0x154   : > { %1353 = vmatpush.bf16.msra.mxu3 %v6457_v8  ;;  %1381 = vmatpush.bf16.msrb.mxu0 %v6459_v7  ;;  %v4223_v7 = vld [vmem:[%s8502_s4 + $0xe8] sm:$0xf0] }
 0x155   : > { %v6501_v20 = vor.u32 %v5079_v54, %v4223_v7  ;;  %v6519_v54 = vor.u32 %v5076_v51, %v4197_v57  ;;  %v4149_v51 = vld [vmem:[%s8502_s4 + $0x40] sm:$0xf]  ;;  %1607 = vmatpush.bf16.msrb.mxu1 %v6056_v39 }
 0x157   : > { %8883 = vst [vmem:[#allocation77_spill] sm:$0xff] %v6501_v20 }
 0x158   : > { %1354 = vmatpush.bf16.msra.mxu3 %v6478_v38  ;;  %1382 = vmatpush.bf16.msrb.mxu0 %v6480_v10  ;;  %v4199_v10 = vld [vmem:[%s8502_s4 + $0xb8] sm:$0xf0]  ;;  %8884 = vst [vmem:[#allocation78_spill] sm:$0xff] %v6519_v54  ;;  %v5067_v38 = vld [vmem:[%s8502_s4 + $0x74] sm:$0xf] }
 0x159   : > { %v6521_v7 = vor.u32 %v5073_v53, %v4199_v10  ;;  %v6541_v10 = vor.u32 %v5070_v31, %v4173_v48  ;;  %v5064_v53 = vld [vmem:[%s8502_s4 + $0x54] sm:$0xf0]  ;;  %v4125_v48 = vld [vmem:[%s8502_s4 + $0x10] sm:$0xf]  ;;  %v5058_v31 = vld [vmem:[%s8502_s4 + $0x24] sm:$0xf0]  ;;  %1608 = vmatpush.bf16.msrb.mxu1 %v6092_v15 }
 0x15b   : > { %8885 = vst [vmem:[#allocation79_spill] sm:$0xff] %v6521_v7 }
 0x15c   : > { %1355 = vmatpush.bf16.msra.mxu3 %v6499_v21  ;;  %1383 = vmatpush.bf16.msrb.mxu0 %v6501_v20  ;;  %v4175_v20 = vld [vmem:[%s8502_s4 + $0x88] sm:$0xf0]  ;;  %8886 = vst [vmem:[#allocation80_spill] sm:$0xff] %v6541_v10  ;;  %v5061_v21 = vld [vmem:[%s8502_s4 + $0x44] sm:$0xf] }
 0x15d   : > { %v6543_v57 = vor.u32 %v5067_v38, %v4175_v20  ;;  %v6561_v38 = vor.u32 %v5064_v53, %v4149_v51  ;;  %1609 = vmatpush.bf16.msrb.mxu1 %v6193_v2  ;;  %v8895_v51 = vld [vmem:[#allocation53_spill] sm:$0xff]  ;;  %v8896_v53 = vld [vmem:[#allocation39_spill] sm:$0xff] }
 0x15f   : > { %1304 = vmatmul.bf16.vlgmr.msrb.gmra.mxu3 %v6440_v58  ;;  %1332 = vmatmul.bf16.vlgmr.msra.gmra.mxu0 %v6440_v58  ;;  %8887 = vst [vmem:[#allocation81_spill] sm:$0xff] %v6543_v57 }
 0x160   : > { %1356 = vmatpush.bf16.msra.mxu3 %v6519_v54  ;;  %1384 = vmatpush.bf16.msrb.mxu0 %v6521_v7  ;;  %v4151_v7 = vld [vmem:[%s8502_s4 + $0x58] sm:$0xf0]  ;;  %8888 = vst [vmem:[#allocation82_spill] sm:$0xff] %v6561_v38  ;;  %v5055_v54 = vld [vmem:[%s8502_s4 + $0x14] sm:$0xf] }
 0x161   : > { %v6563_v20 = vor.u32 %v5061_v21, %v4151_v7  ;;  %v6581_v21 = vor.u32 %v5058_v31, %v4125_v48  ;;  %1610 = vmatpush.bf16.msrb.mxu1 %v6233_v33  ;;  %v8897_v48 = vld [vmem:[#allocation56_spill] sm:$0xff]  ;;  %v1291_v31 = vpop.f32.mrf.mxu1 }
 0x163   : > { %8889 = vst [vmem:[#allocation83_spill] sm:$0xff] %v6563_v20 }
 0x164   : > { %1357 = vmatpush.bf16.msra.mxu3 %v6541_v10  ;;  %1385 = vmatpush.bf16.msrb.mxu0 %v6543_v57  ;;  %v4127_v57 = vld [vmem:[%s8502_s4 + $0x28] sm:$0xf0]  ;;  %8890 = vst [vmem:[#allocation84_spill] sm:$0xff] %v6581_v21 }
 0x165   : > { %v6583_v7 = vor.u32 %v5055_v54, %v4127_v57  ;;  %1611 = vmatpush.bf16.msrb.mxu1 %v6274_v19  ;;  %v8893_v54 = vld [vmem:[#allocation50_spill] sm:$0xff] }
 0x166   : > { %v8894_v57 = vld [vmem:[#allocation38_spill] sm:$0xff] }
 0x167   : > { %8891 = vst [vmem:[#allocation85_spill] sm:$0xff] %v6583_v7 }
 0x168   : > { %1358 = vmatpush.bf16.msra.mxu3 %v6561_v38  ;;  %1386 = vmatpush.bf16.msrb.mxu0 %v6563_v20 }
 0x16c   : > { %1359 = vmatpush.bf16.msra.mxu3 %v6581_v21  ;;  %1387 = vmatpush.bf16.msrb.mxu0 %v6583_v7 }
 0x16f   : > { %1360 = vmatmul.bf16.vlgmr.msra.gmra.mxu3 %v6440_v58  ;;  %1388 = vmatmul.bf16.vlgmr.msrb.gmra.mxu0 %v6440_v58  ;;  %v8892_v58 = vld [vmem:[#allocation35_spill] sm:$0xff] }
 0x170   : > { %1503 = vmatpush.bf16.msrb.mxu3 %v5523_v4  ;;  %1590 = vmatpush.bf16.msra.mxu0 %v5703_v61 }
 0x174   : > { %1504 = vmatpush.bf16.msrb.mxu3 %v5543_v11  ;;  %1591 = vmatpush.bf16.msra.mxu0 %v5730_v9 }
 0x178   : > { %1505 = vmatpush.bf16.msrb.mxu3 %v5561_v17  ;;  %1592 = vmatpush.bf16.msra.mxu0 %v5760_v26 }
 0x17c   : > { %1506 = vmatpush.bf16.msrb.mxu3 %v5579_v23  ;;  %1593 = vmatpush.bf16.msra.mxu0 %v5789_v40 }
 0x180   : > { %1507 = vmatpush.bf16.msrb.mxu3 %v5599_v29  ;;  %1594 = vmatpush.bf16.msra.mxu0 %v5835_v5 }
 0x184   : > { %1508 = vmatpush.bf16.msrb.mxu3 %v5621_v35  ;;  %1595 = vmatpush.bf16.msra.mxu0 %v5869_v37 }
 0x188   : > { %1509 = vmatpush.bf16.msrb.mxu3 %v5640_v41  ;;  %1596 = vmatpush.bf16.msra.mxu0 %v5904_v60 }
 0x18c   : > { %1510 = vmatpush.bf16.msrb.mxu3 %v5663_v47  ;;  %1597 = vmatpush.bf16.msra.mxu0 %v5959_v45 }
 0x190   : > { %1562 = vmatpush.bf16.msra.mxu3 %v5853_v22  ;;  %1646 = vmatpush.bf16.msrb.mxu0 %v5971_v59 }
 0x194   : > { %1563 = vmatpush.bf16.msra.mxu3 %v5895_v56  ;;  %1647 = vmatpush.bf16.msrb.mxu0 %v6008_v44  ;;  %v1293_v56 = vpop.f32.mrf.mxu1 }
 0x198   : > { %1564 = vmatpush.bf16.msra.mxu3 %v5943_v28  ;;  %1648 = vmatpush.bf16.msrb.mxu0 %v6045_v46 }
 0x19c   : > { %1565 = vmatpush.bf16.msra.mxu3 %v5988_v13  ;;  %1649 = vmatpush.bf16.msrb.mxu0 %v6081_v27  ;;  %v1263_v13 = vpop.f32.mrf.mxu2 }
 0x1a0   : > { %1566 = vmatpush.bf16.msra.mxu3 %v6025_v0  ;;  %1650 = vmatpush.bf16.msrb.mxu0 %v6181_v63 }
 0x1a4   : > { %1567 = vmatpush.bf16.msra.mxu3 %v8892_v58  ;;  %1651 = vmatpush.bf16.msrb.mxu0 %v8893_v54  ;;  %v1265_v0 = vpop.f32.mrf.mxu2  ;;  %v6634_v58 = vld [vmem:[%s8503_s5] sm:$0x3f] }
 0x1a8   : > { %1568 = vmatpush.bf16.msra.mxu3 %v8894_v57  ;;  %1652 = vmatpush.bf16.msrb.mxu0 %v8895_v51  ;;  %v6637_v57 = vperm.slane %v6634_v58, 0  ;;  %v6640_v51 = vperm.slane %v6634_v58, 3 }
 0x1aa   : > { %8898 = vst [vmem:[#allocation86_spill] sm:$0xff] %v6637_v57 }
 0x1ab   : > { %8899 = vst [vmem:[#allocation87_spill] sm:$0xff] %v6640_v51 }
 0x1ac   : > { %1569 = vmatpush.bf16.msra.mxu3 %v8896_v53  ;;  %1653 = vmatpush.bf16.msrb.mxu0 %v8897_v48  ;;  %v1347_v48 = vpop.f32.mrf.mxu1  ;;  %v6644_v44 = vpop.f32.mrf.mxu2 }
 0x1b4   : > { %v1349_v11 = vpop.f32.mrf.mxu1  ;;  %v6650_v21 = vpop.f32.mrf.mxu2 }
 0x1cc   : > { %v1277_v28 = vpop.f32.mrf.mxu0 }
 0x1d2   : > { %v1249_v22 = vpop.f32.mrf.mxu3 }
 0x1d3   : > { %v1250_v54 = vadd.f32 %v1249_v22, %v6637_v57 }
 0x1d4   : > { %v1279_v27 = vpop.f32.mrf.mxu0 }
 0x1d5   : > { %v1264_v59 = vadd.f32 %v1263_v13, %v1250_v54 }
 0x1da   : > { %v1251_v53 = vpop.f32.mrf.mxu3 }
 0x1db   : > { %v1252_v29 = vadd.f32 %v1251_v53, %v6637_v57 }
 0x1dc   : > { %v1333_v63 = vpop.f32.mrf.mxu0 }
 0x1dd   : > { %v1334_v46 = vadd.f32 %v1333_v63, %v6640_v51  ;;  %v1266_v7 = vadd.f32 %v1265_v0, %v1252_v29 }
 0x1df   : > { %v1348_v47 = vadd.f32 %v1347_v48, %v1334_v46 }
 0x1e1   : > { %v1408_v41 = vadd.f32 %v1348_v47, %v1264_v59  ;;  %v6655_v47 = vperm.slane %v6634_v58, 1 }
 0x1e2   : > { %v6646_v35 = vpop.f32.mrf.mxu3 }
 0x1e3   : > { %v4491_v23 = vmul.f32 -1.442695, %v1408_v41  ;;  %8900 = vst [vmem:[#allocation88_spill] sm:$0xff] %v6655_v47  ;;  %v6658_v41 = vperm.slane %v6634_v58, 4 }
 0x1e4   : > { %v1335_v17 = vpop.f32.mrf.mxu0 }
 0x1e5   : > { %5288 = vpow2.f32 %v4491_v23  ;;  %v1336_v4 = vadd.f32 %v1335_v17, %v6640_v51  ;;  %8901 = vst [vmem:[#allocation89_spill] sm:$0xff] %v6658_v41  ;;  %v1278_v23 = vadd.f32 %v1277_v28, %v6655_v47  ;;  %v1375_v17 = vpop.f32.mrf.mxu2 }
 0x1e7   : > { %v1350_v22 = vadd.f32 %v1349_v11, %v1336_v4 }
 0x1e9   : > { %v1409_v63 = vadd.f32 %v1350_v22, %v1266_v7  ;;  %v1292_v7 = vadd.f32 %v1291_v31, %v1278_v23  ;;  %v1280_v22 = vadd.f32 %v1279_v27, %v6655_v47  ;;  %v1403_v27 = vpop.f32.mrf.mxu1 }
 0x1ea   : > { %v6652_v20 = vpop.f32.mrf.mxu3 }
 0x1eb   : > { %v5289_v13 = vpop.eup %5288  ;;  %v4492_v46 = vmul.f32 -1.442695, %v1409_v63  ;;  %v1294_v38 = vadd.f32 %v1293_v56, %v1280_v22 }
 0x1ec   : > { %v1416_v59 = vadd.f32 1.0, %v5289_v13 }
 0x1ed   : > { %5290 = vpow2.f32 %v4492_v46  ;;  %v1377_v57 = vpop.f32.mrf.mxu2 }
 0x1ee   : > { %5292 = vrcp.f32 %v1416_v59  ;;  %v1429_v56 = vand.u32 2147483648, %v1416_v59  ;;  %vm1423_vm2 = vweird.f32 %v1416_v59 }
 0x1f1   : > { %v1405_v34 = vpop.f32.mrf.mxu1 }
 0x1f2   : > { %v1361_v4 = vpop.f32.mrf.mxu3 }
 0x1f3   : > { %v5291_v11 = vpop.eup %5290  ;;  %v1362_v29 = vadd.f32 %v1361_v4, %v6658_v41 }
 0x1f4   : > { %v1417_v0 = vadd.f32 1.0, %v5291_v11  ;;  %v5293_v53 = vpop.eup %5292  ;;  %v1389_v11 = vpop.f32.mrf.mxu0 }
 0x1f5   : > { %v1376_v54 = vadd.f32 %v1375_v17, %v1362_v29  ;;  %v1419_v13 = vmul.f32 %v5293_v53, %v1416_v59  ;;  %vm1424_vm1 = vweird.f32 %v5293_v53 }
 0x1f6   : > { %5294 = vrcp.f32 %v1417_v0  ;;  %vm6670_vm4 = vmor %vm1423_vm2, %vm1424_vm1  ;;  %vm1438_vm5 = vweird.f32 %v1417_v0 }
 0x1f7   : > { %v1448_v48 = vadd.f32 %v1376_v54, %v1292_v7  ;;  %v1420_v4 = vsub.f32 1.0, %v1419_v13  ;;  %v1444_v13 = vand.u32 2147483648, %v1417_v0 }
 0x1f9   : > { %v4493_v63 = vmul.f32 -1.442695, %v1448_v48  ;;  %v1421_v7 = vmul.f32 %v5293_v53, %v1420_v4  ;;  %v1445_v45 = vor.u32 1.1754944e-38, %v1444_v13 }
 0x1fa   : > { %v1363_v46 = vpop.f32.mrf.mxu3 }
 0x1fb   : > { %5296 = vpow2.f32 %v4493_v63  ;;  %v1364_v28 = vadd.f32 %v1363_v46, %v6658_v41  ;;  %v6665_v63 = vperm.slane %v6634_v58, 5  ;;  %v1422_v46 = vadd.f32 %v5293_v53, %v1421_v7 }
 0x1fc   : > { %v5295_v51 = vpop.eup %5294 }
 0x1fd   : > { %v1434_v10 = vmul.f32 %v5295_v51, %v1417_v0  ;;  %v1378_v8 = vadd.f32 %v1377_v57, %v1364_v28  ;;  %v1427_v57 = vand.u32 2147483647, %v1416_v59  ;;  %vm1439_vm3 = vweird.f32 %v5295_v51 }
 0x1fe   : > { %v1390_v4 = vadd.f32 %v1389_v11, %v6665_v63  ;;  %vm1440_vm6 = vmor %vm1438_vm5, %vm1439_vm3 }
 0x1ff   : > { %v1449_v31 = vadd.f32 %v1378_v8, %v1294_v38  ;;  %v1435_v23 = vsub.f32 1.0, %v1434_v10  ;;  %v6668_v8 = vperm.slane %v6634_v58, 2  ;;  %v1391_v38 = vpop.f32.mrf.mxu0  ;;  %vm1428_vm7 = vcmp.eq.f32.partialorder %v1427_v57, 8.507059e+37 }
 0x200   : > { %v1392_v58 = vadd.f32 %v1391_v38, %v6665_v63  ;;  %v1404_v10 = vadd.f32 %v1403_v27, %v1390_v4 }
 0x201   : > { %v5297_v17 = vpop.eup %5296  ;;  %v4494_v29 = vmul.f32 -1.442695, %v1449_v31  ;;  %v1436_v48 = vmul.f32 %v5295_v51, %v1435_v23  ;;  %v1426_v31 = vsel %vm6670_vm4, %v5293_v53, %v1422_v46  ;;  %v1442_v23 = vand.u32 2147483647, %v1417_v0 }
 0x202   : > { %v1456_v54 = vadd.f32 1.0, %v5297_v17  ;;  %v1430_v17 = vor.u32 1.1754944e-38, %v1429_v56  ;;  %v1306_v11 = vadd.f32 %v6646_v35, %v6668_v8  ;;  %v1308_v46 = vadd.f32 %v6652_v20, %v6668_v8 }
 0x203   : > { %v1437_v22 = vadd.f32 %v5295_v51, %v1436_v48  ;;  %vm1443_vm8 = vcmp.eq.f32.partialorder %v1442_v23, 8.507059e+37  ;;  %v1406_v57 = vadd.f32 %v1405_v34, %v1392_v58 }
 0x204   : > { %5298 = vrcp.f32 %v1456_v54  ;;  %v1431_v41 = vsel %vm1428_vm7, %v1430_v17, %v1426_v31  ;;  %vm1463_vm10 = vweird.f32 %v1456_v54  ;;  %v1467_v13 = vand.u32 2147483647, %v1456_v54 }
 0x205   : > { %5300 = vpow2.f32 %v4494_v29  ;;  %v1441_v7 = vsel %vm1440_vm6, %v5295_v51, %v1437_v22  ;;  %v1488_v56 = vmul.f32 %v1431_v41, %v1404_v10  ;;  %v1320_v51 = vadd.f32 %v6644_v44, %v1306_v11 }
 0x206   : > { %v1446_v53 = vsel %vm1443_vm8, %v1445_v45, %v1441_v7  ;;  %v1469_v22 = vand.u32 2147483648, %v1456_v54  ;;  %v1322_v35 = vadd.f32 %v6650_v21, %v1308_v46  ;;  %vm1468_vm12 = vcmp.eq.f32.partialorder %v1467_v13, 8.507059e+37  ;;  %v8905_v13 = vld [vmem:[#allocation58_spill] sm:$0xff] }
 0x207   : > { %v1489_v31 = vmul.f32 %v1446_v53, %v1406_v57  ;;  %v1490_v27 = vadd.f32 %v1488_v56, %v1320_v51  ;;  %v5414_v53 = vld [vmem:[%s5654_s19] sm:$0xff]  ;;  %v5415_v57 = vld [vmem:[%s5654_s19 + $0x8] sm:$0xff] }
 0x208   : > { %v1470_v4 = vor.u32 1.1754944e-38, %v1469_v22 }
 0x209   : > { %v1491_v23 = vadd.f32 %v1489_v31, %v1322_v35  ;;  %v8904_v31 = vld [vmem:[#allocation40_spill] sm:$0xff] }
 0x20a   : > { %v5299_v28 = vpop.eup %5298  ;;  %v8907_v35 = vld [vmem:[#allocation60_spill] sm:$0xff] }
 0x20b   : > { %v5301_v59 = vpop.eup %5300  ;;  %v1459_v29 = vmul.f32 %v5299_v28, %v1456_v54  ;;  %vm1464_vm9 = vweird.f32 %v5299_v28 }
 0x20c   : > { %v1457_v48 = vadd.f32 1.0, %v5301_v59  ;;  %vm1465_vm11 = vmor %vm1463_vm10, %vm1464_vm9 }
 0x20d   : > { %v1460_v47 = vsub.f32 1.0, %v1459_v29 }
 0x20e   : > { %5302 = vrcp.f32 %v1457_v48  ;;  %v1484_v41 = vand.u32 2147483648, %v1457_v48  ;;  %v1482_v44 = vand.u32 2147483647, %v1457_v48  ;;  %vm1478_vm14 = vweird.f32 %v1457_v48 }
 0x20f   : > { %v1461_v0 = vmul.f32 %v5299_v28, %v1460_v47  ;;  %5304 = vtanh.f32 %v1490_v27  ;;  %v8908_v27 = vld [vmem:[#allocation42_spill] sm:$0xff] }
 0x210   : > { %5306 = vtanh.f32 %v1491_v23  ;;  %v1485_v21 = vor.u32 1.1754944e-38, %v1484_v41  ;;  %vm1483_vm1 = vcmp.eq.f32.partialorder %v1482_v44, 8.507059e+37  ;;  %v8912_v23 = vld [vmem:[#allocation44_spill] sm:$0xff]  ;;  %v8917_v44 = vld [vmem:[#allocation69_spill] sm:$0xff] }
 0x211   : > { %v1462_v38 = vadd.f32 %v5299_v28, %v1461_v0  ;;  %v8915_v41 = vld [vmem:[#allocation68_spill] sm:$0xff] }
 0x213   : > { %v1466_v47 = vsel %vm1465_vm11, %v5299_v28, %v1462_v38 }
 0x214   : > { %v5303_v59 = vpop.eup %5302  ;;  %v1471_v34 = vsel %vm1468_vm12, %v1470_v4, %v1466_v47  ;;  %v8909_v47 = vld [vmem:[#allocation62_spill] sm:$0xff]  ;;  %v8911_v4 = vld [vmem:[#allocation64_spill] sm:$0xff] }
 0x215   : > { %v1474_v45 = vmul.f32 %v5303_v59, %v1457_v48  ;;  %vm1479_vm13 = vweird.f32 %v5303_v59  ;;  %v1494_v54 = vsub.f32 1.0, %v1471_v34  ;;  %v5305_v58 = vpop.eup %5304  ;;  %v1498_v46 = vmul.f32 %v5414_v53, %v1471_v34  ;;  %v8914_v34 = vld [vmem:[#allocation45_spill] sm:$0xff]  ;;  %v8946_v53 = vld [vmem:[#allocation55_spill] sm:$0xff] }
 0x216   : > { %vm1480_vm15 = vmor %vm1478_vm14, %vm1479_vm13  ;;  %v5307_v0 = vpop.eup %5306 }
 0x217   : > { %v1475_v20 = vsub.f32 1.0, %v1474_v45  ;;  %v1496_v11 = vmul.f32 %v5305_v58, %v1494_v54  ;;  %v8910_v45 = vld [vmem:[#allocation43_spill] sm:$0xff]  ;;  %v8918_v54 = vld [vmem:[#allocation49_spill] sm:$0xff] }
 0x218   : > { %v8922_v58 = vld [vmem:[#allocation59_spill] sm:$0xff] }
 0x219   : > { %v1476_v17 = vmul.f32 %v5303_v59, %v1475_v20  ;;  %v6686_v51 = vadd.f32 %v1498_v46, %v1496_v11  ;;  %v8913_v20 = vld [vmem:[#allocation66_spill] sm:$0xff]  ;;  %v8924_v11 = vld [vmem:[#allocation63_spill] sm:$0xff] }
 0x21b   : > { %v1477_v29 = vadd.f32 %v5303_v59, %v1476_v17  ;;  %v8916_v17 = vld [vmem:[#allocation46_spill] sm:$0xff] }
 0x21d   : > { %v1481_v28 = vsel %vm1480_vm15, %v5303_v59, %v1477_v29  ;;  %v8906_v59 = vld [vmem:[#allocation41_spill] sm:$0xff]  ;;  %v8919_v29 = vld [vmem:[#allocation51_spill] sm:$0xff] }
 0x21e   : > { %v1486_v7 = vsel %vm1483_vm1, %v1485_v21, %v1481_v28  ;;  %v8920_v21 = vld [vmem:[#allocation54_spill] sm:$0xff]  ;;  %v8921_v28 = vld [vmem:[#allocation57_spill] sm:$0xff] }
 0x21f   : > { %v1495_v10 = vsub.f32 1.0, %v1486_v7  ;;  %v1499_v38 = vmul.f32 %v5415_v57, %v1486_v7  ;;  %v8923_v7 = vld [vmem:[#allocation61_spill] sm:$0xff] }
 0x221   : > { %v1497_v56 = vmul.f32 %v5307_v0, %v1495_v10  ;;  %v8927_v10 = vld [vmem:[#allocation4_spill] sm:$0xff] }
 0x222   : > { %v8945_v0 = vld [vmem:[#allocation52_spill] sm:$0xff] }
 0x223   : > { %v6688_v22 = vadd.f32 %v1499_v38, %v1497_v56  ;;  %v8947_v38 = vld [vmem:[#allocation70_spill] sm:$0xff] }
 0x225   : > { %v1502_v48 = vpack.c.bf16 %v6688_v22, %v6686_v51 }
 0x227   : > { %1511 = vmatmul.bf16.vlgmr.msrb.gmra.mxu3 %v1502_v48  ;;  %1525 = vmatmul.bf16.vlgmr.msra.gmra.mxu2 %v1502_v48 }
 0x228   : > { %1598 = vmatmul.bf16.vlgmr.msra.gmra.mxu0 %v1502_v48  ;;  %1618 = vmatpush.bf16.msrb.mxu3 %v8904_v31 }
 0x229   : > { %1702 = vmatpush.bf16.msra.mxu0 %v8905_v13 }
 0x22c   : > { %1619 = vmatpush.bf16.msrb.mxu3 %v8906_v59 }
 0x22d   : > { %1703 = vmatpush.bf16.msra.mxu0 %v8907_v35 }
 0x230   : > { %1620 = vmatpush.bf16.msrb.mxu3 %v8908_v27 }
 0x231   : > { %1704 = vmatpush.bf16.msra.mxu0 %v8909_v47 }
 0x234   : > { %1621 = vmatpush.bf16.msrb.mxu3 %v8910_v45 }
 0x235   : > { %1705 = vmatpush.bf16.msra.mxu0 %v8911_v4 }
 0x237   : > { %1570 = vmatmul.bf16.vlgmr.msra.gmra.mxu3 %v1502_v48 }
 0x238   : > { %1622 = vmatpush.bf16.msrb.mxu3 %v8912_v23  ;;  %1654 = vmatmul.bf16.vlgmr.msrb.gmra.mxu0 %v1502_v48 }
 0x239   : > { %1706 = vmatpush.bf16.msra.mxu0 %v8913_v20 }
 0x23c   : > { %1623 = vmatpush.bf16.msrb.mxu3 %v8914_v34 }
 0x23d   : > { %1707 = vmatpush.bf16.msra.mxu0 %v8915_v41 }
 0x240   : > { %1624 = vmatpush.bf16.msrb.mxu3 %v8916_v17 }
 0x241   : > { %1708 = vmatpush.bf16.msra.mxu0 %v8917_v44 }
 0x244   : > { %1625 = vmatpush.bf16.msrb.mxu3 %v8918_v54 }
 0x245   : > { %1709 = vmatpush.bf16.msra.mxu0 %v6451_v52 }
 0x247   : > { %1626 = vmatmul.bf16.vlgmr.msrb.gmra.mxu3 %v1502_v48 }
 0x248   : > { %1674 = vmatpush.bf16.msra.mxu3 %v8919_v29  ;;  %1710 = vmatmul.bf16.vlgmr.msra.gmra.mxu0 %v1502_v48 }
 0x249   : > { %1856 = vmatpush.bf16.msrb.mxu0 %v5685_v55  ;;  %v8925_v55 = vld [vmem:[#allocation65_spill] sm:$0xff] }
 0x24c   : > { %1675 = vmatpush.bf16.msra.mxu3 %v8920_v21 }
 0x24d   : > { %1857 = vmatpush.bf16.msrb.mxu0 %v5714_v1  ;;  %v8926_v1 = vld [vmem:[#allocation67_spill] sm:$0xff] }
 0x250   : > { %1676 = vmatpush.bf16.msra.mxu3 %v8921_v28  ;;  %v8974_v28 = vld [vmem:[#allocation89_spill] sm:$0xff] }
 0x251   : > { %1858 = vmatpush.bf16.msrb.mxu0 %v5741_v16 }
 0x254   : > { %1677 = vmatpush.bf16.msra.mxu3 %v8922_v58 }
 0x255   : > { %1859 = vmatpush.bf16.msrb.mxu0 %v5771_v32 }
 0x258   : > { %1678 = vmatpush.bf16.msra.mxu3 %v8923_v7 }
 0x259   : > { %1860 = vmatpush.bf16.msrb.mxu0 %v5801_v49  ;;  %v6754_v49 = vld [vmem:[%s5833_s25] sm:$0xff] }
 0x25c   : > { %1679 = vmatpush.bf16.msra.mxu3 %v8924_v11 }
 0x25d   : > { %1861 = vmatpush.bf16.msrb.mxu0 %v5846_v14  ;;  %v8933_v14 = vld [vmem:[#allocation14_spill] sm:$0xff] }
 0x260   : > { %1680 = vmatpush.bf16.msra.mxu3 %v8925_v55 }
 0x261   : > { %1862 = vmatpush.bf16.msrb.mxu0 %v5877_v43  ;;  %v8936_v43 = vld [vmem:[#allocation19_spill] sm:$0xff] }
 0x264   : > { %1681 = vmatpush.bf16.msra.mxu3 %v8926_v1  ;;  %v8973_v1 = vld [vmem:[#allocation88_spill] sm:$0xff] }
 0x265   : > { %1863 = vmatpush.bf16.msrb.mxu0 %v5917_v3  ;;  %v8938_v3 = vld [vmem:[#allocation23_spill] sm:$0xff] }
 0x267   : > { %1682 = vmatmul.bf16.vlgmr.msra.gmra.mxu3 %v1502_v48  ;;  %v8948_v48 = vld [vmem:[#allocation71_spill] sm:$0xff] }
 0x268   : > { %1825 = vmatpush.bf16.msrb.mxu3 %v8927_v10  ;;  %v8949_v10 = vld [vmem:[#allocation72_spill] sm:$0xff] }
 0x269   : > { %1912 = vmatpush.bf16.msra.mxu0 %v5931_v25  ;;  %v8939_v25 = vld [vmem:[#allocation25_spill] sm:$0xff] }
 0x26c   : > { %1826 = vmatpush.bf16.msrb.mxu3 %v5546_v12  ;;  %v8928_v12 = vld [vmem:[#allocation26_spill] sm:$0xff] }
 0x26d   : > { %1913 = vmatpush.bf16.msra.mxu0 %v5983_v6  ;;  %v8941_v6 = vld [vmem:[#allocation31_spill] sm:$0xff] }
 0x270   : > { %1827 = vmatpush.bf16.msrb.mxu3 %v5564_v18 }
 0x271   : > { %1914 = vmatpush.bf16.msra.mxu0 %v6020_v62  ;;  %v8942_v62 = vld [vmem:[#allocation34_spill] sm:$0xff] }
 0x274   : > { %1828 = vmatpush.bf16.msrb.mxu3 %v5582_v24 }
 0x275   : > { %1915 = vmatpush.bf16.msra.mxu0 %v6056_v39  ;;  %v8940_v39 = vld [vmem:[#allocation28_spill] sm:$0xff] }
 0x278   : > { %1829 = vmatpush.bf16.msrb.mxu3 %v5602_v30 }
 0x279   : > { %1916 = vmatpush.bf16.msra.mxu0 %v6092_v15  ;;  %v8934_v15 = vld [vmem:[#allocation15_spill] sm:$0xff] }
 0x27c   : > { %1830 = vmatpush.bf16.msrb.mxu3 %v5624_v36 }
 0x27d   : > { %1917 = vmatpush.bf16.msra.mxu0 %v6193_v2  ;;  %v8943_v2 = vld [vmem:[#allocation37_spill] sm:$0xff] }
 0x280   : > { %1831 = vmatpush.bf16.msrb.mxu3 %v5643_v42  ;;  %v8929_v42 = vld [vmem:[#allocation16_spill] sm:$0xff] }
 0x281   : > { %1918 = vmatpush.bf16.msra.mxu0 %v6233_v33 }
 0x284   : > { %1832 = vmatpush.bf16.msrb.mxu3 %v5668_v50 }
 0x285   : > { %1919 = vmatpush.bf16.msra.mxu0 %v6274_v19  ;;  %v8944_v19 = vld [vmem:[#allocation48_spill] sm:$0xff] }
 0x288   : > { %1898 = vmatpush.bf16.msra.mxu3 %v5703_v61 }
 0x28c   : > { %1899 = vmatpush.bf16.msra.mxu3 %v5730_v9  ;;  %v8930_v9 = vld [vmem:[#allocation18_spill] sm:$0xff] }
 0x290   : > { %1900 = vmatpush.bf16.msra.mxu3 %v5760_v26 }
 0x294   : > { %1901 = vmatpush.bf16.msra.mxu3 %v5789_v40  ;;  %v8931_v40 = vld [vmem:[#allocation12_spill] sm:$0xff] }
 0x298   : > { %1902 = vmatpush.bf16.msra.mxu3 %v5835_v5  ;;  %v8932_v5 = vld [vmem:[#allocation13_spill] sm:$0xff] }
 0x29c   : > { %1903 = vmatpush.bf16.msra.mxu3 %v5869_v37  ;;  %v8935_v37 = vld [vmem:[#allocation17_spill] sm:$0xff] }
 0x2a0   : > { %1904 = vmatpush.bf16.msra.mxu3 %v5904_v60  ;;  %v8937_v60 = vld [vmem:[#allocation21_spill] sm:$0xff] }
 0x2a4   : > { %1905 = vmatpush.bf16.msra.mxu3 %v8928_v12  ;;  %v8950_v12 = vld [vmem:[#allocation73_spill] sm:$0xff] }
 0x2aa   : > { %v1512_v18 = vpop.f32.mrf.mxu3  ;;  %v1526_v24 = vpop.f32.mrf.mxu2 }
 0x2ab   : > { %v1527_v50 = vadd.f32 %v1526_v24, %v8929_v42  ;;  %v1513_v32 = vadd.f32 %v1512_v18, %v8930_v9  ;;  %v8951_v18 = vld [vmem:[#allocation74_spill] sm:$0xff]  ;;  %v8952_v24 = vld [vmem:[#allocation75_spill] sm:$0xff] }
 0x2b2   : > { %v1514_v30 = vpop.f32.mrf.mxu3  ;;  %v1528_v36 = vpop.f32.mrf.mxu2 }
 0x2b3   : > { %v1529_v61 = vadd.f32 %v1528_v36, %v8929_v42  ;;  %v1515_v16 = vadd.f32 %v1514_v30, %v8930_v9  ;;  %v8953_v30 = vld [vmem:[#allocation76_spill] sm:$0xff]  ;;  %v8954_v36 = vld [vmem:[#allocation77_spill] sm:$0xff] }
 0x2b5   : > { %v1532_v26 = vpack.c.bf16 %v1529_v61, %v1527_v50  ;;  %v1531_v33 = vpack.c.bf16 %v1515_v16, %v1513_v32  ;;  %v8955_v50 = vld [vmem:[#allocation78_spill] sm:$0xff]  ;;  %v8956_v61 = vld [vmem:[#allocation79_spill] sm:$0xff]  ;;  %v8957_v16 = vld [vmem:[#allocation80_spill] sm:$0xff] }
 0x2b6   : > { %v8959_v32 = vld [vmem:[#allocation82_spill] sm:$0xff] }
 0x2b7   : > { %1539 = vmatpush.bf16.msrb.mxu2 %v1532_v26  ;;  %v8958_v26 = vld [vmem:[#allocation81_spill] sm:$0xff] }
 0x2bb   : > { %1540 = vmatpush.bf16.msrb.mxu2 %v1531_v33  ;;  %v8960_v33 = vld [vmem:[#allocation83_spill] sm:$0xff] }
 0x2be   : > { %4495 = vmatmul.msk.bf16.vlgmr.msrb.gmra.mxu2 %vm728_vm0, %v6754_v49 }
 0x2bf   : > { %1576 = vmatpush.bf16.msra.mxu2 %v8931_v40 }
 0x2c3   : > { %1577 = vmatpush.bf16.msra.mxu2 %v8932_v5 }
 0x2c7   : > { %1578 = vmatpush.bf16.msra.mxu2 %v8933_v14 }
 0x2cb   : > { %1579 = vmatpush.bf16.msra.mxu2 %v8934_v15 }
 0x2cf   : > { %1580 = vmatpush.bf16.msra.mxu2 %v8935_v37 }
 0x2d3   : > { %1581 = vmatpush.bf16.msra.mxu2 %v8936_v43 }
 0x2d7   : > { %1582 = vmatpush.bf16.msra.mxu2 %v8937_v60 }
 0x2db   : > { %1583 = vmatpush.bf16.msra.mxu2 %v8938_v3 }
 0x2df   : > { %1632 = vmatpush.bf16.msrb.mxu2 %v8939_v25 }
 0x2e3   : > { %1633 = vmatpush.bf16.msrb.mxu2 %v8940_v39 }
 0x2e7   : > { %1634 = vmatpush.bf16.msrb.mxu2 %v8941_v6 }
 0x2eb   : > { %1635 = vmatpush.bf16.msrb.mxu2 %v8942_v62 }
 0x2ef   : > { %1636 = vmatpush.bf16.msrb.mxu2 %v8943_v2 }
 0x2f3   : > { %1637 = vmatpush.bf16.msrb.mxu2 %v8944_v19 }
 0x2f7   : > { %1638 = vmatpush.bf16.msrb.mxu2 %v8945_v0 }
 0x2fb   : > { %1639 = vmatpush.bf16.msrb.mxu2 %v8946_v53 }
 0x341   : > { %v1542_v46 = vpop.f32.mrf.mxu2 }
 0x349   : > { %v1544_v56 = vpop.f32.mrf.mxu2 }
 0x34a   : > { %v1547_v57 = vpack.c.bf16 %v1544_v56, %v1542_v46  ;;  %v8961_v46 = vld [vmem:[#allocation84_spill] sm:$0xff]  ;;  %v8962_v56 = vld [vmem:[#allocation85_spill] sm:$0xff] }
 0x34c   : > { %1556 = vmatmul.bf16.vlgmr.msra.gmra.mxu1 %v1547_v57  ;;  %1584 = vmatmul.bf16.vlgmr.msra.gmra.mxu2 %v1547_v57 }
 0x34d   : > { %1660 = vmatpush.bf16.msra.mxu1 %v8947_v38  ;;  %1688 = vmatpush.bf16.msra.mxu2 %v8948_v48 }
 0x351   : > { %1661 = vmatpush.bf16.msra.mxu1 %v8949_v10  ;;  %1689 = vmatpush.bf16.msra.mxu2 %v8950_v12 }
 0x355   : > { %1662 = vmatpush.bf16.msra.mxu1 %v8951_v18  ;;  %1690 = vmatpush.bf16.msra.mxu2 %v8952_v24 }
 0x359   : > { %1663 = vmatpush.bf16.msra.mxu1 %v8953_v30  ;;  %1691 = vmatpush.bf16.msra.mxu2 %v8954_v36  ;;  %v8963_v30 = vld [vmem:[#allocation3_spill] sm:$0xff]  ;;  %v8964_v36 = vld [vmem:[#allocation5_spill] sm:$0xff] }
 0x35c   : > { %1612 = vmatmul.bf16.vlgmr.msrb.gmra.mxu1 %v1547_v57  ;;  %1640 = vmatmul.bf16.vlgmr.msrb.gmra.mxu2 %v1547_v57 }
 0x35d   : > { %1664 = vmatpush.bf16.msra.mxu1 %v8955_v50  ;;  %1692 = vmatpush.bf16.msra.mxu2 %v8956_v61  ;;  %v8965_v50 = vld [vmem:[#allocation6_spill] sm:$0xff]  ;;  %v8966_v61 = vld [vmem:[#allocation7_spill] sm:$0xff] }
 0x361   : > { %1665 = vmatpush.bf16.msra.mxu1 %v8957_v16  ;;  %1693 = vmatpush.bf16.msra.mxu2 %v8958_v26  ;;  %v8967_v16 = vld [vmem:[#allocation8_spill] sm:$0xff]  ;;  %v8968_v26 = vld [vmem:[#allocation9_spill] sm:$0xff] }
 0x365   : > { %1666 = vmatpush.bf16.msra.mxu1 %v8959_v32  ;;  %1694 = vmatpush.bf16.msra.mxu2 %v8960_v33  ;;  %v8969_v32 = vld [vmem:[#allocation10_spill] sm:$0xff]  ;;  %v8970_v33 = vld [vmem:[#allocation11_spill] sm:$0xff] }
 0x369   : > { %1667 = vmatpush.bf16.msra.mxu1 %v8961_v46  ;;  %1695 = vmatpush.bf16.msra.mxu2 %v8962_v56 }
 0x36c   : > { %1668 = vmatmul.bf16.vlgmr.msra.gmra.mxu1 %v1547_v57  ;;  %1696 = vmatmul.bf16.vlgmr.msra.gmra.mxu2 %v1547_v57  ;;  %v1571_v57 = vpop.f32.mrf.mxu3 }
 0x36d   : > { %1811 = vmatpush.bf16.msrb.mxu1 %v8963_v30 }
 0x371   : > { %1812 = vmatpush.bf16.msrb.mxu1 %v8964_v36  ;;  %v1599_v36 = vpop.f32.mrf.mxu0 }
 0x375   : > { %1813 = vmatpush.bf16.msrb.mxu1 %v8965_v50  ;;  %v1573_v50 = vpop.f32.mrf.mxu3 }
 0x379   : > { %1814 = vmatpush.bf16.msrb.mxu1 %v8966_v61 }
 0x37d   : > { %1815 = vmatpush.bf16.msrb.mxu1 %v8967_v16  ;;  %v1601_v16 = vpop.f32.mrf.mxu0 }
 0x381   : > { %1816 = vmatpush.bf16.msrb.mxu1 %v8968_v26 }
 0x385   : > { %1817 = vmatpush.bf16.msrb.mxu1 %v8969_v32 }
 0x389   : > { %1818 = vmatpush.bf16.msrb.mxu1 %v8970_v33  ;;  %v8972_v33 = vld [vmem:[#allocation87_spill] sm:$0xff] }
 0x38d   : > { %1884 = vmatpush.bf16.msra.mxu1 %v8931_v40 }
 0x391   : > { %1885 = vmatpush.bf16.msra.mxu1 %v8932_v5  ;;  %v6805_v5 = vpop.f32.mrf.mxu3 }
 0x395   : > { %1886 = vmatpush.bf16.msra.mxu1 %v8933_v14 }
 0x399   : > { %1887 = vmatpush.bf16.msra.mxu1 %v8934_v15  ;;  %v1655_v15 = vpop.f32.mrf.mxu0  ;;  %v6811_v56 = vpop.f32.mrf.mxu3 }
 0x39d   : > { %1888 = vmatpush.bf16.msra.mxu1 %v8935_v37  ;;  %v8971_v37 = vld [vmem:[#allocation86_spill] sm:$0xff] }
 0x3a1   : > { %1889 = vmatpush.bf16.msra.mxu1 %v8936_v43  ;;  %v1657_v38 = vpop.f32.mrf.mxu0  ;;  %v1683_v11 = vpop.f32.mrf.mxu3 }
 0x3a5   : > { %1890 = vmatpush.bf16.msra.mxu1 %v8937_v60 }
 0x3a9   : > { %1891 = vmatpush.bf16.msra.mxu1 %v8938_v3 }
 0x3c9   : > { %v1557_v30 = vpop.f32.mrf.mxu1 }
 0x3ca   : > { %v1558_v32 = vadd.f32 %v1557_v30, %v8971_v37 }
 0x3cc   : > { %v1572_v46 = vadd.f32 %v1571_v57, %v1558_v32 }
 0x3cf   : > { %v1585_v61 = vpop.f32.mrf.mxu2 }
 0x3d0   : > { %v1586_v55 = vadd.f32 %v1585_v61, %v8973_v1 }
 0x3d1   : > { %v1559_v40 = vpop.f32.mrf.mxu1 }
 0x3d2   : > { %v1560_v12 = vadd.f32 %v1559_v40, %v8971_v37  ;;  %v1600_v29 = vadd.f32 %v1599_v36, %v1586_v55 }
 0x3d7   : > { %v1587_v14 = vpop.f32.mrf.mxu2 }
 0x3d8   : > { %v1588_v32 = vadd.f32 %v1587_v14, %v8973_v1 }
 0x3d9   : > { %v6807_v26 = vpop.f32.mrf.mxu1 }
 0x3df   : > { %v1641_v43 = vpop.f32.mrf.mxu2 }
 0x3e0   : > { %v1642_v60 = vadd.f32 %v1641_v43, %v8972_v33  ;;  %v1574_v43 = vadd.f32 %v1573_v50, %v1560_v12  ;;  %v1685_v12 = vpop.f32.mrf.mxu3 }
 0x3e1   : > { %v6813_v3 = vpop.f32.mrf.mxu1 }
 0x3e2   : > { %v1656_v24 = vadd.f32 %v1655_v15, %v1642_v60 }
 0x3e4   : > { %v1716_v18 = vadd.f32 %v1656_v24, %v1572_v46 }
 0x3e6   : > { %v4496_v10 = vmul.f32 -1.442695, %v1716_v18 }
 0x3e7   : > { %v1643_v48 = vpop.f32.mrf.mxu2 }
 0x3e8   : > { %5308 = vpow2.f32 %v4496_v10  ;;  %v1644_v30 = vadd.f32 %v1643_v48, %v8972_v33 }
 0x3e9   : > { %v1669_v7 = vpop.f32.mrf.mxu1 }
 0x3ea   : > { %v1658_v58 = vadd.f32 %v1657_v38, %v1644_v30  ;;  %v1670_v21 = vadd.f32 %v1669_v7, %v8974_v28  ;;  %v1602_v38 = vadd.f32 %v1601_v16, %v1588_v32 }
 0x3ec   : > { %v1717_v57 = vadd.f32 %v1658_v58, %v1574_v43  ;;  %v1684_v15 = vadd.f32 %v1683_v11, %v1670_v21  ;;  %v1711_v43 = vpop.f32.mrf.mxu0 }
 0x3ee   : > { %v5309_v24 = vpop.eup %5308  ;;  %v4497_v46 = vmul.f32 -1.442695, %v1717_v57  ;;  %v1756_v40 = vadd.f32 %v1684_v15, %v1600_v29 }
 0x3ef   : > { %v1724_v18 = vadd.f32 1.0, %v5309_v24  ;;  %v1697_v7 = vpop.f32.mrf.mxu2 }
 0x3f0   : > { %5310 = vpow2.f32 %v4497_v46  ;;  %v4498_v61 = vmul.f32 -1.442695, %v1756_v40  ;;  %v1698_v16 = vadd.f32 %v1697_v7, %v6665_v63 }
 0x3f1   : > { %5312 = vrcp.f32 %v1724_v18  ;;  %v1671_v10 = vpop.f32.mrf.mxu1  ;;  %v1737_v57 = vand.u32 2147483648, %v1724_v18  ;;  %v1735_v24 = vand.u32 2147483647, %v1724_v18  ;;  %vm1731_vm3 = vweird.f32 %v1724_v18 }
 0x3f2   : > { %5314 = vpow2.f32 %v4498_v61  ;;  %v1672_v48 = vadd.f32 %v1671_v10, %v8974_v28 }
 0x3f3   : > { %v1738_v32 = vor.u32 1.1754944e-38, %v1737_v57  ;;  %vm1736_vm5 = vcmp.eq.f32.partialorder %v1735_v24, 8.507059e+37 }
 0x3f4   : > { %v1686_v50 = vadd.f32 %v1685_v12, %v1672_v48  ;;  %v1713_v24 = vpop.f32.mrf.mxu0 }
 0x3f6   : > { %v5311_v55 = vpop.eup %5310  ;;  %v1757_v58 = vadd.f32 %v1686_v50, %v1602_v38  ;;  %v1614_v50 = vadd.f32 %v6807_v26, %v6668_v8  ;;  %v1616_v26 = vadd.f32 %v6813_v3, %v6668_v8 }
 0x3f7   : > { %v5313_v21 = vpop.eup %5312  ;;  %v1725_v11 = vadd.f32 1.0, %v5311_v55  ;;  %v1699_v61 = vpop.f32.mrf.mxu2  ;;  %v1712_v55 = vadd.f32 %v1711_v43, %v1698_v16 }
 0x3f8   : > { %v5315_v36 = vpop.eup %5314  ;;  %v1727_v29 = vmul.f32 %v5313_v21, %v1724_v18  ;;  %v4499_v60 = vmul.f32 -1.442695, %v1757_v58  ;;  %vm1732_vm2 = vweird.f32 %v5313_v21  ;;  %v1700_v7 = vadd.f32 %v1699_v61, %v6665_v63 }
 0x3f9   : > { %5316 = vrcp.f32 %v1725_v11  ;;  %v1764_v14 = vadd.f32 1.0, %v5315_v36  ;;  %vm1733_vm4 = vmor %vm1731_vm3, %vm1732_vm2  ;;  %vm1746_vm7 = vweird.f32 %v1725_v11 }
 0x3fa   : > { %v1728_v30 = vsub.f32 1.0, %v1727_v29  ;;  %5318 = vpow2.f32 %v4499_v60  ;;  %v1714_v16 = vadd.f32 %v1713_v24, %v1700_v7 }
 0x3fb   : > { %5320 = vrcp.f32 %v1764_v14  ;;  %vm1771_vm9 = vweird.f32 %v1764_v14  ;;  %v1777_v61 = vand.u32 2147483648, %v1764_v14 }
 0x3fc   : > { %v1729_v15 = vmul.f32 %v5313_v21, %v1728_v30  ;;  %v1752_v30 = vand.u32 2147483648, %v1725_v11 }
 0x3fe   : > { %v1730_v46 = vadd.f32 %v5313_v21, %v1729_v15 }
 0x3ff   : > { %v5317_v40 = vpop.eup %5316 }
 0x400   : > { %v5319_v10 = vpop.eup %5318  ;;  %v1734_v48 = vsel %vm1733_vm4, %v5313_v21, %v1730_v46  ;;  %v1742_v12 = vmul.f32 %v5317_v40, %v1725_v11  ;;  %vm1747_vm6 = vweird.f32 %v5317_v40  ;;  %v1750_v21 = vand.u32 2147483647, %v1725_v11 }
 0x401   : > { %v5321_v38 = vpop.eup %5320  ;;  %v1739_v58 = vsel %vm1736_vm5, %v1738_v32, %v1734_v48  ;;  %v1765_v36 = vadd.f32 1.0, %v5319_v10  ;;  %v1628_v46 = vadd.f32 %v6805_v5, %v1614_v50  ;;  %vm1748_vm10 = vmor %vm1746_vm7, %vm1747_vm6  ;;  %v1753_v48 = vor.u32 1.1754944e-38, %v1752_v30 }
 0x402   : > { %v1767_v29 = vmul.f32 %v5321_v38, %v1764_v14  ;;  %v1743_v60 = vsub.f32 1.0, %v1742_v12  ;;  %v1796_v18 = vmul.f32 %v1739_v58, %v1712_v55  ;;  %vm1772_vm8 = vweird.f32 %v5321_v38 }
 0x403   : > { %5322 = vrcp.f32 %v1765_v36  ;;  %v1775_v55 = vand.u32 2147483647, %v1764_v14  ;;  %vm1751_vm11 = vcmp.eq.f32.partialorder %v1750_v21, 8.507059e+37  ;;  %vm1773_vm12 = vmor %vm1771_vm9, %vm1772_vm8  ;;  %v1630_v50 = vadd.f32 %v6811_v56, %v1616_v26 }
 0x404   : > { %v1768_v57 = vsub.f32 1.0, %v1767_v29  ;;  %v1744_v15 = vmul.f32 %v5317_v40, %v1743_v60  ;;  %v1798_v10 = vadd.f32 %v1796_v18, %v1628_v46  ;;  %v1792_v24 = vand.u32 2147483648, %v1765_v36 }
 0x405   : > { %vm1776_vm13 = vcmp.eq.f32.partialorder %v1775_v55, 8.507059e+37  ;;  %v1790_v14 = vand.u32 2147483647, %v1765_v36  ;;  %vm1786_vm15 = vweird.f32 %v1765_v36 }
 0x406   : > { %v1769_v43 = vmul.f32 %v5321_v38, %v1768_v57  ;;  %v1745_v32 = vadd.f32 %v5317_v40, %v1744_v15  ;;  %v1778_v57 = vor.u32 1.1754944e-38, %v1777_v61  ;;  %5324 = vtanh.f32 %v1798_v10 }
 0x407   : > { %v1793_v56 = vor.u32 1.1754944e-38, %v1792_v24  ;;  %vm1791_vm2 = vcmp.eq.f32.partialorder %v1790_v14, 8.507059e+37  ;;  %v9002_v24 = vld [vmem:[#allocation73_spill] sm:$0xff]  ;;  %v9004_v14 = vld [vmem:[#allocation75_spill] sm:$0xff] }
 0x408   : > { %v1770_v12 = vadd.f32 %v5321_v38, %v1769_v43  ;;  %v1749_v58 = vsel %vm1748_vm10, %v5317_v40, %v1745_v32 }
 0x409   : > { %v5323_v29 = vpop.eup %5322  ;;  %v1754_v5 = vsel %vm1751_vm11, %v1753_v48, %v1749_v58  ;;  %v8975_v58 = vld [vmem:[#allocation27_spill] sm:$0xff] }
 0x40a   : > { %v1774_v3 = vsel %vm1773_vm12, %v5321_v38, %v1770_v12  ;;  %v1782_v11 = vmul.f32 %v5323_v29, %v1765_v36  ;;  %v1797_v60 = vmul.f32 %v1754_v5, %v1714_v16  ;;  %vm1787_vm14 = vweird.f32 %v5323_v29  ;;  %v8979_v5 = vld [vmem:[#allocation47_spill] sm:$0xff] }
 0x40b   : > { %v1779_v18 = vsel %vm1776_vm13, %v1778_v57, %v1774_v3  ;;  %vm1788_vm1 = vmor %vm1786_vm15, %vm1787_vm14  ;;  %v8988_v3 = vld [vmem:[#allocation35_spill] sm:$0xff] }
 0x40c   : > { %v1783_v7 = vsub.f32 1.0, %v1782_v11  ;;  %v1799_v15 = vadd.f32 %v1797_v60, %v1630_v50  ;;  %v1802_v40 = vsub.f32 1.0, %v1779_v18  ;;  %v5325_v46 = vpop.eup %5324  ;;  %v1806_v61 = vmul.f32 %v1779_v18, %v6686_v51  ;;  %v8976_v51 = vld [vmem:[#allocation30_spill] sm:$0xff]  ;;  %v8993_v60 = vld [vmem:[#allocation57_spill] sm:$0xff]  ;;  %v9001_v18 = vld [vmem:[#allocation72_spill] sm:$0xff] }
 0x40d   : > { %v8980_v50 = vld [vmem:[#allocation50_spill] sm:$0xff] }
 0x40e   : > { %v1784_v30 = vmul.f32 %v5323_v29, %v1783_v7  ;;  %5326 = vtanh.f32 %v1799_v15  ;;  %v1804_v16 = vmul.f32 %v5325_v46, %v1802_v40  ;;  %v8989_v11 = vld [vmem:[#allocation38_spill] sm:$0xff]  ;;  %v9000_v15 = vld [vmem:[#allocation71_spill] sm:$0xff]  ;;  %v9005_v40 = vld [vmem:[#allocation76_spill] sm:$0xff] }
 0x40f   : > { %v8999_v7 = vld [vmem:[#allocation70_spill] sm:$0xff] }
 0x410   : > { %v1785_v21 = vadd.f32 %v5323_v29, %v1784_v30  ;;  %v6831_v12 = vadd.f32 %v1806_v61, %v1804_v16  ;;  %v9003_v30 = vld [vmem:[#allocation74_spill] sm:$0xff]  ;;  %v9012_v16 = vld [vmem:[#allocation83_spill] sm:$0xff]  ;;  %v9014_v61 = vld [vmem:[#allocation85_spill] sm:$0xff] }
 0x411   : > { %v9007_v46 = vld [vmem:[#allocation78_spill] sm:$0xff] }
 0x412   : > { %v1789_v38 = vsel %vm1788_vm1, %v5323_v29, %v1785_v21  ;;  %v8978_v29 = vld [vmem:[#allocation36_spill] sm:$0xff]  ;;  %v9006_v21 = vld [vmem:[#allocation77_spill] sm:$0xff] }
 0x413   : > { %v1794_v26 = vsel %vm1791_vm2, %v1793_v56, %v1789_v38  ;;  %v9008_v56 = vld [vmem:[#allocation79_spill] sm:$0xff]  ;;  %v9009_v38 = vld [vmem:[#allocation80_spill] sm:$0xff] }
 0x414   : > { %v5327_v43 = vpop.eup %5326  ;;  %v1803_v32 = vsub.f32 1.0, %v1794_v26  ;;  %v1807_v48 = vmul.f32 %v1794_v26, %v6688_v22  ;;  %v8977_v22 = vld [vmem:[#allocation33_spill] sm:$0xff] }
 0x415   : > { %v9010_v26 = vld [vmem:[#allocation81_spill] sm:$0xff] }
 0x416   : > { %v1805_v10 = vmul.f32 %v5327_v43, %v1803_v32  ;;  %v9011_v43 = vld [vmem:[#allocation82_spill] sm:$0xff]  ;;  %v9013_v32 = vld [vmem:[#allocation84_spill] sm:$0xff] }
 0x418   : > { %v6833_v55 = vadd.f32 %v1807_v48, %v1805_v10  ;;  %v4563_v10 = vld [vmem:[%s8504_s6 + $0x70] sm:$0xf]  ;;  %v5164_v48 = vld [vmem:[%s8504_s6 + $0x74] sm:$0xf0] }
 0x41a   : > { %v6837_v36 = vpack.c.bf16 %v6833_v55, %v6831_v12 }
 0x41c   : > { %1819 = vmatmul.bf16.vlgmr.msrb.gmra.mxu1 %v6837_v36  ;;  %1833 = vmatmul.bf16.vlgmr.msrb.gmra.mxu3 %v6837_v36 }
 0x41d   : > { %1954 = vmatpush.bf16.msrb.mxu3 %v8975_v58  ;;  %1940 = vmatpush.bf16.msrb.mxu1 %v8939_v25  ;;  %v8981_v25 = vld [vmem:[#allocation53_spill] sm:$0xff]  ;;  %v6926_v58 = vor.u32 %v5164_v48, %v4563_v10 }
 0x41f   : > { %9015 = vst [vmem:[#allocation40_spill] sm:$0xff] %v6926_v58 }
 0x421   : > { %1955 = vmatpush.bf16.msrb.mxu3 %v8976_v51  ;;  %1941 = vmatpush.bf16.msrb.mxu1 %v8940_v39  ;;  %v8982_v39 = vld [vmem:[#allocation56_spill] sm:$0xff]  ;;  %v4565_v51 = vld [vmem:[%s8504_s6 + $0x78] sm:$0xf0] }
 0x425   : > { %1956 = vmatpush.bf16.msrb.mxu3 %v8977_v22  ;;  %1942 = vmatpush.bf16.msrb.mxu1 %v8941_v6 }
 0x429   : > { %1957 = vmatpush.bf16.msrb.mxu3 %v8978_v29  ;;  %1943 = vmatpush.bf16.msrb.mxu1 %v8942_v62 }
 0x42c   : > { %1906 = vmatmul.bf16.vlgmr.msra.gmra.mxu3 %v6837_v36 }
 0x42d   : > { %1958 = vmatpush.bf16.msrb.mxu3 %v8979_v5  ;;  %1944 = vmatpush.bf16.msrb.mxu1 %v8943_v2 }
 0x431   : > { %1959 = vmatpush.bf16.msrb.mxu3 %v8980_v50  ;;  %1945 = vmatpush.bf16.msrb.mxu1 %v8944_v19  ;;  %v4555_v50 = vld [vmem:[%s8504_s6 + $0x60] sm:$0xf] }
 0x435   : > { %1960 = vmatpush.bf16.msrb.mxu3 %v8981_v25  ;;  %1946 = vmatpush.bf16.msrb.mxu1 %v8945_v0  ;;  %v8985_v0 = vld [vmem:[#allocation24_spill] sm:$0xff] }
 0x436   : > { %v5162_v25 = vld [vmem:[%s8504_s6 + $0x64] sm:$0xf0] }
 0x439   : > { %1961 = vmatpush.bf16.msrb.mxu3 %v8982_v39  ;;  %1947 = vmatpush.bf16.msrb.mxu1 %v8946_v53  ;;  %v8986_v53 = vld [vmem:[#allocation29_spill] sm:$0xff]  ;;  %v5161_v39 = vld [vmem:[%s8504_s6 + $0x64] sm:$0xf] }
 0x43c   : > { %1962 = vmatmul.bf16.vlgmr.msrb.gmra.mxu3 %v6837_v36 }
 0x43d   : > { %2010 = vmatpush.bf16.msra.mxu3 %v8905_v13 }
 0x441   : > { %2011 = vmatpush.bf16.msra.mxu3 %v8907_v35 }
 0x445   : > { %2012 = vmatpush.bf16.msra.mxu3 %v8909_v47 }
 0x449   : > { %2013 = vmatpush.bf16.msra.mxu3 %v8911_v4 }
 0x44d   : > { %2014 = vmatpush.bf16.msra.mxu3 %v8913_v20 }
 0x451   : > { %2015 = vmatpush.bf16.msra.mxu3 %v8915_v41 }
 0x455   : > { %2016 = vmatpush.bf16.msra.mxu3 %v8917_v44  ;;  %v8983_v44 = vld [vmem:[#allocation20_spill] sm:$0xff] }
 0x459   : > { %2017 = vmatpush.bf16.msra.mxu3 %v6451_v52  ;;  %v8984_v52 = vld [vmem:[#allocation22_spill] sm:$0xff] }
 0x45c   : > { %2018 = vmatmul.bf16.vlgmr.msra.gmra.mxu3 %v6837_v36 }
 0x499   : > { %v1820_v6 = vpop.f32.mrf.mxu1 }
 0x49a   : > { %v1821_v20 = vadd.f32 %v1820_v6, %v8930_v9  ;;  %v6946_v6 = vor.u32 %v5162_v25, %v4555_v50  ;;  %v5150_v50 = vld [vmem:[%s8504_s6 + $0x4] sm:$0xf0] }
 0x49c   : > { %9017 = vst [vmem:[#allocation41_spill] sm:$0xff] %v6946_v6 }
 0x49f   : > { %v1834_v13 = vpop.f32.mrf.mxu3 }
 0x4a0   : > { %v1835_v35 = vadd.f32 %v1834_v13, %v8929_v42  ;;  %v4557_v13 = vld [vmem:[%s8504_s6 + $0x68] sm:$0xf0] }
 0x4a1   : > { %v1822_v62 = vpop.f32.mrf.mxu1 }
 0x4a2   : > { %v1823_v4 = vadd.f32 %v1822_v62, %v8930_v9  ;;  %v8990_v9 = vld [vmem:[#allocation39_spill] sm:$0xff]  ;;  %v6951_v62 = vor.u32 %v5161_v39, %v4557_v13  ;;  %v4509_v39 = vld [vmem:[%s8504_s6 + $0x8] sm:$0xf0]  ;;  %v4932_v13 = vld [vmem:[%s8506_s8 + $0x2d0] sm:$0xf] }
 0x4a4   : > { %v1839_v41 = vpack.c.bf16 %v1823_v4, %v1821_v20  ;;  %9018 = vst [vmem:[#allocation60_spill] sm:$0xff] %v6951_v62  ;;  %v5160_v4 = vld [vmem:[%s8504_s6 + $0x54] sm:$0xf0] }
 0x4a7   : > { %v1836_v2 = vpop.f32.mrf.mxu3 }
 0x4a8   : > { %v1837_v47 = vadd.f32 %v1836_v2, %v8929_v42  ;;  %v8987_v42 = vld [vmem:[#allocation32_spill] sm:$0xff] }
 0x4aa   : > { %v1840_v19 = vpack.c.bf16 %v1837_v47, %v1835_v35  ;;  %v4547_v47 = vld [vmem:[%s8504_s6 + $0x50] sm:$0xf] }
 0x4ab   : > { %v6966_v20 = vor.u32 %v5160_v4, %v4547_v47 }
 0x4ac   : > { %1847 = vmatpush.bf16.msrb.mxu2 %v1840_v19  ;;  %v5159_v19 = vld [vmem:[%s8504_s6 + $0x54] sm:$0xf] }
 0x4ad   : > { %9019 = vst [vmem:[#allocation42_spill] sm:$0xff] %v6966_v20 }
 0x4af   : > { %v6931_v22 = vpop.f32.mrf.mxu3 }
 0x4b0   : > { %1848 = vmatpush.bf16.msrb.mxu2 %v1839_v41  ;;  %v4549_v41 = vld [vmem:[%s8504_s6 + $0x58] sm:$0xf0] }
 0x4b3   : > { %4500 = vmatmul.msk.bf16.vlgmr.msrb.gmra.mxu2 %vm728_vm0, %v6754_v49  ;;  %v8991_v49 = vld [vmem:[#allocation51_spill] sm:$0xff] }
 0x4b4   : > { %1870 = vmatpush.bf16.msra.mxu2 %v8983_v44  ;;  %v6971_v44 = vor.u32 %v5159_v19, %v4549_v41 }
 0x4b6   : > { %9020 = vst [vmem:[#allocation62_spill] sm:$0xff] %v6971_v44 }
 0x4b8   : > { %1871 = vmatpush.bf16.msra.mxu2 %v8984_v52  ;;  %v6974_v52 = vpop.f32.mrf.mxu3 }
 0x4bc   : > { %1872 = vmatpush.bf16.msra.mxu2 %v8985_v0 }
 0x4c0   : > { %1873 = vmatpush.bf16.msra.mxu2 %v8986_v53  ;;  %v4539_v53 = vld [vmem:[%s8504_s6 + $0x40] sm:$0xf] }
 0x4c4   : > { %1874 = vmatpush.bf16.msra.mxu2 %v8987_v42  ;;  %v5158_v42 = vld [vmem:[%s8504_s6 + $0x44] sm:$0xf0] }
 0x4c8   : > { %1875 = vmatpush.bf16.msra.mxu2 %v8988_v3  ;;  %v5157_v3 = vld [vmem:[%s8504_s6 + $0x44] sm:$0xf] }
 0x4cc   : > { %1876 = vmatpush.bf16.msra.mxu2 %v8989_v11  ;;  %v6988_v11 = vor.u32 %v5158_v42, %v4539_v53  ;;  %v5255_v42 = vld [vmem:[%s8506_s8 + $0x2d4] sm:$0xf] }
 0x4ce   : > { %9021 = vst [vmem:[#allocation43_spill] sm:$0xff] %v6988_v11 }
 0x4d0   : > { %1877 = vmatpush.bf16.msra.mxu2 %v8990_v9  ;;  %v4541_v9 = vld [vmem:[%s8504_s6 + $0x48] sm:$0xf0] }
 0x4d3   : > { %1878 = vmatmul.bf16.vlgmr.msra.gmra.mxu2 %v6837_v36 }
 0x4d4   : > { %1926 = vmatpush.bf16.msrb.mxu2 %v8904_v31  ;;  %v8992_v31 = vld [vmem:[#allocation54_spill] sm:$0xff] }
 0x4d8   : > { %1927 = vmatpush.bf16.msrb.mxu2 %v8906_v59  ;;  %v8994_v59 = vld [vmem:[#allocation59_spill] sm:$0xff] }
 0x4dc   : > { %1928 = vmatpush.bf16.msrb.mxu2 %v8908_v27  ;;  %v8995_v27 = vld [vmem:[#allocation61_spill] sm:$0xff] }
 0x4e0   : > { %1929 = vmatpush.bf16.msrb.mxu2 %v8910_v45  ;;  %v8996_v45 = vld [vmem:[#allocation63_spill] sm:$0xff] }
 0x4e4   : > { %1930 = vmatpush.bf16.msrb.mxu2 %v8912_v23  ;;  %v8997_v23 = vld [vmem:[#allocation65_spill] sm:$0xff] }
 0x4e8   : > { %1931 = vmatpush.bf16.msrb.mxu2 %v8914_v34  ;;  %v8998_v34 = vld [vmem:[#allocation67_spill] sm:$0xff] }
 0x4ec   : > { %1932 = vmatpush.bf16.msrb.mxu2 %v8916_v17 }
 0x4f0   : > { %1933 = vmatpush.bf16.msrb.mxu2 %v8918_v54 }
 0x4f3   : > { %1934 = vmatmul.bf16.vlgmr.msrb.gmra.mxu2 %v6837_v36 }
 0x4f4   : > { %1982 = vmatpush.bf16.msra.mxu2 %v8991_v49  ;;  %v6993_v49 = vor.u32 %v5157_v3, %v4541_v9  ;;  %v4934_v3 = vld [vmem:[%s8506_s8 + $0x2e8] sm:$0xf0] }
 0x4f6   : > { %9022 = vst [vmem:[#allocation64_spill] sm:$0xff] %v6993_v49 }
 0x4f8   : > { %1983 = vmatpush.bf16.msra.mxu2 %v8992_v31 }
 0x4fc   : > { %1984 = vmatpush.bf16.msra.mxu2 %v8993_v60 }
 0x500   : > { %1985 = vmatpush.bf16.msra.mxu2 %v8994_v59  ;;  %v4531_v59 = vld [vmem:[%s8504_s6 + $0x30] sm:$0xf] }
 0x504   : > { %1986 = vmatpush.bf16.msra.mxu2 %v8995_v27  ;;  %v5156_v27 = vld [vmem:[%s8504_s6 + $0x34] sm:$0xf0] }
 0x508   : > { %1987 = vmatpush.bf16.msra.mxu2 %v8996_v45  ;;  %v5155_v45 = vld [vmem:[%s8504_s6 + $0x34] sm:$0xf] }
 0x50c   : > { %1988 = vmatpush.bf16.msra.mxu2 %v8997_v23  ;;  %v7008_v23 = vor.u32 %v5156_v27, %v4531_v59  ;;  %v7095_v27 = vor.u32 %v5255_v42, %v4934_v3 }
 0x50e   : > { %9023 = vst [vmem:[#allocation44_spill] sm:$0xff] %v7008_v23 }
 0x50f   : > { %9032 = vst [vmem:[#allocation16_spill] sm:$0xff] %v7095_v27 }
 0x510   : > { %1989 = vmatpush.bf16.msra.mxu2 %v8998_v34  ;;  %v4533_v34 = vld [vmem:[%s8504_s6 + $0x38] sm:$0xf0] }
 0x513   : > { %1990 = vmatmul.bf16.vlgmr.msra.gmra.mxu2 %v6837_v36  ;;  %v5163_v36 = vld [vmem:[%s8504_s6 + $0x74] sm:$0xf] }
 0x514   : > { %v6933_v5 = vor.u32 %v5163_v36, %v4565_v51  ;;  %v4507_v51 = vld [vmem:[%s8504_s6] sm:$0xf] }
 0x515   : > { %v7068_v25 = vor.u32 %v5150_v50, %v4507_v51 }
 0x516   : > { %9016 = vst [vmem:[#allocation58_spill] sm:$0xff] %v6933_v5  ;;  %2334 = vmatpush.bf16.msrb.mxu2 %v6933_v5 }
 0x517   : > { %9029 = vst [vmem:[#allocation49_spill] sm:$0xff] %v7068_v25 }
 0x51a   : > { %2335 = vmatpush.bf16.msrb.mxu2 %v6951_v62 }
 0x51e   : > { %2336 = vmatpush.bf16.msrb.mxu2 %v6971_v44 }
 0x522   : > { %2337 = vmatpush.bf16.msrb.mxu2 %v6993_v49 }
 0x536   : > { %v1850_v17 = vpop.f32.mrf.mxu2 }
 0x53e   : > { %v1852_v54 = vpop.f32.mrf.mxu2 }
 0x53f   : > { %v1855_v57 = vpack.c.bf16 %v1852_v54, %v1850_v17  ;;  %v7013_v17 = vor.u32 %v5155_v45, %v4533_v34  ;;  %v4908_v45 = vld [vmem:[%s8506_s8 + $0x2a0] sm:$0xf]  ;;  %v5252_v34 = vld [vmem:[%s8506_s8 + $0x2b4] sm:$0xf0] }
 0x541   : > { %1864 = vmatmul.bf16.vlgmr.msrb.gmra.mxu0 %v1855_v57  ;;  %1892 = vmatmul.bf16.vlgmr.msra.gmra.mxu1 %v1855_v57  ;;  %9024 = vst [vmem:[#allocation66_spill] sm:$0xff] %v7013_v17 }
 0x542   : > { %1968 = vmatpush.bf16.msrb.mxu0 %v8999_v7  ;;  %1996 = vmatpush.bf16.msra.mxu1 %v9000_v15  ;;  %v5154_v7 = vld [vmem:[%s8504_s6 + $0x24] sm:$0xf0]  ;;  %v5153_v15 = vld [vmem:[%s8504_s6 + $0x24] sm:$0xf] }
 0x543   : > { %2338 = vmatpush.bf16.msrb.mxu2 %v7013_v17 }
 0x546   : > { %1969 = vmatpush.bf16.msrb.mxu0 %v9001_v18  ;;  %1997 = vmatpush.bf16.msra.mxu1 %v9002_v24  ;;  %v4525_v24 = vld [vmem:[%s8504_s6 + $0x28] sm:$0xf0] }
 0x54a   : > { %1970 = vmatpush.bf16.msrb.mxu0 %v9003_v30  ;;  %1998 = vmatpush.bf16.msra.mxu1 %v9004_v14  ;;  %v1963_v30 = vpop.f32.mrf.mxu3 }
 0x54e   : > { %1971 = vmatpush.bf16.msrb.mxu0 %v9005_v40  ;;  %1999 = vmatpush.bf16.msra.mxu1 %v9006_v21  ;;  %v7034_v40 = vor.u32 %v5153_v15, %v4525_v24  ;;  %v7111_v15 = vor.u32 %v5252_v34, %v4908_v45  ;;  %v4910_v24 = vld [vmem:[%s8506_s8 + $0x2b8] sm:$0xf0] }
 0x550   : > { %9026 = vst [vmem:[#allocation68_spill] sm:$0xff] %v7034_v40  ;;  %2339 = vmatpush.bf16.msrb.mxu2 %v7034_v40 }
 0x551   : > { %1920 = vmatmul.bf16.vlgmr.msra.gmra.mxu0 %v1855_v57  ;;  %1948 = vmatmul.bf16.vlgmr.msrb.gmra.mxu1 %v1855_v57  ;;  %9033 = vst [vmem:[#allocation18_spill] sm:$0xff] %v7111_v15 }
 0x552   : > { %1972 = vmatpush.bf16.msrb.mxu0 %v9007_v46  ;;  %2000 = vmatpush.bf16.msra.mxu1 %v9008_v56 }
 0x556   : > { %1973 = vmatpush.bf16.msrb.mxu0 %v9009_v38  ;;  %2001 = vmatpush.bf16.msra.mxu1 %v9010_v26  ;;  %v1879_v29 = vpop.f32.mrf.mxu2  ;;  %v4515_v38 = vld [vmem:[%s8504_s6 + $0x10] sm:$0xf]  ;;  %v5152_v26 = vld [vmem:[%s8504_s6 + $0x14] sm:$0xf0] }
 0x55a   : > { %1974 = vmatpush.bf16.msrb.mxu0 %v9011_v43  ;;  %2002 = vmatpush.bf16.msra.mxu1 %v9012_v16  ;;  %v5151_v43 = vld [vmem:[%s8504_s6 + $0x14] sm:$0xf]  ;;  %v7050_v16 = vor.u32 %v5152_v26, %v4515_v38 }
 0x55c   : > { %9027 = vst [vmem:[#allocation46_spill] sm:$0xff] %v7050_v16 }
 0x55e   : > { %1975 = vmatpush.bf16.msrb.mxu0 %v9013_v32  ;;  %2003 = vmatpush.bf16.msra.mxu1 %v9014_v61  ;;  %v6976_v0 = vpop.f32.mrf.mxu2  ;;  %v4517_v32 = vld [vmem:[%s8504_s6 + $0x18] sm:$0xf0] }
 0x55f   : > { %v7055_v48 = vor.u32 %v5151_v43, %v4517_v32 }
 0x561   : > { %1976 = vmatmul.bf16.vlgmr.msrb.gmra.mxu0 %v1855_v57  ;;  %2004 = vmatmul.bf16.vlgmr.msra.gmra.mxu1 %v1855_v57  ;;  %v4523_v57 = vld [vmem:[%s8504_s6 + $0x20] sm:$0xf]  ;;  %9028 = vst [vmem:[#allocation69_spill] sm:$0xff] %v7055_v48 }
 0x562   : > { %2320 = vmatpush.bf16.msra.mxu0 %v6926_v58  ;;  %v7028_v18 = vor.u32 %v5154_v7, %v4523_v57  ;;  %2340 = vmatpush.bf16.msrb.mxu2 %v7055_v48  ;;  %v5249_v57 = vld [vmem:[%s8506_s8 + $0x2a4] sm:$0xf] }
 0x564   : > { %9025 = vst [vmem:[#allocation45_spill] sm:$0xff] %v7028_v18 }
 0x566   : > { %2321 = vmatpush.bf16.msra.mxu0 %v6946_v6 }
 0x56a   : > { %2322 = vmatpush.bf16.msra.mxu0 %v6966_v20 }
 0x56e   : > { %2323 = vmatpush.bf16.msra.mxu0 %v6988_v11 }
 0x572   : > { %2324 = vmatpush.bf16.msra.mxu0 %v7008_v23 }
 0x576   : > { %v7016_v54 = vpop.f32.mrf.mxu2  ;;  %2325 = vmatpush.bf16.msra.mxu0 %v7028_v18 }
 0x57a   : > { %2326 = vmatpush.bf16.msra.mxu0 %v7050_v16 }
 0x57e   : > { %v7079_v47 = vpop.f32.mrf.mxu2  ;;  %2327 = vmatpush.bf16.msra.mxu0 %v7068_v25 }
 0x5be   : > { %v1865_v2 = vpop.f32.mrf.mxu0  ;;  %v6953_v35 = vpop.f32.mrf.mxu1 }
 0x5bf   : > { %v1866_v14 = vadd.f32 %v1865_v2, %v8971_v37  ;;  %v5258_v2 = vld [vmem:[%s8506_s8 + $0x2e4] sm:$0xf0]  ;;  %v1894_v26 = vadd.f32 %v6953_v35, %v8973_v1  ;;  %v4860_v35 = vld [vmem:[%s8506_s8 + $0x240] sm:$0xf] }
 0x5c0   : > { %v7084_v53 = vor.u32 %v5258_v2, %v4932_v13  ;;  %v5240_v2 = vld [vmem:[%s8506_s8 + $0x254] sm:$0xf0] }
 0x5c1   : > { %v1880_v61 = vadd.f32 %v1879_v29, %v1866_v14  ;;  %v5149_v29 = vld [vmem:[%s8504_s6 + $0x4] sm:$0xf]  ;;  %v7157_v42 = vor.u32 %v5240_v2, %v4860_v35  ;;  %v4814_v35 = vld [vmem:[%s8506_s8 + $0x1f8] sm:$0xf0] }
 0x5c2   : > { %v7082_v41 = vor.u32 %v5149_v29, %v4509_v39  ;;  %9031 = vst [vmem:[#allocation26_spill] sm:$0xff] %v7084_v53  ;;  %2872 = vmatpush.bf16.msrb.mxu0 %v7084_v53  ;;  %v1908_v39 = vadd.f32 %v6931_v22, %v1894_v26  ;;  %v4836_v22 = vld [vmem:[%s8506_s8 + $0x210] sm:$0xf]  ;;  %v5228_v26 = vld [vmem:[%s8506_s8 + $0x1f4] sm:$0xf0] }
 0x5c3   : > { %9037 = vst [vmem:[#allocation15_spill] sm:$0xff] %v7157_v42 }
 0x5c4   : > { %9030 = vst [vmem:[#allocation4_spill] sm:$0xff] %v7082_v41  ;;  %2341 = vmatpush.bf16.msrb.mxu2 %v7082_v41 }
 0x5c6   : > { %v1867_v31 = vpop.f32.mrf.mxu0  ;;  %v6995_v60 = vpop.f32.mrf.mxu1  ;;  %2873 = vmatpush.bf16.msrb.mxu0 %v7111_v15 }
 0x5c7   : > { %v1868_v4 = vadd.f32 %v1867_v31, %v8971_v37  ;;  %v1965_v31 = vpop.f32.mrf.mxu3  ;;  %v1896_v34 = vadd.f32 %v6995_v60, %v8973_v1 }
 0x5c8   : > { %2900 = vmatpush.bf16.msra.mxu2 %v7095_v27 }
 0x5ce   : > { %v7036_v21 = vpop.f32.mrf.mxu0  ;;  %v1949_v46 = vpop.f32.mrf.mxu1 }
 0x5cf   : > { %v1950_v56 = vadd.f32 %v1949_v46, %v8972_v33  ;;  %v4884_v46 = vld [vmem:[%s8506_s8 + $0x270] sm:$0xf] }
 0x5d1   : > { %v1964_v10 = vadd.f32 %v1963_v30, %v1950_v56  ;;  %v7116_v30 = vor.u32 %v5249_v57, %v4910_v24  ;;  %v5243_v56 = vld [vmem:[%s8506_s8 + $0x274] sm:$0xf] }
 0x5d3   : > { %v2024_v36 = vadd.f32 %v1964_v10, %v1880_v61  ;;  %9034 = vst [vmem:[#allocation12_spill] sm:$0xff] %v7116_v30  ;;  %2901 = vmatpush.bf16.msra.mxu2 %v7116_v30  ;;  %v4886_v61 = vld [vmem:[%s8506_s8 + $0x288] sm:$0xf0]  ;;  %v1991_v10 = vpop.f32.mrf.mxu2 }
 0x5d4   : > { %v7138_v50 = vor.u32 %v5243_v56, %v4886_v61 }
 0x5d5   : > { %v4501_v19 = vmul.f32 -1.442695, %v2024_v36 }
 0x5d6   : > { %v7092_v9 = vpop.f32.mrf.mxu0  ;;  %v1951_v59 = vpop.f32.mrf.mxu1  ;;  %9036 = vst [vmem:[#allocation14_spill] sm:$0xff] %v7138_v50 }
 0x5d7   : > { %5328 = vpow2.f32 %v4501_v19  ;;  %v1952_v37 = vadd.f32 %v1951_v59, %v8972_v33  ;;  %v1882_v33 = vadd.f32 %v6976_v0, %v1868_v4  ;;  %v5246_v0 = vld [vmem:[%s8506_s8 + $0x284] sm:$0xf0]  ;;  %2902 = vmatpush.bf16.msra.mxu2 %v7138_v50  ;;  %v5237_v4 = vld [vmem:[%s8506_s8 + $0x244] sm:$0xf]  ;;  %v4862_v19 = vld [vmem:[%s8506_s8 + $0x258] sm:$0xf0] }
 0x5d8   : > { %v7131_v32 = vor.u32 %v5246_v0, %v4884_v46  ;;  %v7159_v3 = vor.u32 %v5237_v4, %v4862_v19  ;;  %v5222_v4 = vld [vmem:[%s8506_s8 + $0x1c4] sm:$0xf0]  ;;  %v5219_v19 = vld [vmem:[%s8506_s8 + $0x1b4] sm:$0xf] }
 0x5d9   : > { %v1966_v7 = vadd.f32 %v1965_v31, %v1952_v37  ;;  %v5234_v37 = vld [vmem:[%s8506_s8 + $0x224] sm:$0xf0]  ;;  %v5231_v31 = vld [vmem:[%s8506_s8 + $0x214] sm:$0xf] }
 0x5da   : > { %9035 = vst [vmem:[#allocation13_spill] sm:$0xff] %v7131_v32  ;;  %2874 = vmatpush.bf16.msrb.mxu0 %v7131_v32  ;;  %v5175_v32 = vld [vmem:[%s8506_s8 + $0x4c] sm:$0xf0] }
 0x5db   : > { %v2025_v14 = vadd.f32 %v1966_v7, %v1882_v33  ;;  %9038 = vst [vmem:[#allocation17_spill] sm:$0xff] %v7159_v3  ;;  %2903 = vmatpush.bf16.msra.mxu2 %v7159_v3  ;;  %v7174_v33 = vor.u32 %v5234_v37, %v4836_v22  ;;  %v4838_v7 = vld [vmem:[%s8506_s8 + $0x228] sm:$0xf0]  ;;  %v1993_v60 = vpop.f32.mrf.mxu2 }
 0x5dc   : > { %v7183_v0 = vor.u32 %v5231_v31, %v4838_v7 }
 0x5dd   : > { %v5329_v38 = vpop.eup %5328  ;;  %v4502_v43 = vmul.f32 -1.442695, %v2025_v14  ;;  %9039 = vst [vmem:[#allocation19_spill] sm:$0xff] %v7174_v33 }
 0x5de   : > { %v7136_v36 = vadd.f32 1.0, %v5329_v38  ;;  %v1977_v51 = vpop.f32.mrf.mxu0  ;;  %2875 = vmatpush.bf16.msrb.mxu0 %v7157_v42  ;;  %9040 = vst [vmem:[#allocation21_spill] sm:$0xff] %v7183_v0  ;;  %v4812_v38 = vld [vmem:[%s8506_s8 + $0x1e0] sm:$0xf]  ;;  %v2005_v61 = vpop.f32.mrf.mxu1  ;;  %v4604_v42 = vld [vmem:[%s8506_s8 + $0x38] sm:$0xf] }
 0x5df   : > { %5330 = vpow2.f32 %v4502_v43  ;;  %v1978_v29 = vadd.f32 %v1977_v51, %v8974_v28  ;;  %2904 = vmatpush.bf16.msra.mxu2 %v7183_v0  ;;  %v1910_v43 = vadd.f32 %v6974_v52, %v1896_v34  ;;  %v7198_v51 = vor.u32 %v5228_v26, %v4812_v38  ;;  %v4788_v52 = vld [vmem:[%s8506_s8 + $0x1b0] sm:$0xf]  ;;  %v4764_v38 = vld [vmem:[%s8506_s8 + $0x180] sm:$0xf]  ;;  %v5216_v26 = vld [vmem:[%s8506_s8 + $0x194] sm:$0xf0] }
 0x5e0   : > { %5332 = vrcp.f32 %v7136_v36  ;;  %v2045_v22 = vand.u32 2147483648, %v7136_v36  ;;  %v7221_v31 = vor.u32 %v5222_v4, %v4788_v52  ;;  %vm2039_vm4 = vweird.f32 %v7136_v36 }
 0x5e1   : > { %v1992_v13 = vadd.f32 %v1991_v10, %v1978_v29  ;;  %9041 = vst [vmem:[#allocation23_spill] sm:$0xff] %v7198_v51  ;;  %v5225_v29 = vld [vmem:[%s8506_s8 + $0x1e4] sm:$0xf] }
 0x5e2   : > { %2876 = vmatpush.bf16.msrb.mxu0 %v7174_v33  ;;  %9043 = vst [vmem:[#allocation28_spill] sm:$0xff] %v7221_v31  ;;  %v5184_v33 = vld [vmem:[%s8506_s8 + $0x9c] sm:$0xf] }
 0x5e3   : > { %v2064_v59 = vadd.f32 %v1992_v13, %v1908_v39  ;;  %v7206_v39 = vor.u32 %v5225_v29, %v4814_v35  ;;  %v2006_v29 = vadd.f32 %v2005_v61, %v6665_v63 }
 0x5e5   : > { %v5331_v45 = vpop.eup %5330  ;;  %v4503_v57 = vmul.f32 -1.442695, %v2064_v59  ;;  %9042 = vst [vmem:[#allocation25_spill] sm:$0xff] %v7206_v39  ;;  %2905 = vmatpush.bf16.msra.mxu2 %v7206_v39 }
 0x5e6   : > { %v7179_v24 = vpop.eup %5332  ;;  %v7181_v14 = vadd.f32 1.0, %v5331_v45  ;;  %v1979_v46 = vpop.f32.mrf.mxu0  ;;  %2877 = vmatpush.bf16.msrb.mxu0 %v7198_v51  ;;  %v4790_v45 = vld [vmem:[%s8506_s8 + $0x1c8] sm:$0xf0]  ;;  %v5187_v51 = vld [vmem:[%s8506_s8 + $0xac] sm:$0xf0] }
 0x5e7   : > { %5334 = vpow2.f32 %v4503_v57  ;;  %v2035_v56 = vmul.f32 %v7179_v24, %v7136_v36  ;;  %v1980_v1 = vadd.f32 %v1979_v46, %v8974_v28  ;;  %vm2040_vm3 = vweird.f32 %v7179_v24  ;;  %v2007_v52 = vpop.f32.mrf.mxu1 }
 0x5e8   : > { %5336 = vrcp.f32 %v7181_v14  ;;  %v7230_v46 = vor.u32 %v5219_v19, %v4790_v45  ;;  %vm7244_vm5 = vmor %vm2039_vm4, %vm2040_vm3  ;;  %v2060_v19 = vand.u32 2147483648, %v7181_v14  ;;  %vm2054_vm8 = vweird.f32 %v7181_v14 }
 0x5e9   : > { %v2036_v10 = vsub.f32 1.0, %v2035_v56  ;;  %v1994_v28 = vadd.f32 %v1993_v60, %v1980_v1  ;;  %v2019_v56 = vpop.f32.mrf.mxu3  ;;  %v2043_v60 = vand.u32 2147483647, %v7136_v36  ;;  %v5213_v36 = vld [vmem:[%s8506_s8 + $0x184] sm:$0xf] }
 0x5ea   : > { %9044 = vst [vmem:[#allocation31_spill] sm:$0xff] %v7230_v46  ;;  %2878 = vmatpush.bf16.msrb.mxu0 %v7221_v31  ;;  %2906 = vmatpush.bf16.msra.mxu2 %v7230_v46  ;;  %v5190_v31 = vld [vmem:[%s8506_s8 + $0xcc] sm:$0xf] }
 0x5eb   : > { %v2037_v13 = vmul.f32 %v7179_v24, %v2036_v10  ;;  %v2065_v2 = vadd.f32 %v1994_v28, %v1910_v43  ;;  %v7248_v28 = vor.u32 %v5216_v26, %v4764_v38  ;;  %vm2044_vm7 = vcmp.eq.f32.partialorder %v2043_v60, 8.507059e+37 }
 0x5ec   : > { %v2008_v26 = vadd.f32 %v2007_v52, %v6665_v63 }
 0x5ed   : > { %v5335_v59 = vpop.eup %5334  ;;  %v4504_v37 = vmul.f32 -1.442695, %v2065_v2  ;;  %v2038_v7 = vadd.f32 %v7179_v24, %v2037_v13  ;;  %9047 = vst [vmem:[#allocation34_spill] sm:$0xff] %v7248_v28  ;;  %v2046_v13 = vor.u32 1.1754944e-38, %v2045_v22  ;;  %v4766_v2 = vld [vmem:[%s8506_s8 + $0x198] sm:$0xf0] }
 0x5ee   : > { %v5337_v34 = vpop.eup %5336  ;;  %v7226_v57 = vadd.f32 1.0, %v5335_v59  ;;  %v7261_v59 = vor.u32 %v5213_v36, %v4766_v2  ;;  %2879 = vmatpush.bf16.msrb.mxu0 %v7248_v28  ;;  %v5205_v28 = vld [vmem:[%s8506_s8 + $0x13c] sm:$0xf0] }
 0x5ef   : > { %5338 = vpow2.f32 %v4504_v37  ;;  %v2050_v1 = vmul.f32 %v5337_v34, %v7181_v14  ;;  %v2042_v35 = vsel %vm7244_vm5, %v7179_v24, %v2038_v7  ;;  %vm2055_vm6 = vweird.f32 %v5337_v34 }
 0x5f0   : > { %5340 = vrcp.f32 %v7226_v57  ;;  %9048 = vst [vmem:[#allocation37_spill] sm:$0xff] %v7261_v59  ;;  %v2058_v37 = vand.u32 2147483647, %v7181_v14  ;;  %v2047_v45 = vsel %vm2044_vm7, %v2046_v13, %v2042_v35  ;;  %2907 = vmatpush.bf16.msra.mxu2 %v7261_v59  ;;  %v1922_v7 = vadd.f32 %v7036_v21, %v6668_v8  ;;  %vm2056_vm9 = vmor %vm2054_vm8, %vm2055_vm6 }
 0x5f1   : > { %v2051_v10 = vsub.f32 1.0, %v2050_v1  ;;  %v2020_v1 = vadd.f32 %v2019_v56, %v2006_v29  ;;  %v2021_v14 = vpop.f32.mrf.mxu3  ;;  %v1924_v21 = vadd.f32 %v7092_v9, %v6668_v8  ;;  %v2085_v56 = vand.u32 2147483648, %v7226_v57 }
 0x5f2   : > { %vm2059_vm10 = vcmp.eq.f32.partialorder %v2058_v37, 8.507059e+37  ;;  %v1936_v2 = vadd.f32 %v7016_v54, %v1922_v7  ;;  %v2022_v63 = vadd.f32 %v2021_v14, %v2008_v26  ;;  %v2083_v52 = vand.u32 2147483647, %v7226_v57 }
 0x5f3   : > { %v2052_v4 = vmul.f32 %v5337_v34, %v2051_v10  ;;  %v2061_v10 = vor.u32 1.1754944e-38, %v2060_v19  ;;  %v2104_v36 = vmul.f32 %v2047_v45, %v2020_v1  ;;  %vm2079_vm12 = vweird.f32 %v7226_v57 }
 0x5f4   : > { %v2086_v54 = vor.u32 1.1754944e-38, %v2085_v56  ;;  %vm2084_vm14 = vcmp.eq.f32.partialorder %v2083_v52, 8.507059e+37  ;;  %v5259_v52 = vld [vmem:[%s8506_s8 + $0x2ec] sm:$0xf0] }
 0x5f5   : > { %v5339_v61 = vpop.eup %5338  ;;  %v2053_v24 = vadd.f32 %v5337_v34, %v2052_v4 }
 0x5f6   : > { %v5341_v22 = vpop.eup %5340  ;;  %v2073_v38 = vadd.f32 1.0, %v5339_v61  ;;  %v1938_v61 = vadd.f32 %v7079_v47, %v1924_v21 }
 0x5f7   : > { %v2075_v60 = vmul.f32 %v5341_v22, %v7226_v57  ;;  %v2057_v43 = vsel %vm2056_vm9, %v5337_v34, %v2053_v24  ;;  %vm2080_vm11 = vweird.f32 %v5341_v22  ;;  %v2106_v34 = vadd.f32 %v2104_v36, %v1936_v2 }
 0x5f8   : > { %5342 = vrcp.f32 %v2073_v38  ;;  %v2062_v13 = vsel %vm2059_vm10, %v2061_v10, %v2057_v43  ;;  %vm2081_vm13 = vmor %vm2079_vm12, %vm2080_vm11  ;;  %v2100_v1 = vand.u32 2147483648, %v2073_v38  ;;  %v2098_v43 = vand.u32 2147483647, %v2073_v38 }
 0x5f9   : > { %v2076_v35 = vsub.f32 1.0, %v2075_v60  ;;  %v2105_v4 = vmul.f32 %v2062_v13, %v2022_v63  ;;  %5344 = vtanh.f32 %v2106_v34  ;;  %vm2094_vm1 = vweird.f32 %v2073_v38  ;;  %v4942_v34 = vld [vmem:[%s8506_s8 + $0x2f0] sm:$0xf0] }
 0x5fa   : > { %v2101_v47 = vor.u32 1.1754944e-38, %v2100_v1  ;;  %vm2099_vm3 = vcmp.eq.f32.partialorder %v2098_v43, 8.507059e+37  ;;  %v4892_v1 = vld [vmem:[%s8506_s8 + $0x278] sm:$0xf]  ;;  %v4894_v43 = vld [vmem:[%s8506_s8 + $0x290] sm:$0xf0] }
 0x5fb   : > { %v2077_v29 = vmul.f32 %v5341_v22, %v2076_v35  ;;  %v2107_v24 = vadd.f32 %v2105_v4, %v1938_v61  ;;  %v4916_v61 = vld [vmem:[%s8506_s8 + $0x2a8] sm:$0xf] }
 0x5fd   : > { %v2078_v19 = vadd.f32 %v5341_v22, %v2077_v29  ;;  %5346 = vtanh.f32 %v2107_v24 }
 0x5fe   : > { %v5343_v37 = vpop.eup %5342 }
 0x5ff   : > { %v2082_v45 = vsel %vm2081_vm13, %v5341_v22, %v2078_v19  ;;  %v2090_v8 = vmul.f32 %v5343_v37, %v2073_v38  ;;  %vm2095_vm15 = vweird.f32 %v5343_v37  ;;  %v5345_v10 = vpop.eup %5344  ;;  %v4940_v38 = vld [vmem:[%s8506_s8 + $0x2d8] sm:$0xf] }
 0x600   : > { %v2087_v9 = vsel %vm2084_vm14, %v2086_v54, %v2082_v45  ;;  %vm2096_vm2 = vmor %vm2094_vm1, %vm2095_vm15  ;;  %v7299_v19 = vor.u32 %v5259_v52, %v4940_v38  ;;  %v5253_v45 = vld [vmem:[%s8506_s8 + $0x2bc] sm:$0xf0]  ;;  %v4846_v38 = vld [vmem:[%s8506_s8 + $0x230] sm:$0xf0] }
 0x601   : > { %v2091_v7 = vsub.f32 1.0, %v2090_v8  ;;  %v2110_v26 = vsub.f32 1.0, %v2087_v9  ;;  %v2114_v35 = vmul.f32 %v2087_v9, %v6831_v12  ;;  %v5256_v12 = vld [vmem:[%s8506_s8 + $0x2dc] sm:$0xf]  ;;  %v5250_v8 = vld [vmem:[%s8506_s8 + $0x2ac] sm:$0xf]  ;;  %v7325_v24 = vor.u32 %v5253_v45, %v4916_v61 }
 0x602   : > { %9049 = vst [vmem:[#allocation48_spill] sm:$0xff] %v7299_v19  ;;  %v4918_v9 = vld [vmem:[%s8506_s8 + $0x2c0] sm:$0xf0]  ;;  %v5229_v61 = vld [vmem:[%s8506_s8 + $0x1fc] sm:$0xf0] }
 0x603   : > { %v2092_v60 = vmul.f32 %v5343_v37, %v2091_v7  ;;  %v2112_v36 = vmul.f32 %v5345_v10, %v2110_v26  ;;  %v5347_v2 = vpop.eup %5346  ;;  %9050 = vst [vmem:[#allocation52_spill] sm:$0xff] %v7325_v24  ;;  %v7327_v7 = vor.u32 %v5250_v8, %v4918_v9  ;;  %v5247_v26 = vld [vmem:[%s8506_s8 + $0x28c] sm:$0xf0]  ;;  %v5226_v45 = vld [vmem:[%s8506_s8 + $0x1ec] sm:$0xf] }
 0x604   : > { %v4822_v8 = vld [vmem:[%s8506_s8 + $0x200] sm:$0xf0] }
 0x605   : > { %v2093_v57 = vadd.f32 %v5343_v37, %v2092_v60  ;;  %v7280_v21 = vadd.f32 %v2114_v35, %v2112_v36  ;;  %v5244_v60 = vld [vmem:[%s8506_s8 + $0x27c] sm:$0xf]  ;;  %v5241_v36 = vld [vmem:[%s8506_s8 + $0x25c] sm:$0xf0] }
 0x606   : > { %v7345_v10 = vor.u32 %v5244_v60, %v4894_v43  ;;  %v5223_v60 = vld [vmem:[%s8506_s8 + $0x1cc] sm:$0xf0]  ;;  %v5220_v43 = vld [vmem:[%s8506_s8 + $0x1bc] sm:$0xf] }
 0x607   : > { %v2097_v14 = vsel %vm2096_vm2, %v5343_v37, %v2093_v57  ;;  %v7301_v37 = vor.u32 %v5256_v12, %v4942_v34  ;;  %v7343_v57 = vor.u32 %v5247_v26, %v4892_v1  ;;  %v4820_v34 = vld [vmem:[%s8506_s8 + $0x1e8] sm:$0xf]  ;;  %v7401_v1 = vor.u32 %v5226_v45, %v4822_v8  ;;  %v4796_v26 = vld [vmem:[%s8506_s8 + $0x1b8] sm:$0xf]  ;;  %v4950_v45 = vld [vmem:[%s8506_s8 + $0x2f8] sm:$0xf0] }
 0x608   : > { %v2102_v22 = vsel %vm2099_vm3, %v2101_v47, %v2097_v14  ;;  %v4868_v47 = vld [vmem:[%s8506_s8 + $0x248] sm:$0xf]  ;;  %v5238_v14 = vld [vmem:[%s8506_s8 + $0x24c] sm:$0xf]  ;;  %v7399_v9 = vor.u32 %v5229_v61, %v4820_v34  ;;  %v5260_v34 = vld [vmem:[%s8506_s8 + $0x2f4] sm:$0xf0] }
 0x609   : > { %v2111_v13 = vsub.f32 1.0, %v2102_v22  ;;  %v2115_v63 = vmul.f32 %v2102_v22, %v6833_v55  ;;  %v8668_v55 = vmax.f32 %v7280_v21, 0.0  ;;  %9051 = vst [vmem:[#allocation55_spill] sm:$0xff] %v7343_v57  ;;  %v4870_v22 = vld [vmem:[%s8506_s8 + $0x260] sm:$0xf0]  ;;  %v7361_v35 = vor.u32 %v5241_v36, %v4868_v47 }
 0x60a   : > { %9054 = vst [vmem:[#allocation6_spill] sm:$0xff] %v7399_v9  ;;  %v4798_v47 = vld [vmem:[%s8506_s8 + $0x1d0] sm:$0xf0]  ;;  %v7417_v36 = vor.u32 %v5223_v60, %v4796_v26  ;;  %v5257_v61 = vld [vmem:[%s8506_s8 + $0x2e4] sm:$0xf] }
 0x60b   : > { %v2113_v56 = vmul.f32 %v5347_v2, %v2111_v13  ;;  %9052 = vst [vmem:[#allocation3_spill] sm:$0xff] %v7361_v35  ;;  %v7363_v13 = vor.u32 %v5238_v14, %v4870_v22  ;;  %v4844_v2 = vld [vmem:[%s8506_s8 + $0x218] sm:$0xf]  ;;  %v7419_v14 = vor.u32 %v5220_v43, %v4798_v47  ;;  %v4772_v22 = vld [vmem:[%s8506_s8 + $0x188] sm:$0xf]  ;;  %v7453_v43 = vor.u32 %v5257_v61, %v4950_v45 }
 0x60c   : > { %9055 = vst [vmem:[#allocation7_spill] sm:$0xff] %v7417_v36  ;;  %v4924_v47 = vld [vmem:[%s8506_s8 + $0x2b0] sm:$0xf]  ;;  %v4902_v61 = vld [vmem:[%s8506_s8 + $0x298] sm:$0xf0] }
 0x60d   : > { %v7286_v29 = vadd.f32 %v2115_v63, %v2113_v56  ;;  %v5235_v56 = vld [vmem:[%s8506_s8 + $0x22c] sm:$0xf0]  ;;  %v5232_v63 = vld [vmem:[%s8506_s8 + $0x21c] sm:$0xf] }
 0x60e   : > { %v7379_v52 = vor.u32 %v5235_v56, %v4844_v2  ;;  %v7381_v12 = vor.u32 %v5232_v63, %v4846_v38  ;;  %v5217_v2 = vld [vmem:[%s8506_s8 + $0x19c] sm:$0xf0]  ;;  %v5214_v56 = vld [vmem:[%s8506_s8 + $0x18c] sm:$0xf]  ;;  %v4774_v63 = vld [vmem:[%s8506_s8 + $0x1a0] sm:$0xf0] }
 0x60f   : > { %v8667_v4 = vmax.f32 %v7286_v29, 0.0  ;;  %v4948_v38 = vld [vmem:[%s8506_s8 + $0x2e0] sm:$0xf]  ;;  %v7447_v8 = vor.u32 %v5217_v2, %v4772_v22  ;;  %v7449_v26 = vor.u32 %v5214_v56, %v4774_v63  ;;  %v4926_v22 = vld [vmem:[%s8506_s8 + $0x2c8] sm:$0xf0] }
 0x610   : > { %9053 = vst [vmem:[#allocation5_spill] sm:$0xff] %v7379_v52  ;;  %v7451_v60 = vor.u32 %v5260_v34, %v4948_v38  ;;  %v4900_v63 = vld [vmem:[%s8506_s8 + $0x280] sm:$0xf]  ;;  %v5248_v38 = vld [vmem:[%s8506_s8 + $0x294] sm:$0xf0] }
 0x611   : > { %v7310_v54 = vpack.c.bf16 %v8667_v4, %v8668_v55  ;;  %9056 = vst [vmem:[#allocation8_spill] sm:$0xff] %v7447_v8  ;;  %v5254_v4 = vld [vmem:[%s8506_s8 + $0x2c4] sm:$0xf0]  ;;  %v5251_v55 = vld [vmem:[%s8506_s8 + $0x2b4] sm:$0xf] }
 0x612   : > { %9057 = vst [vmem:[#allocation9_spill] sm:$0xff] %v7451_v60  ;;  %v7471_v2 = vor.u32 %v5254_v4, %v4924_v47  ;;  %v7473_v56 = vor.u32 %v5251_v55, %v4926_v22  ;;  %v5245_v34 = vld [vmem:[%s8506_s8 + $0x284] sm:$0xf]  ;;  %v7491_v55 = vor.u32 %v5248_v38, %v4900_v63  ;;  %v4876_v45 = vld [vmem:[%s8506_s8 + $0x250] sm:$0xf] }
 0x613   : > { %2328 = vmatmul.bf16.vlgmr.msra.gmra.mxu0 %v7310_v54  ;;  %2342 = vmatmul.bf16.vlgmr.msrb.gmra.mxu2 %v7310_v54  ;;  %v7493_v4 = vor.u32 %v5245_v34, %v4902_v61  ;;  %v5242_v47 = vld [vmem:[%s8506_s8 + $0x264] sm:$0xf0]  ;;  %v5239_v22 = vld [vmem:[%s8506_s8 + $0x254] sm:$0xf]  ;;  %v4852_v34 = vld [vmem:[%s8506_s8 + $0x220] sm:$0xf] }
 0x614   : > { %2928 = vmatpush.bf16.msra.mxu0 %v7299_v19  ;;  %2956 = vmatpush.bf16.msrb.mxu2 %v7301_v37  ;;  %9058 = vst [vmem:[#allocation10_spill] sm:$0xff] %v7471_v2  ;;  %v7509_v63 = vor.u32 %v5242_v47, %v4876_v45  ;;  %v5236_v61 = vld [vmem:[%s8506_s8 + $0x234] sm:$0xf0]  ;;  %v4828_v47 = vld [vmem:[%s8506_s8 + $0x1f0] sm:$0xf] }
 0x615   : > { %9059 = vst [vmem:[#allocation11_spill] sm:$0xff] %v7491_v55  ;;  %v4724_v19 = vld [vmem:[%s8506_s8 + $0x128] sm:$0xf] }
 0x616   : > { %9060 = vst [vmem:[#allocation86_spill] sm:$0xff] %v7509_v63 }
 0x618   : > { %2929 = vmatpush.bf16.msra.mxu0 %v7325_v24  ;;  %2957 = vmatpush.bf16.msrb.mxu2 %v7327_v7 }
 0x61c   : > { %2930 = vmatpush.bf16.msra.mxu0 %v7343_v57  ;;  %2958 = vmatpush.bf16.msrb.mxu2 %v7345_v10 }
 0x620   : > { %2931 = vmatpush.bf16.msra.mxu0 %v7361_v35  ;;  %2959 = vmatpush.bf16.msrb.mxu2 %v7363_v13 }
 0x623   : > { %2880 = vmatmul.bf16.vlgmr.msrb.gmra.mxu0 %v7310_v54  ;;  %2908 = vmatmul.bf16.vlgmr.msra.gmra.mxu2 %v7310_v54 }
 0x624   : > { %2932 = vmatpush.bf16.msra.mxu0 %v7379_v52  ;;  %2960 = vmatpush.bf16.msrb.mxu2 %v7381_v12 }
 0x628   : > { %2933 = vmatpush.bf16.msra.mxu0 %v7399_v9  ;;  %2961 = vmatpush.bf16.msrb.mxu2 %v7401_v1  ;;  %v5215_v9 = vld [vmem:[%s8506_s8 + $0x194] sm:$0xf] }
 0x62c   : > { %2934 = vmatpush.bf16.msra.mxu0 %v7417_v36  ;;  %2962 = vmatpush.bf16.msrb.mxu2 %v7419_v14  ;;  %v5221_v36 = vld [vmem:[%s8506_s8 + $0x1c4] sm:$0xf] }
 0x630   : > { %2935 = vmatpush.bf16.msra.mxu0 %v7447_v8  ;;  %2963 = vmatpush.bf16.msrb.mxu2 %v7449_v26  ;;  %v5227_v8 = vld [vmem:[%s8506_s8 + $0x1f4] sm:$0xf] }
 0x633   : > { %2936 = vmatmul.bf16.vlgmr.msra.gmra.mxu0 %v7310_v54  ;;  %2964 = vmatmul.bf16.vlgmr.msrb.gmra.mxu2 %v7310_v54 }
 0x634   : > { %2984 = vmatpush.bf16.msrb.mxu0 %v7451_v60  ;;  %3012 = vmatpush.bf16.msra.mxu2 %v7453_v43  ;;  %v5233_v60 = vld [vmem:[%s8506_s8 + $0x224] sm:$0xf] }
 0x638   : > { %2985 = vmatpush.bf16.msrb.mxu0 %v7471_v2  ;;  %3013 = vmatpush.bf16.msra.mxu2 %v7473_v56  ;;  %v4878_v2 = vld [vmem:[%s8506_s8 + $0x268] sm:$0xf0] }
 0x639   : > { %v7511_v38 = vor.u32 %v5239_v22, %v4878_v2  ;;  %v7527_v2 = vor.u32 %v5236_v61, %v4852_v34  ;;  %v5230_v22 = vld [vmem:[%s8506_s8 + $0x204] sm:$0xf0]  ;;  %v4804_v34 = vld [vmem:[%s8506_s8 + $0x1c0] sm:$0xf]  ;;  %v5224_v61 = vld [vmem:[%s8506_s8 + $0x1d4] sm:$0xf0] }
 0x63b   : > { %9061 = vst [vmem:[#allocation87_spill] sm:$0xff] %v7527_v2 }
 0x63c   : > { %2986 = vmatpush.bf16.msrb.mxu0 %v7491_v55  ;;  %3014 = vmatpush.bf16.msra.mxu2 %v7493_v4  ;;  %v4854_v55 = vld [vmem:[%s8506_s8 + $0x238] sm:$0xf0] }
 0x63d   : > { %v7529_v45 = vor.u32 %v5233_v60, %v4854_v55  ;;  %v7545_v60 = vor.u32 %v5230_v22, %v4828_v47  ;;  %v4780_v47 = vld [vmem:[%s8506_s8 + $0x190] sm:$0xf]  ;;  %v5218_v22 = vld [vmem:[%s8506_s8 + $0x1a4] sm:$0xf0] }
 0x63f   : > { %9062 = vst [vmem:[#allocation88_spill] sm:$0xff] %v7545_v60 }
 0x640   : > { %2987 = vmatpush.bf16.msrb.mxu0 %v7509_v63  ;;  %3015 = vmatpush.bf16.msra.mxu2 %v7511_v38  ;;  %v4830_v63 = vld [vmem:[%s8506_s8 + $0x208] sm:$0xf0] }
 0x641   : > { %v7547_v55 = vor.u32 %v5227_v8, %v4830_v63  ;;  %v7563_v8 = vor.u32 %v5224_v61, %v4804_v34 }
 0x643   : > { %9063 = vst [vmem:[#allocation89_spill] sm:$0xff] %v7563_v8 }
 0x644   : > { %2988 = vmatpush.bf16.msrb.mxu0 %v7527_v2  ;;  %3016 = vmatpush.bf16.msra.mxu2 %v7529_v45  ;;  %v4806_v2 = vld [vmem:[%s8506_s8 + $0x1d8] sm:$0xf0] }
 0x645   : > { %v7565_v63 = vor.u32 %v5221_v36, %v4806_v2  ;;  %v7581_v36 = vor.u32 %v5218_v22, %v4780_v47 }
 0x647   : > { %9064 = vst [vmem:[#allocation27_spill] sm:$0xff] %v7581_v36 }
 0x648   : > { %2989 = vmatpush.bf16.msrb.mxu0 %v7545_v60  ;;  %3017 = vmatpush.bf16.msra.mxu2 %v7547_v55  ;;  %v4782_v60 = vld [vmem:[%s8506_s8 + $0x1a8] sm:$0xf0] }
 0x649   : > { %v7583_v2 = vor.u32 %v5215_v9, %v4782_v60  ;;  %v2136_v60 = vld [vmem:[%s8505_s7] sm:$0x3] }
 0x64a   : > { %v7608_v34 = vperm.slane %v2136_v60, 1  ;;  %v7610_v22 = vperm.slane %v2136_v60, 0  ;;  %v4740_v60 = vld [vmem:[%s8506_s8 + $0x150] sm:$0xf] }
 0x64c   : > { %2990 = vmatpush.bf16.msrb.mxu0 %v7563_v8  ;;  %3018 = vmatpush.bf16.msra.mxu2 %v7565_v63  ;;  %9065 = vst [vmem:[#allocation30_spill] sm:$0xff] %v7608_v34  ;;  %v4750_v8 = vld [vmem:[%s8506_s8 + $0x170] sm:$0xf0] }
 0x64d   : > { %9066 = vst [vmem:[#allocation33_spill] sm:$0xff] %v7610_v22 }
 0x650   : > { %2991 = vmatpush.bf16.msrb.mxu0 %v7581_v36  ;;  %3019 = vmatpush.bf16.msra.mxu2 %v7583_v2  ;;  %v5165_v36 = vld [vmem:[%s8506_s8 + $0x4] sm:$0xf] }
 0x653   : > { %2992 = vmatmul.bf16.vlgmr.msrb.gmra.mxu0 %v7310_v54  ;;  %3020 = vmatmul.bf16.vlgmr.msra.gmra.mxu2 %v7310_v54 }
 0x654   : > { %3135 = vmatpush.bf16.msra.mxu0 %v6933_v5  ;;  %v5168_v5 = vld [vmem:[%s8506_s8 + $0x14] sm:$0xf0] }
 0x658   : > { %3136 = vmatpush.bf16.msra.mxu0 %v6951_v62  ;;  %v5171_v62 = vld [vmem:[%s8506_s8 + $0x34] sm:$0xf] }
 0x65c   : > { %3137 = vmatpush.bf16.msra.mxu0 %v6971_v44  ;;  %v5174_v44 = vld [vmem:[%s8506_s8 + $0x44] sm:$0xf0] }
 0x660   : > { %3138 = vmatpush.bf16.msra.mxu0 %v6993_v49  ;;  %v5177_v49 = vld [vmem:[%s8506_s8 + $0x64] sm:$0xf] }
 0x664   : > { %3139 = vmatpush.bf16.msra.mxu0 %v7013_v17  ;;  %v5180_v17 = vld [vmem:[%s8506_s8 + $0x74] sm:$0xf0] }
 0x668   : > { %3140 = vmatpush.bf16.msra.mxu0 %v7034_v40  ;;  %v5183_v40 = vld [vmem:[%s8506_s8 + $0x94] sm:$0xf] }
 0x66c   : > { %3141 = vmatpush.bf16.msra.mxu0 %v7055_v48  ;;  %v5186_v48 = vld [vmem:[%s8506_s8 + $0xa4] sm:$0xf0] }
 0x670   : > { %3142 = vmatpush.bf16.msra.mxu0 %v7082_v41  ;;  %v5189_v41 = vld [vmem:[%s8506_s8 + $0xc4] sm:$0xf] }
 0x674   : > { %3208 = vmatpush.bf16.msrb.mxu0 %v7095_v27  ;;  %v5192_v27 = vld [vmem:[%s8506_s8 + $0xd4] sm:$0xf0] }
 0x678   : > { %3209 = vmatpush.bf16.msrb.mxu0 %v7116_v30  ;;  %v7617_v30 = vld [vmem:[%s5833_s25] sm:$0xff] }
 0x679   : > { %9067 = vst [vmem:[#allocation36_spill] sm:$0xff] %v7617_v30 }
 0x67c   : > { %3210 = vmatpush.bf16.msrb.mxu0 %v7138_v50 }
 0x680   : > { %3211 = vmatpush.bf16.msrb.mxu0 %v7159_v3 }
 0x684   : > { %3212 = vmatpush.bf16.msrb.mxu0 %v7183_v0 }
 0x688   : > { %3213 = vmatpush.bf16.msrb.mxu0 %v7206_v39 }
 0x68c   : > { %3214 = vmatpush.bf16.msrb.mxu0 %v7230_v46 }
 0x690   : > { %3215 = vmatpush.bf16.msrb.mxu0 %v7261_v59  ;;  %v2329_v54 = vpop.f32.mrf.mxu0 }
 0x691   : > { %v2330_v3 = vadd.f32 %v2329_v54, %v7610_v22  ;;  %v5201_v54 = vld [vmem:[%s8506_s8 + $0x124] sm:$0xf] }
 0x696   : > { %v2343_v9 = vpop.f32.mrf.mxu2 }
 0x697   : > { %v2344_v0 = vadd.f32 %v2343_v9, %v7608_v34  ;;  %v5210_v9 = vld [vmem:[%s8506_s8 + $0x164] sm:$0xf0] }
 0x698   : > { %v2331_v61 = vpop.f32.mrf.mxu0 }
 0x699   : > { %v2332_v46 = vadd.f32 %v2331_v61, %v7610_v22  ;;  %v4718_v61 = vld [vmem:[%s8506_s8 + $0x138] sm:$0xf0] }
 0x69b   : > { %v2348_v50 = vpack.c.bf16 %v2332_v46, %v2330_v3  ;;  %v4716_v3 = vld [vmem:[%s8506_s8 + $0x120] sm:$0xf]  ;;  %v5204_v46 = vld [vmem:[%s8506_s8 + $0x134] sm:$0xf0] }
 0x69e   : > { %v2345_v47 = vpop.f32.mrf.mxu2 }
 0x69f   : > { %v2346_v39 = vadd.f32 %v2345_v47, %v7608_v34  ;;  %v7650_v47 = vor.u32 %v5204_v46, %v4716_v3  ;;  %v4694_v3 = vld [vmem:[%s8506_s8 + $0x108] sm:$0xf0]  ;;  %v4756_v34 = vld [vmem:[%s8506_s8 + $0x160] sm:$0xf] }
 0x6a1   : > { %v2349_v59 = vpack.c.bf16 %v2346_v39, %v2344_v0  ;;  %v5207_v0 = vld [vmem:[%s8506_s8 + $0x154] sm:$0xf]  ;;  %v7630_v39 = vor.u32 %v5210_v9, %v4740_v60  ;;  %v7654_v60 = vor.u32 %v5201_v54, %v4718_v61  ;;  %v4692_v9 = vld [vmem:[%s8506_s8 + $0xf0] sm:$0xf]  ;;  %v4668_v61 = vld [vmem:[%s8506_s8 + $0xc0] sm:$0xf] }
 0x6a3   : > { %2356 = vmatpush.bf16.msrb.mxu1 %v2349_v59  ;;  %2858 = vmatpush.bf16.msrb.mxu3 %v7630_v39  ;;  %9069 = vst [vmem:[#allocation50_spill] sm:$0xff] %v7654_v60 }
 0x6a4   : > { %3166 = vmatpush.bf16.msrb.mxu2 %v7630_v39 }
 0x6a7   : > { %2357 = vmatpush.bf16.msrb.mxu1 %v2348_v50  ;;  %v4742_v50 = vld [vmem:[%s8506_s8 + $0x168] sm:$0xf0]  ;;  %2859 = vmatpush.bf16.msrb.mxu3 %v7650_v47 }
 0x6a8   : > { %v7641_v59 = vor.u32 %v5207_v0, %v4742_v50  ;;  %v5198_v0 = vld [vmem:[%s8506_s8 + $0x104] sm:$0xf0]  ;;  %v5195_v50 = vld [vmem:[%s8506_s8 + $0xf4] sm:$0xf]  ;;  %3167 = vmatpush.bf16.msrb.mxu2 %v7650_v47 }
 0x6a9   : > { %v7669_v46 = vor.u32 %v5198_v0, %v4692_v9  ;;  %v7673_v54 = vor.u32 %v5195_v50, %v4694_v3  ;;  %v4670_v9 = vld [vmem:[%s8506_s8 + $0xd8] sm:$0xf0]  ;;  %v7688_v0 = vor.u32 %v5192_v27, %v4668_v61  ;;  %v4644_v3 = vld [vmem:[%s8506_s8 + $0x90] sm:$0xf]  ;;  %v4646_v27 = vld [vmem:[%s8506_s8 + $0xa8] sm:$0xf0] }
 0x6aa   : > { %4569 = vmatmul.msk.bf16.vlgmr.msrb.gmra.mxu1 %vm728_vm0, %v7617_v30  ;;  %9068 = vst [vmem:[#allocation47_spill] sm:$0xff] %v7641_v59  ;;  %v7692_v50 = vor.u32 %v5189_v41, %v4670_v9  ;;  %v7707_v41 = vor.u32 %v5186_v48, %v4644_v3  ;;  %v7711_v61 = vor.u32 %v5183_v40, %v4646_v27  ;;  %v4620_v9 = vld [vmem:[%s8506_s8 + $0x60] sm:$0xf]  ;;  %v4622_v48 = vld [vmem:[%s8506_s8 + $0x78] sm:$0xf0] }
 0x6ab   : > { %2886 = vmatpush.bf16.msra.mxu1 %v7641_v59  ;;  %9070 = vst [vmem:[#allocation53_spill] sm:$0xff] %v7673_v54  ;;  %2860 = vmatpush.bf16.msrb.mxu3 %v7669_v46  ;;  %v7726_v40 = vor.u32 %v5180_v17, %v4620_v9  ;;  %v7730_v3 = vor.u32 %v5177_v49, %v4622_v48  ;;  %v4596_v27 = vld [vmem:[%s8506_s8 + $0x30] sm:$0xf]  ;;  %v4598_v17 = vld [vmem:[%s8506_s8 + $0x48] sm:$0xf0] }
 0x6ac   : > { %3168 = vmatpush.bf16.msrb.mxu2 %v7669_v46  ;;  %9071 = vst [vmem:[#allocation56_spill] sm:$0xff] %v7692_v50  ;;  %v7745_v49 = vor.u32 %v5174_v44, %v4596_v27  ;;  %v7749_v9 = vor.u32 %v5171_v62, %v4598_v17  ;;  %v4572_v48 = vld [vmem:[%s8506_s8] sm:$0xf]  ;;  %v4574_v44 = vld [vmem:[%s8506_s8 + $0x18] sm:$0xf0] }
 0x6ad   : > { %9072 = vst [vmem:[#allocation20_spill] sm:$0xff] %v7711_v61  ;;  %v4748_v62 = vld [vmem:[%s8506_s8 + $0x158] sm:$0xf]  ;;  %v5211_v27 = vld [vmem:[%s8506_s8 + $0x16c] sm:$0xf0]  ;;  %v7776_v52 = vor.u32 %v5168_v5, %v4572_v48  ;;  %v7780_v35 = vor.u32 %v5165_v36, %v4574_v44 }
 0x6ae   : > { %9073 = vst [vmem:[#allocation22_spill] sm:$0xff] %v7726_v40  ;;  %v5208_v17 = vld [vmem:[%s8506_s8 + $0x15c] sm:$0xf]  ;;  %v7782_v57 = vor.u32 %v5211_v27, %v4748_v62  ;;  %v5202_v5 = vld [vmem:[%s8506_s8 + $0x12c] sm:$0xf] }
 0x6af   : > { %2887 = vmatpush.bf16.msra.mxu1 %v7654_v60  ;;  %2861 = vmatpush.bf16.msrb.mxu3 %v7688_v0  ;;  %9074 = vst [vmem:[#allocation24_spill] sm:$0xff] %v7730_v3  ;;  %v7784_v24 = vor.u32 %v5208_v17, %v4750_v8  ;;  %v4726_v36 = vld [vmem:[%s8506_s8 + $0x140] sm:$0xf0]  ;;  %v7802_v8 = vor.u32 %v5205_v28, %v4724_v19  ;;  %v4700_v44 = vld [vmem:[%s8506_s8 + $0xf8] sm:$0xf] }
 0x6b0   : > { %3169 = vmatpush.bf16.msrb.mxu2 %v7688_v0  ;;  %9075 = vst [vmem:[#allocation29_spill] sm:$0xff] %v7745_v49  ;;  %v7805_v48 = vor.u32 %v5202_v5, %v4726_v36  ;;  %v5199_v62 = vld [vmem:[%s8506_s8 + $0x10c] sm:$0xf0]  ;;  %v5196_v27 = vld [vmem:[%s8506_s8 + $0xfc] sm:$0xf] }
 0x6b1   : > { %9076 = vst [vmem:[#allocation32_spill] sm:$0xff] %v7749_v9  ;;  %v4702_v28 = vld [vmem:[%s8506_s8 + $0x110] sm:$0xf0]  ;;  %v7821_v19 = vor.u32 %v5199_v62, %v4700_v44  ;;  %v4676_v5 = vld [vmem:[%s8506_s8 + $0xc8] sm:$0xf] }
 0x6b2   : > { %9077 = vst [vmem:[#allocation35_spill] sm:$0xff] %v7776_v52  ;;  %v7824_v17 = vor.u32 %v5196_v27, %v4702_v28  ;;  %v5193_v36 = vld [vmem:[%s8506_s8 + $0xdc] sm:$0xf0]  ;;  %v4678_v44 = vld [vmem:[%s8506_s8 + $0xe0] sm:$0xf0] }
 0x6b3   : > { %2888 = vmatpush.bf16.msra.mxu1 %v7673_v54  ;;  %2862 = vmatpush.bf16.msrb.mxu3 %v7707_v41  ;;  %9078 = vst [vmem:[#allocation38_spill] sm:$0xff] %v7780_v35  ;;  %v7840_v62 = vor.u32 %v5193_v36, %v4676_v5  ;;  %v7843_v27 = vor.u32 %v5190_v31, %v4678_v44  ;;  %v4652_v28 = vld [vmem:[%s8506_s8 + $0x98] sm:$0xf]  ;;  %v4654_v5 = vld [vmem:[%s8506_s8 + $0xb0] sm:$0xf0] }
 0x6b4   : > { %3170 = vmatpush.bf16.msrb.mxu2 %v7707_v41  ;;  %9079 = vst [vmem:[#allocation39_spill] sm:$0xff] %v7782_v57  ;;  %v7859_v31 = vor.u32 %v5187_v51, %v4652_v28  ;;  %v7862_v36 = vor.u32 %v5184_v33, %v4654_v5  ;;  %v4628_v44 = vld [vmem:[%s8506_s8 + $0x68] sm:$0xf]  ;;  %v5181_v51 = vld [vmem:[%s8506_s8 + $0x7c] sm:$0xf0] }
 0x6b5   : > { %9080 = vst [vmem:[#allocation51_spill] sm:$0xff] %v7802_v8  ;;  %v5178_v33 = vld [vmem:[%s8506_s8 + $0x6c] sm:$0xf]  ;;  %v7877_v28 = vor.u32 %v5181_v51, %v4628_v44  ;;  %v4630_v5 = vld [vmem:[%s8506_s8 + $0x80] sm:$0xf0]  ;;  %v7897_v51 = vor.u32 %v5175_v32, %v4604_v42 }
 0x6b6   : > { %9081 = vst [vmem:[#allocation54_spill] sm:$0xff] %v7821_v19  ;;  %v7888_v15 = vor.u32 %v5178_v33, %v4630_v5  ;;  %v5172_v30 = vld [vmem:[%s8506_s8 + $0x3c] sm:$0xf]  ;;  %v4606_v44 = vld [vmem:[%s8506_s8 + $0x50] sm:$0xf0] }
 0x6b7   : > { %2889 = vmatpush.bf16.msra.mxu1 %v7692_v50  ;;  %2863 = vmatpush.bf16.msrb.mxu3 %v7726_v40  ;;  %9082 = vst [vmem:[#allocation57_spill] sm:$0xff] %v7840_v62  ;;  %v7901_v53 = vor.u32 %v5172_v30, %v4606_v44  ;;  %v4580_v33 = vld [vmem:[%s8506_s8 + $0x8] sm:$0xf]  ;;  %v5169_v32 = vld [vmem:[%s8506_s8 + $0x1c] sm:$0xf0] }
 0x6b8   : > { %3171 = vmatpush.bf16.msrb.mxu2 %v7726_v40  ;;  %9083 = vst [vmem:[#allocation59_spill] sm:$0xff] %v7859_v31  ;;  %v5166_v42 = vld [vmem:[%s8506_s8 + $0xc] sm:$0xf]  ;;  %v7915_v30 = vor.u32 %v5169_v32, %v4580_v33  ;;  %v4582_v5 = vld [vmem:[%s8506_s8 + $0x20] sm:$0xf0] }
 0x6b9   : > { %9084 = vst [vmem:[#allocation61_spill] sm:$0xff] %v7877_v28  ;;  %v7920_v44 = vor.u32 %v5166_v42, %v4582_v5  ;;  %v5212_v33 = vld [vmem:[%s8506_s8 + $0x174] sm:$0xf0]  ;;  %v5209_v32 = vld [vmem:[%s8506_s8 + $0x164] sm:$0xf] }
 0x6ba   : > { %9085 = vst [vmem:[#allocation63_spill] sm:$0xff] %v7897_v51  ;;  %v4758_v42 = vld [vmem:[%s8506_s8 + $0x178] sm:$0xf0] }
 0x6bb   : > { %2890 = vmatpush.bf16.msra.mxu1 %v7711_v61  ;;  %2864 = vmatpush.bf16.msrb.mxu3 %v7745_v49  ;;  %9086 = vst [vmem:[#allocation65_spill] sm:$0xff] %v7915_v30 }
 0x6bc   : > { %3172 = vmatpush.bf16.msrb.mxu2 %v7745_v49 }
 0x6bf   : > { %2891 = vmatpush.bf16.msra.mxu1 %v7730_v3  ;;  %2865 = vmatpush.bf16.msrb.mxu3 %v7776_v52 }
 0x6c0   : > { %3173 = vmatpush.bf16.msrb.mxu2 %v7776_v52 }
 0x6c3   : > { %2892 = vmatpush.bf16.msra.mxu1 %v7749_v9  ;;  %2914 = vmatpush.bf16.msra.mxu3 %v7782_v57 }
 0x6c4   : > { %3222 = vmatpush.bf16.msra.mxu2 %v7782_v57 }
 0x6c7   : > { %2893 = vmatpush.bf16.msra.mxu1 %v7780_v35  ;;  %2915 = vmatpush.bf16.msra.mxu3 %v7802_v8 }
 0x6c8   : > { %3223 = vmatpush.bf16.msra.mxu2 %v7802_v8 }
 0x6cb   : > { %2942 = vmatpush.bf16.msrb.mxu1 %v7784_v24  ;;  %2916 = vmatpush.bf16.msra.mxu3 %v7821_v19 }
 0x6cc   : > { %3224 = vmatpush.bf16.msra.mxu2 %v7821_v19  ;;  %v5203_v19 = vld [vmem:[%s8506_s8 + $0x134] sm:$0xf] }
 0x6cf   : > { %2943 = vmatpush.bf16.msrb.mxu1 %v7805_v48  ;;  %2917 = vmatpush.bf16.msra.mxu3 %v7840_v62 }
 0x6d0   : > { %3225 = vmatpush.bf16.msra.mxu2 %v7840_v62  ;;  %v5206_v62 = vld [vmem:[%s8506_s8 + $0x144] sm:$0xf0] }
 0x6d3   : > { %2944 = vmatpush.bf16.msrb.mxu1 %v7824_v17  ;;  %2918 = vmatpush.bf16.msra.mxu3 %v7859_v31 }
 0x6d4   : > { %3226 = vmatpush.bf16.msra.mxu2 %v7859_v31 }
 0x6d7   : > { %2945 = vmatpush.bf16.msrb.mxu1 %v7843_v27  ;;  %2919 = vmatpush.bf16.msra.mxu3 %v7877_v28 }
 0x6d8   : > { %3227 = vmatpush.bf16.msra.mxu2 %v7877_v28  ;;  %v4732_v28 = vld [vmem:[%s8506_s8 + $0x130] sm:$0xf] }
 0x6db   : > { %2946 = vmatpush.bf16.msrb.mxu1 %v7862_v36  ;;  %2920 = vmatpush.bf16.msra.mxu3 %v7897_v51 }
 0x6dc   : > { %3228 = vmatpush.bf16.msra.mxu2 %v7897_v51  ;;  %v7939_v51 = vor.u32 %v5209_v32, %v4758_v42  ;;  %v4708_v32 = vld [vmem:[%s8506_s8 + $0x100] sm:$0xf]  ;;  %v5200_v42 = vld [vmem:[%s8506_s8 + $0x114] sm:$0xf0] }
 0x6de   : > { %9088 = vst [vmem:[#allocation70_spill] sm:$0xff] %v7939_v51 }
 0x6df   : > { %2947 = vmatpush.bf16.msrb.mxu1 %v7888_v15  ;;  %2921 = vmatpush.bf16.msra.mxu3 %v7915_v30 }
 0x6e0   : > { %3229 = vmatpush.bf16.msra.mxu2 %v7915_v30  ;;  %v7937_v30 = vor.u32 %v5212_v33, %v4756_v34  ;;  %v4734_v34 = vld [vmem:[%s8506_s8 + $0x148] sm:$0xf0] }
 0x6e1   : > { %v7961_v33 = vor.u32 %v5203_v19, %v4734_v34  ;;  %v7977_v19 = vor.u32 %v5200_v42, %v4708_v32  ;;  %v5194_v34 = vld [vmem:[%s8506_s8 + $0xe4] sm:$0xf0]  ;;  %v4660_v42 = vld [vmem:[%s8506_s8 + $0xa0] sm:$0xf] }
 0x6e2   : > { %9087 = vst [vmem:[#allocation67_spill] sm:$0xff] %v7937_v30 }
 0x6e3   : > { %2948 = vmatpush.bf16.msrb.mxu1 %v7901_v53  ;;  %9090 = vst [vmem:[#allocation72_spill] sm:$0xff] %v7961_v33 }
 0x6e4   : > { %9091 = vst [vmem:[#allocation73_spill] sm:$0xff] %v7977_v19 }
 0x6e7   : > { %2949 = vmatpush.bf16.msrb.mxu1 %v7920_v44 }
 0x727   : > { %v2359_v22 = vpop.f32.mrf.mxu1 }
 0x72f   : > { %v2361_v5 = vpop.f32.mrf.mxu1 }
 0x730   : > { %v7944_v31 = vpack.c.bf16 %v2361_v5, %v2359_v22  ;;  %v7959_v22 = vor.u32 %v5206_v62, %v4732_v28  ;;  %v5197_v5 = vld [vmem:[%s8506_s8 + $0x104] sm:$0xf]  ;;  %v4684_v28 = vld [vmem:[%s8506_s8 + $0xd0] sm:$0xf] }
 0x732   : > { %2866 = vmatmul.bf16.vlgmr.msrb.gmra.mxu3 %v7944_v31  ;;  %2894 = vmatmul.bf16.vlgmr.msra.gmra.mxu1 %v7944_v31  ;;  %9089 = vst [vmem:[#allocation71_spill] sm:$0xff] %v7959_v22 }
 0x733   : > { %2970 = vmatpush.bf16.msrb.mxu3 %v7937_v30  ;;  %2998 = vmatpush.bf16.msra.mxu1 %v7939_v51  ;;  %v4710_v51 = vld [vmem:[%s8506_s8 + $0x118] sm:$0xf0]  ;;  %v5191_v30 = vld [vmem:[%s8506_s8 + $0xd4] sm:$0xf] }
 0x734   : > { %v7979_v62 = vor.u32 %v5197_v5, %v4710_v51  ;;  %v7995_v51 = vor.u32 %v5194_v34, %v4684_v28  ;;  %v5188_v5 = vld [vmem:[%s8506_s8 + $0xb4] sm:$0xf0]  ;;  %v4636_v28 = vld [vmem:[%s8506_s8 + $0x70] sm:$0xf]  ;;  %v5182_v34 = vld [vmem:[%s8506_s8 + $0x84] sm:$0xf0] }
 0x736   : > { %9092 = vst [vmem:[#allocation74_spill] sm:$0xff] %v7979_v62 }
 0x737   : > { %2971 = vmatpush.bf16.msrb.mxu3 %v7959_v22  ;;  %2999 = vmatpush.bf16.msra.mxu1 %v7961_v33  ;;  %v4686_v33 = vld [vmem:[%s8506_s8 + $0xe8] sm:$0xf0]  ;;  %9093 = vst [vmem:[#allocation75_spill] sm:$0xff] %v7995_v51  ;;  %v5185_v22 = vld [vmem:[%s8506_s8 + $0xa4] sm:$0xf] }
 0x738   : > { %v7997_v32 = vor.u32 %v5191_v30, %v4686_v33  ;;  %v8013_v30 = vor.u32 %v5188_v5, %v4660_v42  ;;  %v4612_v42 = vld [vmem:[%s8506_s8 + $0x40] sm:$0xf]  ;;  %v5176_v5 = vld [vmem:[%s8506_s8 + $0x54] sm:$0xf0] }
 0x73a   : > { %9094 = vst [vmem:[#allocation76_spill] sm:$0xff] %v7997_v32 }
 0x73b   : > { %2972 = vmatpush.bf16.msrb.mxu3 %v7977_v19  ;;  %3000 = vmatpush.bf16.msra.mxu1 %v7979_v62  ;;  %v4662_v62 = vld [vmem:[%s8506_s8 + $0xb8] sm:$0xf0]  ;;  %9095 = vst [vmem:[#allocation77_spill] sm:$0xff] %v8013_v30  ;;  %v5179_v19 = vld [vmem:[%s8506_s8 + $0x74] sm:$0xf] }
 0x73c   : > { %v8015_v33 = vor.u32 %v5185_v22, %v4662_v62  ;;  %v8033_v22 = vor.u32 %v5182_v34, %v4636_v28  ;;  %v4588_v28 = vld [vmem:[%s8506_s8 + $0x10] sm:$0xf]  ;;  %v5170_v34 = vld [vmem:[%s8506_s8 + $0x24] sm:$0xf0] }
 0x73e   : > { %9096 = vst [vmem:[#allocation78_spill] sm:$0xff] %v8015_v33 }
 0x73f   : > { %2973 = vmatpush.bf16.msrb.mxu3 %v7995_v51  ;;  %3001 = vmatpush.bf16.msra.mxu1 %v7997_v32  ;;  %v4638_v32 = vld [vmem:[%s8506_s8 + $0x88] sm:$0xf0]  ;;  %9097 = vst [vmem:[#allocation79_spill] sm:$0xff] %v8033_v22  ;;  %v5173_v51 = vld [vmem:[%s8506_s8 + $0x44] sm:$0xf] }
 0x740   : > { %v8035_v62 = vor.u32 %v5179_v19, %v4638_v32  ;;  %v8051_v19 = vor.u32 %v5176_v5, %v4612_v42 }
 0x742   : > { %2922 = vmatmul.bf16.vlgmr.msra.gmra.mxu3 %v7944_v31  ;;  %2950 = vmatmul.bf16.vlgmr.msrb.gmra.mxu1 %v7944_v31  ;;  %9098 = vst [vmem:[#allocation80_spill] sm:$0xff] %v8035_v62 }
 0x743   : > { %2974 = vmatpush.bf16.msrb.mxu3 %v8013_v30  ;;  %3002 = vmatpush.bf16.msra.mxu1 %v8015_v33  ;;  %v4614_v33 = vld [vmem:[%s8506_s8 + $0x58] sm:$0xf0]  ;;  %9099 = vst [vmem:[#allocation81_spill] sm:$0xff] %v8051_v19  ;;  %v5167_v30 = vld [vmem:[%s8506_s8 + $0x14] sm:$0xf] }
 0x744   : > { %v8053_v32 = vor.u32 %v5173_v51, %v4614_v33  ;;  %v8069_v51 = vor.u32 %v5170_v34, %v4588_v28 }
 0x746   : > { %9100 = vst [vmem:[#allocation82_spill] sm:$0xff] %v8053_v32 }
 0x747   : > { %2975 = vmatpush.bf16.msrb.mxu3 %v8033_v22  ;;  %3003 = vmatpush.bf16.msra.mxu1 %v8035_v62  ;;  %v4590_v62 = vld [vmem:[%s8506_s8 + $0x28] sm:$0xf0]  ;;  %9101 = vst [vmem:[#allocation83_spill] sm:$0xff] %v8069_v51 }
 0x748   : > { %v8071_v33 = vor.u32 %v5167_v30, %v4590_v62  ;;  %v2881_v30 = vpop.f32.mrf.mxu0 }
 0x74a   : > { %9102 = vst [vmem:[#allocation84_spill] sm:$0xff] %v8071_v33 }
 0x74b   : > { %2976 = vmatpush.bf16.msrb.mxu3 %v8051_v19  ;;  %3004 = vmatpush.bf16.msra.mxu1 %v8053_v32 }
 0x74f   : > { %2977 = vmatpush.bf16.msrb.mxu3 %v8069_v51  ;;  %3005 = vmatpush.bf16.msra.mxu1 %v8071_v33 }
 0x750   : > { %v2883_v34 = vpop.f32.mrf.mxu0 }
 0x752   : > { %2978 = vmatmul.bf16.vlgmr.msrb.gmra.mxu3 %v7944_v31  ;;  %3006 = vmatmul.bf16.vlgmr.msra.gmra.mxu1 %v7944_v31  ;;  %v2909_v31 = vpop.f32.mrf.mxu2 }
 0x753   : > { %3121 = vmatpush.bf16.msra.mxu3 %v6926_v58 }
 0x757   : > { %3122 = vmatpush.bf16.msra.mxu3 %v6946_v6 }
 0x75a   : > { %v2911_v42 = vpop.f32.mrf.mxu2 }
 0x75b   : > { %3123 = vmatpush.bf16.msra.mxu3 %v6966_v20 }
 0x75f   : > { %3124 = vmatpush.bf16.msra.mxu3 %v6988_v11 }
 0x763   : > { %3125 = vmatpush.bf16.msra.mxu3 %v7008_v23 }
 0x767   : > { %3126 = vmatpush.bf16.msra.mxu3 %v7028_v18  ;;  %v8106_v18 = vpop.f32.mrf.mxu0 }
 0x76b   : > { %3127 = vmatpush.bf16.msra.mxu3 %v7050_v16 }
 0x76f   : > { %3128 = vmatpush.bf16.msra.mxu3 %v7068_v25  ;;  %v8112_v22 = vpop.f32.mrf.mxu0 }
 0x773   : > { %3194 = vmatpush.bf16.msrb.mxu3 %v7641_v59 }
 0x777   : > { %3195 = vmatpush.bf16.msrb.mxu3 %v7654_v60 }
 0x77b   : > { %3196 = vmatpush.bf16.msrb.mxu3 %v7673_v54  ;;  %v8096_v54 = vld [vmem:[%s8507_s9] sm:$0x3f] }
 0x77f   : > { %3197 = vmatpush.bf16.msrb.mxu3 %v7692_v50  ;;  %v2965_v50 = vpop.f32.mrf.mxu2 }
 0x783   : > { %3198 = vmatpush.bf16.msrb.mxu3 %v7711_v61  ;;  %v8099_v61 = vperm.slane %v8096_v54, 0 }
 0x785   : > { %9103 = vst [vmem:[#allocation85_spill] sm:$0xff] %v8099_v61 }
 0x787   : > { %3199 = vmatpush.bf16.msrb.mxu3 %v7730_v3  ;;  %v8102_v3 = vperm.slane %v8096_v54, 3  ;;  %v2967_v51 = vpop.f32.mrf.mxu2 }
 0x789   : > { %9104 = vst [vmem:[#allocation90_spill] sm:$0xff] %v8102_v3 }
 0x78b   : > { %3200 = vmatpush.bf16.msrb.mxu3 %v7749_v9 }
 0x78f   : > { %3201 = vmatpush.bf16.msrb.mxu3 %v7780_v35 }
 0x7af   : > { %v2895_v62 = vpop.f32.mrf.mxu1 }
 0x7b5   : > { %v2867_v5 = vpop.f32.mrf.mxu3 }
 0x7b6   : > { %v2868_v35 = vadd.f32 %v2867_v5, %v8099_v61 }
 0x7b7   : > { %v2897_v28 = vpop.f32.mrf.mxu1 }
 0x7b8   : > { %v2882_v25 = vadd.f32 %v2881_v30, %v2868_v35 }
 0x7bd   : > { %v2869_v9 = vpop.f32.mrf.mxu3 }
 0x7be   : > { %v2870_v20 = vadd.f32 %v2869_v9, %v8099_v61 }
 0x7bf   : > { %v2951_v60 = vpop.f32.mrf.mxu1 }
 0x7c0   : > { %v2952_v59 = vadd.f32 %v2951_v60, %v8102_v3  ;;  %v2884_v5 = vadd.f32 %v2883_v34, %v2870_v20 }
 0x7c2   : > { %v2966_v16 = vadd.f32 %v2965_v50, %v2952_v59 }
 0x7c4   : > { %v3026_v23 = vadd.f32 %v2966_v16, %v2882_v25  ;;  %v8117_v16 = vperm.slane %v8096_v54, 1 }
 0x7c5   : > { %v8108_v11 = vpop.f32.mrf.mxu3 }
 0x7c6   : > { %v4954_v6 = vmul.f32 -1.442695, %v3026_v23  ;;  %9105 = vst [vmem:[#allocation91_spill] sm:$0xff] %v8117_v16  ;;  %v8120_v23 = vperm.slane %v8096_v54, 4  ;;  %v2898_v34 = vadd.f32 %v2897_v28, %v8117_v16 }
 0x7c7   : > { %v2953_v58 = vpop.f32.mrf.mxu1 }
 0x7c8   : > { %5348 = vpow2.f32 %v4954_v6  ;;  %v2954_v33 = vadd.f32 %v2953_v58, %v8102_v3  ;;  %9106 = vst [vmem:[#allocation92_spill] sm:$0xff] %v8120_v23  ;;  %v2896_v58 = vadd.f32 %v2895_v62, %v8117_v16  ;;  %v2993_v6 = vpop.f32.mrf.mxu0  ;;  %v2912_v8 = vadd.f32 %v2911_v42, %v2898_v34 }
 0x7ca   : > { %v2968_v32 = vadd.f32 %v2967_v51, %v2954_v33  ;;  %v2910_v51 = vadd.f32 %v2909_v31, %v2896_v58 }
 0x7cc   : > { %v3027_v19 = vadd.f32 %v2968_v32, %v2884_v5 }
 0x7cd   : > { %v8114_v35 = vpop.f32.mrf.mxu3 }
 0x7ce   : > { %v5349_v59 = vpop.eup %5348  ;;  %v4955_v60 = vmul.f32 -1.442695, %v3027_v19 }
 0x7cf   : > { %v3034_v25 = vadd.f32 1.0, %v5349_v59 }
 0x7d0   : > { %5350 = vpow2.f32 %v4955_v60  ;;  %v2995_v61 = vpop.f32.mrf.mxu0 }
 0x7d1   : > { %5352 = vrcp.f32 %v3034_v25  ;;  %v3047_v42 = vand.u32 2147483648, %v3034_v25  ;;  %vm3041_vm5 = vweird.f32 %v3034_v25 }
 0x7d5   : > { %v2979_v20 = vpop.f32.mrf.mxu3 }
 0x7d6   : > { %v5351_v50 = vpop.eup %5350  ;;  %v2980_v9 = vadd.f32 %v2979_v20, %v8120_v23 }
 0x7d7   : > { %v3035_v32 = vadd.f32 1.0, %v5351_v50  ;;  %v5353_v19 = vpop.eup %5352  ;;  %v3007_v50 = vpop.f32.mrf.mxu1 }
 0x7d8   : > { %v2994_v33 = vadd.f32 %v2993_v6, %v2980_v9  ;;  %v3037_v59 = vmul.f32 %v5353_v19, %v3034_v25  ;;  %vm3042_vm4 = vweird.f32 %v5353_v19 }
 0x7d9   : > { %5354 = vrcp.f32 %v3035_v32  ;;  %vm8132_vm7 = vmor %vm3041_vm5, %vm3042_vm4  ;;  %vm3056_vm8 = vweird.f32 %v3035_v32 }
 0x7da   : > { %v3066_v30 = vadd.f32 %v2994_v33, %v2910_v51  ;;  %v3038_v20 = vsub.f32 1.0, %v3037_v59  ;;  %v3062_v59 = vand.u32 2147483648, %v3035_v32 }
 0x7dc   : > { %v4956_v5 = vmul.f32 -1.442695, %v3066_v30  ;;  %v3039_v51 = vmul.f32 %v5353_v19, %v3038_v20  ;;  %v3021_v30 = vpop.f32.mrf.mxu2  ;;  %v3063_v49 = vor.u32 1.1754944e-38, %v3062_v59 }
 0x7dd   : > { %v2981_v60 = vpop.f32.mrf.mxu3 }
 0x7de   : > { %5356 = vpow2.f32 %v4956_v5  ;;  %v2982_v62 = vadd.f32 %v2981_v60, %v8120_v23  ;;  %v8127_v5 = vperm.slane %v8096_v54, 5  ;;  %v3040_v60 = vadd.f32 %v5353_v19, %v3039_v51 }
 0x7df   : > { %v5355_v3 = vpop.eup %5354 }
 0x7e0   : > { %v3052_v57 = vmul.f32 %v5355_v3, %v3035_v32  ;;  %v2996_v52 = vadd.f32 %v2995_v61, %v2982_v62  ;;  %v3045_v61 = vand.u32 2147483647, %v3034_v25  ;;  %vm3057_vm6 = vweird.f32 %v5355_v3 }
 0x7e1   : > { %v3008_v20 = vadd.f32 %v3007_v50, %v8127_v5  ;;  %vm3058_vm9 = vmor %vm3056_vm8, %vm3057_vm6 }
 0x7e2   : > { %v3067_v31 = vadd.f32 %v2996_v52, %v2912_v8  ;;  %v3053_v58 = vsub.f32 1.0, %v3052_v57  ;;  %v8130_v57 = vperm.slane %v8096_v54, 2  ;;  %v3009_v8 = vpop.f32.mrf.mxu1  ;;  %vm3046_vm10 = vcmp.eq.f32.partialorder %v3045_v61, 8.507059e+37 }
 0x7e3   : > { %v3010_v54 = vadd.f32 %v3009_v8, %v8127_v5  ;;  %v3022_v40 = vadd.f32 %v3021_v30, %v3008_v20 }
 0x7e4   : > { %v5357_v6 = vpop.eup %5356  ;;  %v4957_v9 = vmul.f32 -1.442695, %v3067_v31  ;;  %v3054_v28 = vmul.f32 %v5355_v3, %v3053_v58  ;;  %v3044_v31 = vsel %vm8132_vm7, %v5353_v19, %v3040_v60  ;;  %v3060_v58 = vand.u32 2147483647, %v3035_v32  ;;  %v3023_v19 = vpop.f32.mrf.mxu2 }
 0x7e5   : > { %v3074_v33 = vadd.f32 1.0, %v5357_v6  ;;  %v3048_v6 = vor.u32 1.1754944e-38, %v3047_v42  ;;  %v2924_v50 = vadd.f32 %v8108_v11, %v8130_v57  ;;  %v2926_v42 = vadd.f32 %v8114_v35, %v8130_v57 }
 0x7e6   : > { %v3055_v34 = vadd.f32 %v5355_v3, %v3054_v28  ;;  %vm3061_vm11 = vcmp.eq.f32.partialorder %v3060_v58, 8.507059e+37  ;;  %v3024_v52 = vadd.f32 %v3023_v19, %v3010_v54 }
 0x7e7   : > { %5358 = vrcp.f32 %v3074_v33  ;;  %v3049_v23 = vsel %vm3046_vm10, %v3048_v6, %v3044_v31  ;;  %vm3081_vm13 = vweird.f32 %v3074_v33  ;;  %v3085_v31 = vand.u32 2147483647, %v3074_v33 }
 0x7e8   : > { %5360 = vpow2.f32 %v4957_v9  ;;  %v3059_v51 = vsel %vm3058_vm9, %v5355_v3, %v3055_v34  ;;  %v3106_v61 = vmul.f32 %v3049_v23, %v3022_v40  ;;  %v2938_v3 = vadd.f32 %v8106_v18, %v2924_v50 }
 0x7e9   : > { %v3064_v60 = vsel %vm3061_vm11, %v3063_v49, %v3059_v51  ;;  %v3087_v34 = vand.u32 2147483648, %v3074_v33  ;;  %v2940_v30 = vadd.f32 %v8112_v22, %v2926_v42  ;;  %vm3086_vm15 = vcmp.eq.f32.partialorder %v3085_v31, 8.507059e+37  ;;  %v9114_v31 = vld [vmem:[#allocation39_spill] sm:$0xff] }
 0x7ea   : > { %v3107_v59 = vmul.f32 %v3064_v60, %v3024_v52  ;;  %v3108_v20 = vadd.f32 %v3106_v61, %v2938_v3  ;;  %v9109_v60 = vmax.f32 %v7280_v21, 0.0  ;;  %v9110_v52 = vmax.f32 %v7286_v29, 0.0  ;;  %v9111_v21 = vld [vmem:[#allocation22_spill] sm:$0xff]  ;;  %v9112_v29 = vld [vmem:[#allocation29_spill] sm:$0xff] }
 0x7eb   : > { %v3088_v58 = vor.u32 1.1754944e-38, %v3087_v34 }
 0x7ed   : > { %v5359_v62 = vpop.eup %5358 }
 0x7ee   : > { %v5361_v25 = vpop.eup %5360  ;;  %v3077_v9 = vmul.f32 %v5359_v62, %v3074_v33  ;;  %vm3082_vm12 = vweird.f32 %v5359_v62 }
 0x7ef   : > { %v3075_v28 = vadd.f32 1.0, %v5361_v25  ;;  %vm3083_vm14 = vmor %vm3081_vm13, %vm3082_vm12  ;;  %v3109_v25 = vadd.f32 %v3107_v59, %v2940_v30  ;;  %v9113_v59 = vld [vmem:[#allocation35_spill] sm:$0xff]  ;;  %v9117_v30 = vld [vmem:[#allocation57_spill] sm:$0xff] }
 0x7f0   : > { %v3078_v16 = vsub.f32 1.0, %v3077_v9 }
 0x7f1   : > { %5362 = vrcp.f32 %v3075_v28  ;;  %v3102_v23 = vand.u32 2147483648, %v3075_v28  ;;  %v3100_v18 = vand.u32 2147483647, %v3075_v28  ;;  %vm3096_vm2 = vweird.f32 %v3075_v28 }
 0x7f2   : > { %v3079_v32 = vmul.f32 %v5359_v62, %v3078_v16  ;;  %5364 = vtanh.f32 %v3108_v20 }
 0x7f3   : > { %5366 = vtanh.f32 %v3109_v25  ;;  %v3103_v22 = vor.u32 1.1754944e-38, %v3102_v23  ;;  %vm3101_vm4 = vcmp.eq.f32.partialorder %v3100_v18, 8.507059e+37 }
 0x7f4   : > { %v3080_v8 = vadd.f32 %v5359_v62, %v3079_v32 }
 0x7f6   : > { %v3084_v16 = vsel %vm3083_vm14, %v5359_v62, %v3080_v8 }
 0x7f7   : > { %v5363_v11 = vpop.eup %5362  ;;  %v3089_v35 = vsel %vm3086_vm15, %v3088_v58, %v3084_v16  ;;  %v9122_v58 = vld [vmem:[#allocation30_spill] sm:$0xff] }
 0x7f8   : > { %v3092_v49 = vmul.f32 %v5363_v11, %v3075_v28  ;;  %vm3097_vm1 = vweird.f32 %v5363_v11  ;;  %v3112_v9 = vsub.f32 1.0, %v3089_v35  ;;  %v5365_v62 = vpop.eup %5364  ;;  %v3116_v42 = vmul.f32 %v3089_v35, %v9109_v60  ;;  %v9131_v60 = vld [vmem:[#allocation28_spill] sm:$0xff] }
 0x7f9   : > { %vm3098_vm3 = vmor %vm3096_vm2, %vm3097_vm1  ;;  %v5367_v32 = vpop.eup %5366 }
 0x7fa   : > { %v3093_v40 = vsub.f32 1.0, %v3092_v49  ;;  %v3114_v50 = vmul.f32 %v5365_v62, %v3112_v9  ;;  %v9126_v62 = vld [vmem:[#allocation18_spill] sm:$0xff] }
 0x7fc   : > { %v3094_v6 = vmul.f32 %v5363_v11, %v3093_v40  ;;  %v8150_v3 = vadd.f32 %v3116_v42, %v3114_v50  ;;  %v9128_v50 = vld [vmem:[#allocation15_spill] sm:$0xff]  ;;  %v9132_v42 = vld [vmem:[#allocation34_spill] sm:$0xff] }
 0x7fe   : > { %v3095_v33 = vadd.f32 %v5363_v11, %v3094_v6  ;;  %v9123_v6 = vld [vmem:[#allocation33_spill] sm:$0xff] }
 0x800   : > { %v3099_v54 = vsel %vm3098_vm3, %v5363_v11, %v3095_v33  ;;  %v9115_v11 = vld [vmem:[#allocation51_spill] sm:$0xff] }
 0x801   : > { %v3104_v51 = vsel %vm3101_vm4, %v3103_v22, %v3099_v54  ;;  %v9124_v22 = vld [vmem:[#allocation26_spill] sm:$0xff]  ;;  %v9125_v54 = vld [vmem:[#allocation36_spill] sm:$0xff] }
 0x802   : > { %v3113_v19 = vsub.f32 1.0, %v3104_v51  ;;  %v3117_v8 = vmul.f32 %v3104_v51, %v9110_v52  ;;  %v9127_v51 = vld [vmem:[#allocation13_spill] sm:$0xff]  ;;  %v9134_v52 = vld [vmem:[#allocation52_spill] sm:$0xff] }
 0x804   : > { %v3115_v61 = vmul.f32 %v5367_v32, %v3113_v19  ;;  %v9129_v19 = vld [vmem:[#allocation19_spill] sm:$0xff] }
 0x805   : > { %v9130_v32 = vld [vmem:[#allocation23_spill] sm:$0xff] }
 0x806   : > { %v8152_v34 = vadd.f32 %v3117_v8, %v3115_v61  ;;  %v9133_v61 = vld [vmem:[#allocation48_spill] sm:$0xff]  ;;  %v9135_v8 = vld [vmem:[#allocation55_spill] sm:$0xff] }
 0x808   : > { %v8156_v28 = vpack.c.bf16 %v8152_v34, %v8150_v3 }
 0x80a   : > { %3129 = vmatmul.bf16.vlgmr.msra.gmra.mxu3 %v8156_v28  ;;  %3143 = vmatmul.bf16.vlgmr.msra.gmra.mxu0 %v8156_v28 }
 0x80b   : > { %3264 = vmatpush.bf16.msra.mxu0 %v7301_v37  ;;  %3250 = vmatpush.bf16.msra.mxu3 %v7784_v24 }
 0x80f   : > { %3265 = vmatpush.bf16.msra.mxu0 %v7327_v7  ;;  %3251 = vmatpush.bf16.msra.mxu3 %v7805_v48 }
 0x813   : > { %3266 = vmatpush.bf16.msra.mxu0 %v7345_v10  ;;  %3252 = vmatpush.bf16.msra.mxu3 %v7824_v17 }
 0x817   : > { %3267 = vmatpush.bf16.msra.mxu0 %v7363_v13  ;;  %3253 = vmatpush.bf16.msra.mxu3 %v7843_v27 }
 0x81a   : > { %3216 = vmatmul.bf16.vlgmr.msrb.gmra.mxu0 %v8156_v28 }
 0x81b   : > { %3268 = vmatpush.bf16.msra.mxu0 %v7381_v12  ;;  %3254 = vmatpush.bf16.msra.mxu3 %v7862_v36 }
 0x81f   : > { %3269 = vmatpush.bf16.msra.mxu0 %v7401_v1  ;;  %3255 = vmatpush.bf16.msra.mxu3 %v7888_v15 }
 0x823   : > { %3270 = vmatpush.bf16.msra.mxu0 %v7419_v14  ;;  %3256 = vmatpush.bf16.msra.mxu3 %v7901_v53 }
 0x827   : > { %3271 = vmatpush.bf16.msra.mxu0 %v7449_v26  ;;  %3257 = vmatpush.bf16.msra.mxu3 %v7920_v44 }
 0x82a   : > { %3272 = vmatmul.bf16.vlgmr.msra.gmra.mxu0 %v8156_v28 }
 0x82b   : > { %3320 = vmatpush.bf16.msrb.mxu0 %v7453_v43 }
 0x82f   : > { %3321 = vmatpush.bf16.msrb.mxu0 %v7473_v56 }
 0x833   : > { %3322 = vmatpush.bf16.msrb.mxu0 %v7493_v4 }
 0x837   : > { %3323 = vmatpush.bf16.msrb.mxu0 %v7511_v38 }
 0x83b   : > { %3324 = vmatpush.bf16.msrb.mxu0 %v7529_v45 }
 0x83f   : > { %3325 = vmatpush.bf16.msrb.mxu0 %v7547_v55 }
 0x843   : > { %3326 = vmatpush.bf16.msrb.mxu0 %v7565_v63 }
 0x847   : > { %3327 = vmatpush.bf16.msrb.mxu0 %v7583_v2 }
 0x84a   : > { %3328 = vmatmul.bf16.vlgmr.msrb.gmra.mxu0 %v8156_v28 }
 0x84b   : > { %3474 = vmatpush.bf16.msra.mxu0 %v7630_v39  ;;  %v9116_v39 = vld [vmem:[#allocation54_spill] sm:$0xff] }
 0x84f   : > { %3475 = vmatpush.bf16.msra.mxu0 %v7650_v47  ;;  %v9118_v47 = vld [vmem:[#allocation59_spill] sm:$0xff] }
 0x853   : > { %3476 = vmatpush.bf16.msra.mxu0 %v7669_v46  ;;  %v9119_v46 = vld [vmem:[#allocation61_spill] sm:$0xff] }
 0x857   : > { %3477 = vmatpush.bf16.msra.mxu0 %v7688_v0  ;;  %v9120_v0 = vld [vmem:[#allocation63_spill] sm:$0xff] }
 0x85b   : > { %3478 = vmatpush.bf16.msra.mxu0 %v7707_v41  ;;  %v9121_v41 = vld [vmem:[#allocation65_spill] sm:$0xff] }
 0x85f   : > { %3479 = vmatpush.bf16.msra.mxu0 %v9111_v21  ;;  %v9136_v21 = vld [vmem:[#allocation3_spill] sm:$0xff] }
 0x863   : > { %3480 = vmatpush.bf16.msra.mxu0 %v9112_v29  ;;  %v9137_v29 = vld [vmem:[#allocation5_spill] sm:$0xff] }
 0x867   : > { %3481 = vmatpush.bf16.msra.mxu0 %v9113_v59  ;;  %v9138_v59 = vld [vmem:[#allocation6_spill] sm:$0xff] }
 0x86b   : > { %3530 = vmatpush.bf16.msrb.mxu0 %v9114_v31  ;;  %v9139_v31 = vld [vmem:[#allocation7_spill] sm:$0xff] }
 0x86f   : > { %3531 = vmatpush.bf16.msrb.mxu0 %v9115_v11  ;;  %v9140_v11 = vld [vmem:[#allocation8_spill] sm:$0xff] }
 0x873   : > { %3532 = vmatpush.bf16.msrb.mxu0 %v9116_v39  ;;  %v9141_v39 = vld [vmem:[#allocation9_spill] sm:$0xff] }
 0x877   : > { %3533 = vmatpush.bf16.msrb.mxu0 %v9117_v30  ;;  %v9142_v30 = vld [vmem:[#allocation10_spill] sm:$0xff] }
 0x87b   : > { %3534 = vmatpush.bf16.msrb.mxu0 %v9118_v47  ;;  %v9143_v47 = vld [vmem:[#allocation11_spill] sm:$0xff] }
 0x87f   : > { %3535 = vmatpush.bf16.msrb.mxu0 %v9119_v46  ;;  %v9144_v46 = vld [vmem:[#allocation86_spill] sm:$0xff] }
 0x883   : > { %3536 = vmatpush.bf16.msrb.mxu0 %v9120_v0  ;;  %v9145_v0 = vld [vmem:[#allocation87_spill] sm:$0xff] }
 0x887   : > { %3537 = vmatpush.bf16.msrb.mxu0 %v9121_v41  ;;  %v3144_v20 = vpop.f32.mrf.mxu0  ;;  %v9146_v41 = vld [vmem:[#allocation88_spill] sm:$0xff] }
 0x888   : > { %v3145_v25 = vadd.f32 %v3144_v20, %v9122_v58  ;;  %v9147_v20 = vld [vmem:[#allocation89_spill] sm:$0xff] }
 0x88d   : > { %v3130_v16 = vpop.f32.mrf.mxu3 }
 0x88e   : > { %v3131_v18 = vadd.f32 %v3130_v16, %v9123_v6  ;;  %v9148_v16 = vld [vmem:[#allocation27_spill] sm:$0xff] }
 0x88f   : > { %v3146_v49 = vpop.f32.mrf.mxu0 }
 0x890   : > { %v3147_v40 = vadd.f32 %v3146_v49, %v9122_v58  ;;  %v9149_v49 = vld [vmem:[#allocation58_spill] sm:$0xff] }
 0x892   : > { %v3150_v35 = vpack.c.bf16 %v3147_v40, %v3145_v25  ;;  %v9150_v25 = vld [vmem:[#allocation60_spill] sm:$0xff]  ;;  %v9151_v40 = vld [vmem:[#allocation62_spill] sm:$0xff] }
 0x894   : > { %3157 = vmatpush.bf16.msrb.mxu1 %v3150_v35  ;;  %v9152_v35 = vld [vmem:[#allocation64_spill] sm:$0xff] }
 0x895   : > { %v3132_v23 = vpop.f32.mrf.mxu3 }
 0x896   : > { %v3133_v9 = vadd.f32 %v3132_v23, %v9123_v6  ;;  %v9153_v23 = vld [vmem:[#allocation66_spill] sm:$0xff] }
 0x898   : > { %v3149_v33 = vpack.c.bf16 %v3133_v9, %v3131_v18  ;;  %v9154_v18 = vld [vmem:[#allocation68_spill] sm:$0xff]  ;;  %v9155_v9 = vld [vmem:[#allocation69_spill] sm:$0xff] }
 0x89a   : > { %3158 = vmatpush.bf16.msrb.mxu1 %v3149_v33  ;;  %v9156_v33 = vld [vmem:[#allocation4_spill] sm:$0xff] }
 0x89d   : > { %4958 = vmatmul.msk.bf16.vlgmr.msrb.gmra.mxu1 %vm728_vm0, %v9125_v54  ;;  %v9157_v54 = vld [vmem:[#allocation16_spill] sm:$0xff] }
 0x89e   : > { %3180 = vmatpush.bf16.msra.mxu1 %v9124_v22 }
 0x8a2   : > { %3181 = vmatpush.bf16.msra.mxu1 %v9126_v62 }
 0x8a6   : > { %3182 = vmatpush.bf16.msra.mxu1 %v9127_v51 }
 0x8aa   : > { %3183 = vmatpush.bf16.msra.mxu1 %v9128_v50 }
 0x8ae   : > { %3184 = vmatpush.bf16.msra.mxu1 %v9129_v19 }
 0x8b2   : > { %3185 = vmatpush.bf16.msra.mxu1 %v9130_v32 }
 0x8b6   : > { %3186 = vmatpush.bf16.msra.mxu1 %v9131_v60 }
 0x8ba   : > { %3187 = vmatpush.bf16.msra.mxu1 %v9132_v42 }
 0x8bd   : > { %3188 = vmatmul.bf16.vlgmr.msra.gmra.mxu1 %v8156_v28 }
 0x8be   : > { %3236 = vmatpush.bf16.msrb.mxu1 %v9133_v61 }
 0x8c2   : > { %3237 = vmatpush.bf16.msrb.mxu1 %v9134_v52 }
 0x8c6   : > { %3238 = vmatpush.bf16.msrb.mxu1 %v9135_v8 }
 0x8ca   : > { %3239 = vmatpush.bf16.msrb.mxu1 %v9136_v21 }
 0x8ce   : > { %3240 = vmatpush.bf16.msrb.mxu1 %v9137_v29 }
 0x8d2   : > { %3241 = vmatpush.bf16.msrb.mxu1 %v9138_v59 }
 0x8d6   : > { %3242 = vmatpush.bf16.msrb.mxu1 %v9139_v31 }
 0x8da   : > { %3243 = vmatpush.bf16.msrb.mxu1 %v9140_v11 }
 0x8dd   : > { %3244 = vmatmul.bf16.vlgmr.msrb.gmra.mxu1 %v8156_v28 }
 0x8de   : > { %3292 = vmatpush.bf16.msra.mxu1 %v9141_v39 }
 0x8e2   : > { %3293 = vmatpush.bf16.msra.mxu1 %v9142_v30  ;;  %v9198_v30 = vld [vmem:[#allocation90_spill] sm:$0xff] }
 0x8e6   : > { %3294 = vmatpush.bf16.msra.mxu1 %v9143_v47 }
 0x8ea   : > { %3295 = vmatpush.bf16.msra.mxu1 %v9144_v46 }
 0x8ee   : > { %3296 = vmatpush.bf16.msra.mxu1 %v9145_v0 }
 0x8f2   : > { %3297 = vmatpush.bf16.msra.mxu1 %v9146_v41 }
 0x8f6   : > { %3298 = vmatpush.bf16.msra.mxu1 %v9147_v20 }
 0x8fa   : > { %3299 = vmatpush.bf16.msra.mxu1 %v9148_v16  ;;  %v9158_v16 = vld [vmem:[#allocation12_spill] sm:$0xff] }
 0x8fd   : > { %3300 = vmatmul.bf16.vlgmr.msra.gmra.mxu1 %v8156_v28 }
 0x8fe   : > { %3443 = vmatpush.bf16.msrb.mxu1 %v9149_v49  ;;  %v9159_v49 = vld [vmem:[#allocation14_spill] sm:$0xff] }
 0x902   : > { %3444 = vmatpush.bf16.msrb.mxu1 %v9150_v25  ;;  %v9160_v25 = vld [vmem:[#allocation17_spill] sm:$0xff] }
 0x906   : > { %3445 = vmatpush.bf16.msrb.mxu1 %v9151_v40  ;;  %v9161_v40 = vld [vmem:[#allocation21_spill] sm:$0xff] }
 0x90a   : > { %3446 = vmatpush.bf16.msrb.mxu1 %v9152_v35 }
 0x90e   : > { %3447 = vmatpush.bf16.msrb.mxu1 %v9153_v23  ;;  %v9162_v23 = vld [vmem:[#allocation25_spill] sm:$0xff] }
 0x912   : > { %3448 = vmatpush.bf16.msrb.mxu1 %v9154_v18  ;;  %v9163_v18 = vld [vmem:[#allocation67_spill] sm:$0xff] }
 0x916   : > { %3449 = vmatpush.bf16.msrb.mxu1 %v9155_v9  ;;  %v9164_v9 = vld [vmem:[#allocation70_spill] sm:$0xff] }
 0x91a   : > { %3450 = vmatpush.bf16.msrb.mxu1 %v9156_v33  ;;  %v3160_v28 = vpop.f32.mrf.mxu1  ;;  %v9165_v33 = vld [vmem:[#allocation31_spill] sm:$0xff] }
 0x91e   : > { %3516 = vmatpush.bf16.msra.mxu1 %v9157_v54  ;;  %v9167_v54 = vld [vmem:[#allocation72_spill] sm:$0xff] }
 0x922   : > { %3517 = vmatpush.bf16.msra.mxu1 %v9158_v16  ;;  %v3162_v35 = vpop.f32.mrf.mxu1  ;;  %v9166_v16 = vld [vmem:[#allocation71_spill] sm:$0xff] }
 0x923   : > { %v3165_v20 = vpack.c.bf16 %v3162_v35, %v3160_v28  ;;  %v9171_v28 = vld [vmem:[#allocation75_spill] sm:$0xff]  ;;  %v9172_v35 = vld [vmem:[#allocation76_spill] sm:$0xff] }
 0x925   : > { %3174 = vmatmul.bf16.vlgmr.msrb.gmra.mxu2 %v3165_v20  ;;  %3202 = vmatmul.bf16.vlgmr.msrb.gmra.mxu3 %v3165_v20 }
 0x926   : > { %3518 = vmatpush.bf16.msra.mxu1 %v9159_v49  ;;  %3278 = vmatpush.bf16.msrb.mxu2 %v9163_v18  ;;  %v9168_v49 = vld [vmem:[#allocation37_spill] sm:$0xff] }
 0x927   : > { %3306 = vmatpush.bf16.msrb.mxu3 %v9164_v9  ;;  %v9174_v9 = vld [vmem:[#allocation78_spill] sm:$0xff] }
 0x92a   : > { %3519 = vmatpush.bf16.msra.mxu1 %v9160_v25  ;;  %3279 = vmatpush.bf16.msrb.mxu2 %v9166_v16  ;;  %v9169_v25 = vld [vmem:[#allocation73_spill] sm:$0xff]  ;;  %v9176_v16 = vld [vmem:[#allocation80_spill] sm:$0xff] }
 0x92b   : > { %3307 = vmatpush.bf16.msrb.mxu3 %v9167_v54  ;;  %v9177_v54 = vld [vmem:[#allocation81_spill] sm:$0xff] }
 0x92e   : > { %3520 = vmatpush.bf16.msra.mxu1 %v9161_v40  ;;  %3280 = vmatpush.bf16.msrb.mxu2 %v9169_v25  ;;  %v9170_v40 = vld [vmem:[#allocation74_spill] sm:$0xff]  ;;  %v9179_v25 = vld [vmem:[#allocation83_spill] sm:$0xff] }
 0x92f   : > { %3308 = vmatpush.bf16.msrb.mxu3 %v9170_v40  ;;  %v9180_v40 = vld [vmem:[#allocation84_spill] sm:$0xff] }
 0x932   : > { %3521 = vmatpush.bf16.msra.mxu1 %v9162_v23  ;;  %3281 = vmatpush.bf16.msrb.mxu2 %v9171_v28  ;;  %v9173_v23 = vld [vmem:[#allocation77_spill] sm:$0xff]  ;;  %v9181_v28 = vld [vmem:[#allocation40_spill] sm:$0xff] }
 0x933   : > { %3309 = vmatpush.bf16.msrb.mxu3 %v9172_v35  ;;  %v9182_v35 = vld [vmem:[#allocation41_spill] sm:$0xff] }
 0x935   : > { %3230 = vmatmul.bf16.vlgmr.msra.gmra.mxu2 %v3165_v20  ;;  %3258 = vmatmul.bf16.vlgmr.msra.gmra.mxu3 %v3165_v20 }
 0x936   : > { %3522 = vmatpush.bf16.msra.mxu1 %v9165_v33  ;;  %3282 = vmatpush.bf16.msrb.mxu2 %v9173_v23  ;;  %v9175_v33 = vld [vmem:[#allocation79_spill] sm:$0xff]  ;;  %v9183_v23 = vld [vmem:[#allocation42_spill] sm:$0xff] }
 0x937   : > { %3310 = vmatpush.bf16.msrb.mxu3 %v9174_v9  ;;  %v9184_v9 = vld [vmem:[#allocation43_spill] sm:$0xff] }
 0x93a   : > { %3523 = vmatpush.bf16.msra.mxu1 %v9168_v49  ;;  %3283 = vmatpush.bf16.msrb.mxu2 %v9175_v33  ;;  %v9178_v49 = vld [vmem:[#allocation82_spill] sm:$0xff]  ;;  %v9185_v33 = vld [vmem:[#allocation44_spill] sm:$0xff] }
 0x93b   : > { %3311 = vmatpush.bf16.msrb.mxu3 %v9176_v16  ;;  %v9186_v16 = vld [vmem:[#allocation45_spill] sm:$0xff] }
 0x93e   : > { %3284 = vmatpush.bf16.msrb.mxu2 %v9177_v54  ;;  %v9187_v54 = vld [vmem:[#allocation46_spill] sm:$0xff] }
 0x93f   : > { %3312 = vmatpush.bf16.msrb.mxu3 %v9178_v49  ;;  %v9188_v49 = vld [vmem:[#allocation49_spill] sm:$0xff] }
 0x942   : > { %3285 = vmatpush.bf16.msrb.mxu2 %v9179_v25  ;;  %v9189_v25 = vld [vmem:[#allocation47_spill] sm:$0xff] }
 0x943   : > { %3313 = vmatpush.bf16.msrb.mxu3 %v9180_v40  ;;  %v9190_v40 = vld [vmem:[#allocation50_spill] sm:$0xff] }
 0x945   : > { %3286 = vmatmul.bf16.vlgmr.msrb.gmra.mxu2 %v3165_v20 }
 0x946   : > { %3429 = vmatpush.bf16.msra.mxu2 %v9181_v28  ;;  %3314 = vmatmul.bf16.vlgmr.msrb.gmra.mxu3 %v3165_v20  ;;  %v9191_v28 = vld [vmem:[#allocation53_spill] sm:$0xff]  ;;  %v9192_v20 = vld [vmem:[#allocation56_spill] sm:$0xff] }
 0x94a   : > { %3430 = vmatpush.bf16.msra.mxu2 %v9182_v35  ;;  %v9193_v35 = vld [vmem:[#allocation20_spill] sm:$0xff] }
 0x94e   : > { %3431 = vmatpush.bf16.msra.mxu2 %v9183_v23  ;;  %v9194_v23 = vld [vmem:[#allocation24_spill] sm:$0xff] }
 0x952   : > { %3432 = vmatpush.bf16.msra.mxu2 %v9184_v9  ;;  %v9195_v9 = vld [vmem:[#allocation32_spill] sm:$0xff] }
 0x956   : > { %3433 = vmatpush.bf16.msra.mxu2 %v9185_v33  ;;  %v9196_v33 = vld [vmem:[#allocation38_spill] sm:$0xff] }
 0x95a   : > { %3434 = vmatpush.bf16.msra.mxu2 %v9186_v16  ;;  %v3217_v16 = vpop.f32.mrf.mxu0 }
 0x95e   : > { %3435 = vmatpush.bf16.msra.mxu2 %v9187_v54  ;;  %v3189_v54 = vpop.f32.mrf.mxu1 }
 0x962   : > { %3436 = vmatpush.bf16.msra.mxu2 %v9188_v49  ;;  %v3219_v41 = vpop.f32.mrf.mxu0 }
 0x966   : > { %3502 = vmatpush.bf16.msrb.mxu2 %v9189_v25  ;;  %v3191_v25 = vpop.f32.mrf.mxu1 }
 0x96a   : > { %3503 = vmatpush.bf16.msrb.mxu2 %v9190_v40 }
 0x96e   : > { %3504 = vmatpush.bf16.msrb.mxu2 %v9191_v28  ;;  %v8284_v46 = vpop.f32.mrf.mxu1  ;;  %v3273_v28 = vpop.f32.mrf.mxu0 }
 0x972   : > { %3505 = vmatpush.bf16.msrb.mxu2 %v9192_v20  ;;  %v9197_v20 = vld [vmem:[#allocation85_spill] sm:$0xff] }
 0x976   : > { %3506 = vmatpush.bf16.msrb.mxu2 %v9193_v35  ;;  %v8290_v31 = vpop.f32.mrf.mxu1 }
 0x97a   : > { %3507 = vmatpush.bf16.msrb.mxu2 %v9194_v23 }
 0x97e   : > { %3508 = vmatpush.bf16.msrb.mxu2 %v9195_v9 }
 0x982   : > { %3509 = vmatpush.bf16.msrb.mxu2 %v9196_v33 }
 0x9a8   : > { %v3175_v18 = vpop.f32.mrf.mxu2  ;;  %v3203_v49 = vpop.f32.mrf.mxu3 }
 0x9a9   : > { %v3176_v47 = vadd.f32 %v3175_v18, %v9197_v20  ;;  %v3275_v18 = vpop.f32.mrf.mxu0 }
 0x9ab   : > { %v3190_v39 = vadd.f32 %v3189_v54, %v3176_v47 }
 0x9b0   : > { %v3177_v0 = vpop.f32.mrf.mxu2  ;;  %v3205_v40 = vpop.f32.mrf.mxu3 }
 0x9b1   : > { %v3178_v59 = vadd.f32 %v3177_v0, %v9197_v20  ;;  %v9200_v0 = vld [vmem:[#allocation92_spill] sm:$0xff] }
 0x9b3   : > { %v3192_v61 = vadd.f32 %v3191_v25, %v3178_v59 }
 0x9b8   : > { %v8287_v35 = vpop.f32.mrf.mxu2  ;;  %v3259_v23 = vpop.f32.mrf.mxu3 }
 0x9b9   : > { %v3260_v9 = vadd.f32 %v3259_v23, %v9198_v30  ;;  %v9199_v23 = vld [vmem:[#allocation91_spill] sm:$0xff] }
 0x9ba   : > { %v3204_v47 = vadd.f32 %v3203_v49, %v9199_v23 }
 0x9bb   : > { %v3274_v33 = vadd.f32 %v3273_v28, %v3260_v9 }
 0x9bd   : > { %v3334_v11 = vadd.f32 %v3274_v33, %v3190_v39  ;;  %v3301_v39 = vpop.f32.mrf.mxu1  ;;  %v3218_v33 = vadd.f32 %v3217_v16, %v3204_v47 }
 0x9bf   : > { %v4959_v29 = vmul.f32 -1.442695, %v3334_v11 }
 0x9c0   : > { %v8293_v21 = vpop.f32.mrf.mxu2  ;;  %v3261_v8 = vpop.f32.mrf.mxu3 }
 0x9c1   : > { %5368 = vpow2.f32 %v4959_v29  ;;  %v3262_v52 = vadd.f32 %v3261_v8, %v9198_v30  ;;  %v3206_v8 = vadd.f32 %v3205_v40, %v9199_v23 }
 0x9c3   : > { %v3276_v42 = vadd.f32 %v3275_v18, %v3262_v52  ;;  %v3220_v25 = vadd.f32 %v3219_v41, %v3206_v8 }
 0x9c5   : > { %v3335_v60 = vadd.f32 %v3276_v42, %v3192_v61 }
 0x9c7   : > { %v5369_v32 = vpop.eup %5368  ;;  %v4960_v54 = vmul.f32 -1.442695, %v3335_v60 }
 0x9c8   : > { %v3342_v28 = vadd.f32 1.0, %v5369_v32  ;;  %v3287_v9 = vpop.f32.mrf.mxu2  ;;  %v3303_v32 = vpop.f32.mrf.mxu1 }
 0x9c9   : > { %5370 = vpow2.f32 %v4960_v54  ;;  %v3288_v11 = vadd.f32 %v3287_v9, %v9200_v0  ;;  %v3315_v18 = vpop.f32.mrf.mxu3 }
 0x9ca   : > { %5372 = vrcp.f32 %v3342_v28  ;;  %vm3349_vm6 = vweird.f32 %v3342_v28 }
 0x9cb   : > { %v3302_v20 = vadd.f32 %v3301_v39, %v3288_v11 }
 0x9cd   : > { %v3374_v29 = vadd.f32 %v3302_v20, %v3218_v33  ;;  %v3329_v33 = vpop.f32.mrf.mxu0 }
 0x9cf   : > { %v5371_v19 = vpop.eup %5370  ;;  %v4961_v59 = vmul.f32 -1.442695, %v3374_v29 }
 0x9d0   : > { %v5373_v52 = vpop.eup %5372  ;;  %v3343_v42 = vadd.f32 1.0, %v5371_v19  ;;  %v3289_v61 = vpop.f32.mrf.mxu2 }
 0x9d1   : > { %5374 = vpow2.f32 %v4961_v59  ;;  %v3345_v49 = vmul.f32 %v5373_v52, %v3342_v28  ;;  %v3290_v60 = vadd.f32 %v3289_v61, %v9200_v0  ;;  %vm3350_vm5 = vweird.f32 %v5373_v52  ;;  %v3317_v8 = vpop.f32.mrf.mxu3 }
 0x9d2   : > { %5376 = vrcp.f32 %v3343_v42  ;;  %v3355_v59 = vand.u32 2147483648, %v3342_v28  ;;  %v3353_v0 = vand.u32 2147483647, %v3342_v28  ;;  %vm8300_vm7 = vmor %vm3349_vm6, %vm3350_vm5  ;;  %vm3364_vm9 = vweird.f32 %v3343_v42 }
 0x9d3   : > { %v3346_v54 = vsub.f32 1.0, %v3345_v49  ;;  %v3304_v9 = vadd.f32 %v3303_v32, %v3290_v60  ;;  %v3370_v60 = vand.u32 2147483648, %v3343_v42  ;;  %v3316_v32 = vadd.f32 %v3315_v18, %v8127_v5 }
 0x9d4   : > { %vm3354_vm10 = vcmp.eq.f32.partialorder %v3353_v0, 8.507059e+37  ;;  %v3232_v18 = vadd.f32 %v8287_v35, %v8130_v57  ;;  %v3234_v0 = vadd.f32 %v8293_v21, %v8130_v57 }
 0x9d5   : > { %v3375_v16 = vadd.f32 %v3304_v9, %v3220_v25  ;;  %v3347_v47 = vmul.f32 %v5373_v52, %v3346_v54  ;;  %v3368_v54 = vand.u32 2147483647, %v3343_v42  ;;  %v3371_v30 = vor.u32 1.1754944e-38, %v3370_v60 }
 0x9d6   : > { %v3330_v41 = vadd.f32 %v3329_v33, %v3316_v32  ;;  %v3248_v32 = vadd.f32 %v8290_v31, %v3234_v0 }
 0x9d7   : > { %v5375_v20 = vpop.eup %5374  ;;  %v4962_v39 = vmul.f32 -1.442695, %v3375_v16  ;;  %v3348_v29 = vadd.f32 %v5373_v52, %v3347_v47  ;;  %v3356_v16 = vor.u32 1.1754944e-38, %v3355_v59  ;;  %vm3369_vm12 = vcmp.eq.f32.partialorder %v3368_v54, 8.507059e+37 }
 0x9d8   : > { %v5377_v11 = vpop.eup %5376  ;;  %v3382_v40 = vadd.f32 1.0, %v5375_v20 }
 0x9d9   : > { %5378 = vpow2.f32 %v4962_v39  ;;  %v3360_v19 = vmul.f32 %v5377_v11, %v3343_v42  ;;  %vm3365_vm8 = vweird.f32 %v5377_v11  ;;  %v3352_v25 = vsel %vm8300_vm7, %v5373_v52, %v3348_v29  ;;  %v3331_v52 = vpop.f32.mrf.mxu0 }
 0x9da   : > { %5380 = vrcp.f32 %v3382_v40  ;;  %v3318_v39 = vadd.f32 %v3317_v8, %v8127_v5  ;;  %vm3366_vm11 = vmor %vm3364_vm9, %vm3365_vm8  ;;  %vm3389_vm14 = vweird.f32 %v3382_v40  ;;  %v3393_v35 = vand.u32 2147483647, %v3382_v40 }
 0x9db   : > { %v3361_v61 = vsub.f32 1.0, %v3360_v19 }
 0x9dc   : > { %vm3394_vm1 = vcmp.eq.f32.partialorder %v3393_v35, 8.507059e+37  ;;  %v9223_v35 = vld [vmem:[#allocation67_spill] sm:$0xff] }
 0x9dd   : > { %v3362_v49 = vmul.f32 %v5377_v11, %v3361_v61  ;;  %v3357_v61 = vsel %vm3354_vm10, %v3356_v16, %v3352_v25  ;;  %v3246_v25 = vadd.f32 %v8284_v46, %v3232_v18 }
 0x9de   : > { %v3414_v42 = vmul.f32 %v3357_v61, %v3330_v41 }
 0x9df   : > { %v5379_v9 = vpop.eup %5378  ;;  %v3363_v47 = vadd.f32 %v5377_v11, %v3362_v49  ;;  %v3332_v49 = vadd.f32 %v3331_v52, %v3318_v39 }
 0x9e0   : > { %v5381_v20 = vpop.eup %5380  ;;  %v3383_v28 = vadd.f32 1.0, %v5379_v9  ;;  %v3416_v54 = vadd.f32 %v3414_v42, %v3246_v25 }
 0x9e1   : > { %v3385_v19 = vmul.f32 %v5381_v20, %v3382_v40  ;;  %v3367_v23 = vsel %vm3366_vm11, %v5377_v11, %v3363_v47  ;;  %vm3390_vm13 = vweird.f32 %v5381_v20  ;;  %v3395_v11 = vand.u32 2147483648, %v3382_v40 }
 0x9e2   : > { %5382 = vrcp.f32 %v3383_v28  ;;  %v3372_v59 = vsel %vm3369_vm12, %v3371_v30, %v3367_v23  ;;  %vm3391_vm15 = vmor %vm3389_vm14, %vm3390_vm13  ;;  %v3408_v61 = vand.u32 2147483647, %v3383_v28  ;;  %vm3404_vm3 = vweird.f32 %v3383_v28 }
 0x9e3   : > { %v3386_v29 = vsub.f32 1.0, %v3385_v19  ;;  %v3415_v60 = vmul.f32 %v3372_v59, %v3332_v49  ;;  %v3396_v16 = vor.u32 1.1754944e-38, %v3395_v11  ;;  %5384 = vtanh.f32 %v3416_v54  ;;  %v9226_v54 = vld [vmem:[#allocation72_spill] sm:$0xff] }
 0x9e4   : > { %v3410_v19 = vand.u32 2147483648, %v3383_v28  ;;  %vm3409_vm5 = vcmp.eq.f32.partialorder %v3408_v61, 8.507059e+37  ;;  %v9235_v61 = vld [vmem:[#allocation81_spill] sm:$0xff] }
 0x9e5   : > { %v3387_v8 = vmul.f32 %v5381_v20, %v3386_v29  ;;  %v3417_v21 = vadd.f32 %v3415_v60, %v3248_v32  ;;  %v9225_v32 = vld [vmem:[#allocation71_spill] sm:$0xff] }
 0x9e6   : > { %v3411_v31 = vor.u32 1.1754944e-38, %v3410_v19  ;;  %v9233_v19 = vld [vmem:[#allocation79_spill] sm:$0xff] }
 0x9e7   : > { %v3388_v9 = vadd.f32 %v5381_v20, %v3387_v8  ;;  %5386 = vtanh.f32 %v3417_v21  ;;  %v9230_v21 = vld [vmem:[#allocation76_spill] sm:$0xff] }
 0x9e8   : > { %v5383_v33 = vpop.eup %5382 }
 0x9e9   : > { %v3392_v30 = vsel %vm3391_vm15, %v5381_v20, %v3388_v9  ;;  %v3400_v23 = vmul.f32 %v5383_v33, %v3383_v28  ;;  %vm3405_vm2 = vweird.f32 %v5383_v33  ;;  %v5385_v20 = vpop.eup %5384 }
 0x9ea   : > { %v3397_v39 = vsel %vm3394_vm1, %v3396_v16, %v3392_v30  ;;  %vm3406_vm4 = vmor %vm3404_vm3, %vm3405_vm2  ;;  %v9227_v30 = vld [vmem:[#allocation73_spill] sm:$0xff]  ;;  %v9229_v16 = vld [vmem:[#allocation75_spill] sm:$0xff] }
 0x9eb   : > { %v3401_v47 = vsub.f32 1.0, %v3400_v23  ;;  %v3420_v18 = vsub.f32 1.0, %v3397_v39  ;;  %v3424_v42 = vmul.f32 %v3397_v39, %v8150_v3  ;;  %v9216_v3 = vld [vmem:[#allocation10_spill] sm:$0xff] }
 0x9ec   : > { %v9228_v23 = vld [vmem:[#allocation74_spill] sm:$0xff] }
 0x9ed   : > { %v3402_v46 = vmul.f32 %v5383_v33, %v3401_v47  ;;  %v3422_v29 = vmul.f32 %v5385_v20, %v3420_v18  ;;  %v5387_v0 = vpop.eup %5386  ;;  %v9231_v47 = vld [vmem:[#allocation77_spill] sm:$0xff]  ;;  %v9232_v39 = vld [vmem:[#allocation78_spill] sm:$0xff] }
 0x9ee   : > { %v9236_v18 = vld [vmem:[#allocation82_spill] sm:$0xff] }
 0x9ef   : > { %v3403_v40 = vadd.f32 %v5383_v33, %v3402_v46  ;;  %v8316_v25 = vadd.f32 %v3424_v42, %v3422_v29  ;;  %v9234_v46 = vld [vmem:[#allocation80_spill] sm:$0xff] }
 0x9f1   : > { %v3407_v41 = vsel %vm3406_vm4, %v5383_v33, %v3403_v40  ;;  %v9224_v33 = vld [vmem:[#allocation70_spill] sm:$0xff]  ;;  %v9237_v40 = vld [vmem:[#allocation83_spill] sm:$0xff] }
 0x9f2   : > { %v3412_v52 = vsel %vm3409_vm5, %v3411_v31, %v3407_v41  ;;  %v9238_v31 = vld [vmem:[#allocation84_spill] sm:$0xff] }
 0x9f3   : > { %v3421_v59 = vsub.f32 1.0, %v3412_v52  ;;  %v3425_v8 = vmul.f32 %v3412_v52, %v8152_v34  ;;  %v9217_v34 = vld [vmem:[#allocation11_spill] sm:$0xff] }
 0x9f5   : > { %v3423_v49 = vmul.f32 %v5387_v0, %v3421_v59 }
 0x9f7   : > { %v8318_v11 = vadd.f32 %v3425_v8, %v3423_v49 }
 0x9f9   : > { %v8322_v28 = vpack.c.bf16 %v8318_v11, %v8316_v25 }
 0x9fb   : > { %3437 = vmatmul.bf16.vlgmr.msra.gmra.mxu2 %v8322_v28  ;;  %3451 = vmatmul.bf16.vlgmr.msrb.gmra.mxu1 %v8322_v28 }
 0x9fc   : > { %3572 = vmatpush.bf16.msrb.mxu1 %v7301_v37  ;;  %3558 = vmatpush.bf16.msra.mxu2 %v7784_v24 }
 0xa00   : > { %3573 = vmatpush.bf16.msrb.mxu1 %v7327_v7  ;;  %3559 = vmatpush.bf16.msra.mxu2 %v7805_v48  ;;  %v9211_v48 = vld [vmem:[#allocation5_spill] sm:$0xff] }
 0xa04   : > { %3574 = vmatpush.bf16.msrb.mxu1 %v7345_v10  ;;  %3560 = vmatpush.bf16.msra.mxu2 %v7824_v17  ;;  %v9212_v17 = vld [vmem:[#allocation6_spill] sm:$0xff] }
 0xa08   : > { %3575 = vmatpush.bf16.msrb.mxu1 %v7363_v13  ;;  %3561 = vmatpush.bf16.msra.mxu2 %v7843_v27  ;;  %v9213_v27 = vld [vmem:[#allocation7_spill] sm:$0xff] }
 0xa0b   : > { %3524 = vmatmul.bf16.vlgmr.msra.gmra.mxu1 %v8322_v28 }
 0xa0c   : > { %3576 = vmatpush.bf16.msrb.mxu1 %v7381_v12  ;;  %3562 = vmatpush.bf16.msra.mxu2 %v7862_v36  ;;  %v9214_v36 = vld [vmem:[#allocation8_spill] sm:$0xff] }
 0xa10   : > { %3577 = vmatpush.bf16.msrb.mxu1 %v7401_v1  ;;  %3563 = vmatpush.bf16.msra.mxu2 %v7888_v15 }
 0xa14   : > { %3578 = vmatpush.bf16.msrb.mxu1 %v7419_v14  ;;  %3564 = vmatpush.bf16.msra.mxu2 %v7901_v53 }
 0xa18   : > { %3579 = vmatpush.bf16.msrb.mxu1 %v7449_v26  ;;  %3565 = vmatpush.bf16.msra.mxu2 %v7920_v44  ;;  %v5418_v26 = vld [vmem:[%s5833_s25] sm:$0xff]  ;;  %v9215_v44 = vld [vmem:[#allocation9_spill] sm:$0xff] }
 0xa1b   : > { %3580 = vmatmul.bf16.vlgmr.msrb.gmra.mxu1 %v8322_v28 }
 0xa1c   : > { %3628 = vmatpush.bf16.msra.mxu1 %v7453_v43  ;;  %v9203_v43 = vld [vmem:[#allocation19_spill] sm:$0xff] }
 0xa20   : > { %3629 = vmatpush.bf16.msra.mxu1 %v7473_v56  ;;  %v9204_v56 = vld [vmem:[#allocation23_spill] sm:$0xff] }
 0xa24   : > { %3630 = vmatpush.bf16.msra.mxu1 %v7493_v4  ;;  %v9205_v4 = vld [vmem:[#allocation28_spill] sm:$0xff] }
 0xa28   : > { %3631 = vmatpush.bf16.msra.mxu1 %v7511_v38  ;;  %v9206_v38 = vld [vmem:[#allocation34_spill] sm:$0xff] }
 0xa2c   : > { %3632 = vmatpush.bf16.msra.mxu1 %v7529_v45  ;;  %v9207_v45 = vld [vmem:[#allocation48_spill] sm:$0xff] }
 0xa30   : > { %3633 = vmatpush.bf16.msra.mxu1 %v7547_v55  ;;  %v9208_v55 = vld [vmem:[#allocation52_spill] sm:$0xff] }
 0xa34   : > { %3634 = vmatpush.bf16.msra.mxu1 %v7565_v63  ;;  %v9209_v63 = vld [vmem:[#allocation55_spill] sm:$0xff] }
 0xa38   : > { %3635 = vmatpush.bf16.msra.mxu1 %v7583_v2  ;;  %v9210_v2 = vld [vmem:[#allocation3_spill] sm:$0xff] }
 0xa3b   : > { %3636 = vmatmul.bf16.vlgmr.msra.gmra.mxu1 %v8322_v28 }
 0xa78   : > { %v3452_v53 = vpop.f32.mrf.mxu1 }
 0xa79   : > { %v3453_v24 = vadd.f32 %v3452_v53, %v9122_v58 }
 0xa7e   : > { %v3438_v15 = vpop.f32.mrf.mxu2 }
 0xa7f   : > { %v3439_v12 = vadd.f32 %v3438_v15, %v9123_v6  ;;  %v9239_v15 = vld [vmem:[#allocation85_spill] sm:$0xff] }
 0xa80   : > { %v3454_v37 = vpop.f32.mrf.mxu1 }
 0xa81   : > { %v3455_v7 = vadd.f32 %v3454_v37, %v9122_v58  ;;  %v9218_v58 = vld [vmem:[#allocation86_spill] sm:$0xff] }
 0xa83   : > { %v3458_v10 = vpack.c.bf16 %v3455_v7, %v3453_v24  ;;  %v5268_v24 = vld [vmem:[%s8508_s10 + $0x38] sm:$0xff] }
 0xa84   : > { %v5276_v7 = vld [vmem:[%s8510_s12 + $0x38] sm:$0xff] }
 0xa85   : > { %3465 = vmatpush.bf16.msra.mxu3 %v3458_v10 }
 0xa86   : > { %v3440_v13 = vpop.f32.mrf.mxu2 }
 0xa87   : > { %v3441_v1 = vadd.f32 %v3440_v13, %v9123_v6  ;;  %v9219_v6 = vld [vmem:[#allocation87_spill] sm:$0xff]  ;;  %v9240_v13 = vld [vmem:[#allocation90_spill] sm:$0xff] }
 0xa88   : > { %v3525_v52 = vpop.f32.mrf.mxu1 }
 0xa89   : > { %v3457_v14 = vpack.c.bf16 %v3441_v1, %v3439_v12 }
 0xa8b   : > { %3466 = vmatpush.bf16.msra.mxu3 %v3457_v14 }
 0xa8e   : > { %4963 = vmatmul.msk.bf16.vlgmr.msra.gmra.mxu3 %vm728_vm0, %v5418_v26 }
 0xa8f   : > { %3488 = vmatpush.bf16.msrb.mxu3 %v9124_v22  ;;  %v9220_v22 = vld [vmem:[#allocation88_spill] sm:$0xff] }
 0xa90   : > { %v3527_v42 = vpop.f32.mrf.mxu1 }
 0xa93   : > { %3489 = vmatpush.bf16.msrb.mxu3 %v9126_v62  ;;  %v9221_v62 = vld [vmem:[#allocation89_spill] sm:$0xff] }
 0xa97   : > { %3490 = vmatpush.bf16.msrb.mxu3 %v9127_v51  ;;  %v9222_v51 = vld [vmem:[#allocation27_spill] sm:$0xff] }
 0xa98   : > { %v3581_v53 = vpop.f32.mrf.mxu1 }
 0xa9b   : > { %3491 = vmatpush.bf16.msrb.mxu3 %v9128_v50 }
 0xa9f   : > { %3492 = vmatpush.bf16.msrb.mxu3 %v9203_v43 }
 0xaa3   : > { %3493 = vmatpush.bf16.msrb.mxu3 %v9204_v56  ;;  %v5267_v56 = vld [vmem:[%s8508_s10 + $0x30] sm:$0xff] }
 0xaa7   : > { %3494 = vmatpush.bf16.msrb.mxu3 %v9205_v4  ;;  %v5275_v4 = vld [vmem:[%s8510_s12 + $0x30] sm:$0xff] }
 0xaab   : > { %3495 = vmatpush.bf16.msrb.mxu3 %v9206_v38 }
 0xaae   : > { %3496 = vmatmul.bf16.vlgmr.msrb.gmra.mxu3 %v8322_v28 }
 0xaaf   : > { %3544 = vmatpush.bf16.msra.mxu3 %v9207_v45 }
 0xab3   : > { %3545 = vmatpush.bf16.msra.mxu3 %v9208_v55 }
 0xab7   : > { %3546 = vmatpush.bf16.msra.mxu3 %v9209_v63  ;;  %v5266_v63 = vld [vmem:[%s8508_s10 + $0x28] sm:$0xff] }
 0xabb   : > { %3547 = vmatpush.bf16.msra.mxu3 %v9210_v2  ;;  %v5274_v2 = vld [vmem:[%s8510_s12 + $0x28] sm:$0xff] }
 0xabf   : > { %3548 = vmatpush.bf16.msra.mxu3 %v9211_v48 }
 0xac3   : > { %3549 = vmatpush.bf16.msra.mxu3 %v9212_v17  ;;  %v3583_v17 = vpop.f32.mrf.mxu1 }
 0xac7   : > { %3550 = vmatpush.bf16.msra.mxu3 %v9213_v27  ;;  %v9241_v27 = vld [vmem:[#allocation91_spill] sm:$0xff] }
 0xacb   : > { %3551 = vmatpush.bf16.msra.mxu3 %v9214_v36 }
 0xace   : > { %3552 = vmatmul.bf16.vlgmr.msra.gmra.mxu3 %v8322_v28 }
 0xacf   : > { %3600 = vmatpush.bf16.msrb.mxu3 %v9215_v44 }
 0xad3   : > { %3601 = vmatpush.bf16.msrb.mxu3 %v9216_v3 }
 0xad7   : > { %3602 = vmatpush.bf16.msrb.mxu3 %v9217_v34 }
 0xadb   : > { %3603 = vmatpush.bf16.msrb.mxu3 %v9218_v58 }
 0xadf   : > { %3604 = vmatpush.bf16.msrb.mxu3 %v9219_v6 }
 0xae3   : > { %3605 = vmatpush.bf16.msrb.mxu3 %v9220_v22  ;;  %v9242_v22 = vld [vmem:[#allocation92_spill] sm:$0xff] }
 0xae7   : > { %3606 = vmatpush.bf16.msrb.mxu3 %v9221_v62 }
 0xaeb   : > { %3607 = vmatpush.bf16.msrb.mxu3 %v9222_v51  ;;  %v5265_v51 = vld [vmem:[%s8508_s10 + $0x20] sm:$0xff] }
 0xaee   : > { %3608 = vmatmul.bf16.vlgmr.msrb.gmra.mxu3 %v8322_v28 }
 0xaef   : > { %3926 = vmatpush.bf16.msra.mxu3 %v5276_v7 }
 0xaf3   : > { %3927 = vmatpush.bf16.msra.mxu3 %v5275_v4 }
 0xaf7   : > { %3928 = vmatpush.bf16.msra.mxu3 %v5274_v2 }
 0xb11   : > { %v3468_v50 = vpop.f32.mrf.mxu3 }
 0xb19   : > { %v3470_v60 = vpop.f32.mrf.mxu3 }
 0xb1a   : > { %v3473_v9 = vpack.c.bf16 %v3470_v60, %v3468_v50  ;;  %v5273_v50 = vld [vmem:[%s8510_s12 + $0x20] sm:$0xff] }
 0xb1b   : > { %3929 = vmatpush.bf16.msra.mxu3 %v5273_v50 }
 0xb1c   : > { %3482 = vmatmul.bf16.vlgmr.msra.gmra.mxu0 %v3473_v9  ;;  %3510 = vmatmul.bf16.vlgmr.msrb.gmra.mxu2 %v3473_v9 }
 0xb1d   : > { %3586 = vmatpush.bf16.msra.mxu0 %v9223_v35  ;;  %3614 = vmatpush.bf16.msrb.mxu2 %v9224_v33 }
 0xb21   : > { %3587 = vmatpush.bf16.msra.mxu0 %v9225_v32  ;;  %3615 = vmatpush.bf16.msrb.mxu2 %v9226_v54 }
 0xb25   : > { %3588 = vmatpush.bf16.msra.mxu0 %v9227_v30  ;;  %3616 = vmatpush.bf16.msrb.mxu2 %v9228_v23  ;;  %v5264_v30 = vld [vmem:[%s8508_s10 + $0x18] sm:$0xff] }
 0xb26   : > { %v5272_v23 = vld [vmem:[%s8510_s12 + $0x18] sm:$0xff] }
 0xb27   : > { %3930 = vmatpush.bf16.msra.mxu3 %v5272_v23 }
 0xb29   : > { %3589 = vmatpush.bf16.msra.mxu0 %v9229_v16  ;;  %3617 = vmatpush.bf16.msrb.mxu2 %v9230_v21 }
 0xb2c   : > { %3538 = vmatmul.bf16.vlgmr.msrb.gmra.mxu0 %v3473_v9  ;;  %3566 = vmatmul.bf16.vlgmr.msra.gmra.mxu2 %v3473_v9 }
 0xb2d   : > { %3590 = vmatpush.bf16.msra.mxu0 %v9231_v47  ;;  %3618 = vmatpush.bf16.msrb.mxu2 %v9232_v39 }
 0xb31   : > { %3591 = vmatpush.bf16.msra.mxu0 %v9233_v19  ;;  %3619 = vmatpush.bf16.msrb.mxu2 %v9234_v46  ;;  %v3497_v41 = vpop.f32.mrf.mxu3  ;;  %v5263_v46 = vld [vmem:[%s8508_s10 + $0x10] sm:$0xff] }
 0xb35   : > { %3592 = vmatpush.bf16.msra.mxu0 %v9235_v61  ;;  %3620 = vmatpush.bf16.msrb.mxu2 %v9236_v18  ;;  %v5271_v61 = vld [vmem:[%s8510_s12 + $0x10] sm:$0xff] }
 0xb36   : > { %3931 = vmatpush.bf16.msra.mxu3 %v5271_v61 }
 0xb39   : > { %3593 = vmatpush.bf16.msra.mxu0 %v9237_v40  ;;  %3621 = vmatpush.bf16.msrb.mxu2 %v9238_v31  ;;  %v3499_v29 = vpop.f32.mrf.mxu3 }
 0xb3c   : > { %3594 = vmatmul.bf16.vlgmr.msra.gmra.mxu0 %v3473_v9  ;;  %3622 = vmatmul.bf16.vlgmr.msrb.gmra.mxu2 %v3473_v9 }
 0xb3d   : > { %3807 = vmatpush.bf16.msrb.mxu0 %v5268_v24  ;;  %v5269_v24 = vld [vmem:[%s8510_s12] sm:$0xff] }
 0xb41   : > { %3808 = vmatpush.bf16.msrb.mxu0 %v5267_v56 }
 0xb45   : > { %3809 = vmatpush.bf16.msrb.mxu0 %v5266_v63 }
 0xb49   : > { %3810 = vmatpush.bf16.msrb.mxu0 %v5265_v51 }
 0xb4d   : > { %3811 = vmatpush.bf16.msrb.mxu0 %v5264_v30 }
 0xb51   : > { %v8402_v49 = vpop.f32.mrf.mxu3  ;;  %3812 = vmatpush.bf16.msrb.mxu0 %v5263_v46 }
 0xb59   : > { %v8414_v1 = vpop.f32.mrf.mxu3 }
 0xb71   : > { %v3609_v3 = vpop.f32.mrf.mxu3 }
 0xb79   : > { %v3611_v18 = vpop.f32.mrf.mxu3 }
 0xb99   : > { %v3483_v20 = vpop.f32.mrf.mxu0 }
 0xb9a   : > { %v3484_v37 = vadd.f32 %v3483_v20, %v9239_v15 }
 0xb9c   : > { %v3498_v26 = vadd.f32 %v3497_v41, %v3484_v37  ;;  %v5261_v37 = vld [vmem:[%s8508_s10] sm:$0xff] }
 0xb9f   : > { %v3511_v59 = vpop.f32.mrf.mxu2 }
 0xba0   : > { %v3512_v36 = vadd.f32 %v3511_v59, %v9241_v27  ;;  %v5270_v59 = vld [vmem:[%s8510_s12 + $0x8] sm:$0xff] }
 0xba1   : > { %v3485_v0 = vpop.f32.mrf.mxu0  ;;  %3932 = vmatpush.bf16.msra.mxu3 %v5270_v59 }
 0xba2   : > { %v3486_v45 = vadd.f32 %v3485_v0, %v9239_v15  ;;  %v3526_v60 = vadd.f32 %v3525_v52, %v3512_v36 }
 0xba4   : > { %v3500_v58 = vadd.f32 %v3499_v29, %v3486_v45  ;;  %v5262_v29 = vld [vmem:[%s8508_s10 + $0x8] sm:$0xff] }
 0xba5   : > { %3813 = vmatpush.bf16.msrb.mxu0 %v5262_v29  ;;  %3933 = vmatpush.bf16.msra.mxu3 %v5269_v24 }
 0xba7   : > { %v3513_v8 = vpop.f32.mrf.mxu2 }
 0xba8   : > { %v3514_v21 = vadd.f32 %v3513_v8, %v9241_v27 }
 0xba9   : > { %v8404_v28 = vpop.f32.mrf.mxu0  ;;  %3814 = vmatpush.bf16.msrb.mxu0 %v5261_v37 }
 0xbaa   : > { %v3528_v40 = vadd.f32 %v3527_v42, %v3514_v21  ;;  %v3540_v45 = vadd.f32 %v8404_v28, %v8130_v57 }
 0xbaf   : > { %v3567_v10 = vpop.f32.mrf.mxu2 }
 0xbb0   : > { %v3568_v12 = vadd.f32 %v3567_v10, %v9240_v13 }
 0xbb1   : > { %v8416_v14 = vpop.f32.mrf.mxu0 }
 0xbb2   : > { %v3582_v43 = vadd.f32 %v3581_v53, %v3568_v12  ;;  %v3637_v12 = vpop.f32.mrf.mxu1 }
 0xbb4   : > { %v3642_v38 = vadd.f32 %v3582_v43, %v3498_v26 }
 0xbb6   : > { %v4964_v55 = vmul.f32 -1.442695, %v3642_v38 }
 0xbb7   : > { %v3569_v48 = vpop.f32.mrf.mxu2 }
 0xbb8   : > { %5388 = vpow2.f32 %v4964_v55  ;;  %v3570_v44 = vadd.f32 %v3569_v48, %v9240_v13 }
 0xbb9   : > { %v3595_v34 = vpop.f32.mrf.mxu0 }
 0xbba   : > { %v3584_v6 = vadd.f32 %v3583_v17, %v3570_v44  ;;  %v3596_v62 = vadd.f32 %v3595_v34, %v9242_v22 }
 0xbbc   : > { %v3643_v9 = vadd.f32 %v3584_v6, %v3500_v58  ;;  %v3610_v35 = vadd.f32 %v3609_v3, %v3596_v62 }
 0xbbe   : > { %v5389_v33 = vpop.eup %5388  ;;  %v4965_v32 = vmul.f32 -1.442695, %v3643_v9  ;;  %v3682_v54 = vadd.f32 %v3610_v35, %v3526_v60  ;;  %v3542_v9 = vadd.f32 %v8416_v14, %v8130_v57 }
 0xbbf   : > { %v3650_v16 = vadd.f32 1.0, %v5389_v33  ;;  %v3623_v20 = vpop.f32.mrf.mxu2 }
 0xbc0   : > { %5390 = vpow2.f32 %v4965_v32  ;;  %v4966_v47 = vmul.f32 -1.442695, %v3682_v54  ;;  %v3624_v26 = vadd.f32 %v3623_v20, %v8127_v5  ;;  %v3639_v32 = vpop.f32.mrf.mxu1 }
 0xbc1   : > { %5392 = vrcp.f32 %v3650_v16  ;;  %v3597_v39 = vpop.f32.mrf.mxu0  ;;  %v3663_v13 = vand.u32 2147483648, %v3650_v16  ;;  %v3661_v56 = vand.u32 2147483647, %v3650_v16  ;;  %vm3657_vm6 = vweird.f32 %v3650_v16 }
 0xbc2   : > { %5394 = vpow2.f32 %v4966_v47  ;;  %v3598_v19 = vadd.f32 %v3597_v39, %v9242_v22  ;;  %v3638_v2 = vadd.f32 %v3637_v12, %v3624_v26  ;;  %v3554_v22 = vadd.f32 %v8402_v49, %v3540_v45 }
 0xbc3   : > { %v3664_v55 = vor.u32 1.1754944e-38, %v3663_v13  ;;  %vm3662_vm8 = vcmp.eq.f32.partialorder %v3661_v56, 8.507059e+37  ;;  %v3556_v39 = vadd.f32 %v8414_v1, %v3542_v9 }
 0xbc4   : > { %v3612_v31 = vadd.f32 %v3611_v18, %v3598_v19 }
 0xbc6   : > { %v5391_v41 = vpop.eup %5390  ;;  %v3683_v52 = vadd.f32 %v3612_v31, %v3528_v40 }
 0xbc7   : > { %v5393_v0 = vpop.eup %5392  ;;  %v8460_v8 = vadd.f32 1.0, %v5391_v41  ;;  %v3625_v17 = vpop.f32.mrf.mxu2 }
 0xbc8   : > { %v5395_v53 = vpop.eup %5394  ;;  %v3653_v15 = vmul.f32 %v5393_v0, %v3650_v16  ;;  %v4967_v42 = vmul.f32 -1.442695, %v3683_v52  ;;  %vm3658_vm0 = vweird.f32 %v5393_v0  ;;  %v3626_v28 = vadd.f32 %v3625_v17, %v8127_v5 }
 0xbc9   : > { %5396 = vrcp.f32 %v8460_v8  ;;  %v3690_v7 = vadd.f32 1.0, %v5395_v53  ;;  %vm3659_vm7 = vmor %vm3657_vm6, %vm3658_vm0  ;;  %v3678_v62 = vand.u32 2147483648, %v8460_v8  ;;  %v3676_v60 = vand.u32 2147483647, %v8460_v8 }
 0xbca   : > { %v3654_v10 = vsub.f32 1.0, %v3653_v15  ;;  %5398 = vpow2.f32 %v4967_v42  ;;  %vm3672_vm10 = vweird.f32 %v8460_v8  ;;  %v3640_v5 = vadd.f32 %v3639_v32, %v3626_v28 }
 0xbcb   : > { %5400 = vrcp.f32 %v3690_v7  ;;  %v3703_v35 = vand.u32 2147483648, %v3690_v7  ;;  %v3701_v49 = vand.u32 2147483647, %v3690_v7  ;;  %v3679_v23 = vor.u32 1.1754944e-38, %v3678_v62 }
 0xbcc   : > { %v3655_v43 = vmul.f32 %v5393_v0, %v3654_v10  ;;  %vm3697_vm13 = vweird.f32 %v3690_v7  ;;  %vm3677_vm14 = vcmp.eq.f32.partialorder %v3676_v60, 8.507059e+37  ;;  %vm3821_vm0 = vcmask 7168  }
 0xbcd   : > { %v3704_v57 = vor.u32 1.1754944e-38, %v3703_v35  ;;  %vm3702_vm1 = vcmp.eq.f32.partialorder %v3701_v49, 8.507059e+37 }
 0xbce   : > { %v3656_v4 = vadd.f32 %v5393_v0, %v3655_v43 }
 0xbcf   : > { %v5397_v38 = vpop.eup %5396 }
 0xbd0   : > { %v5399_v63 = vpop.eup %5398  ;;  %v3660_v48 = vsel %vm3659_vm7, %v5393_v0, %v3656_v4  ;;  %v3668_v27 = vmul.f32 %v5397_v38, %v8460_v8  ;;  %vm3673_vm9 = vweird.f32 %v5397_v38 }
 0xbd1   : > { %v5401_v36 = vpop.eup %5400  ;;  %v3665_v44 = vsel %vm3662_vm8, %v3664_v55, %v3660_v48  ;;  %v3691_v3 = vadd.f32 1.0, %v5399_v63  ;;  %vm3674_vm12 = vmor %vm3672_vm10, %vm3673_vm9 }
 0xbd2   : > { %v3693_v34 = vmul.f32 %v5401_v36, %v3690_v7  ;;  %v3722_v58 = vmul.f32 %v3665_v44, %v3638_v2  ;;  %v3669_v6 = vsub.f32 1.0, %v3668_v27  ;;  %vm3698_vm11 = vweird.f32 %v5401_v36 }
 0xbd3   : > { %5402 = vrcp.f32 %v3691_v3  ;;  %vm3699_vm15 = vmor %vm3697_vm13, %vm3698_vm11  ;;  %v3718_v41 = vand.u32 2147483648, %v3691_v3  ;;  %v3716_v20 = vand.u32 2147483647, %v3691_v3  ;;  %vm3712_vm3 = vweird.f32 %v3691_v3 }
 0xbd4   : > { %v3694_v51 = vsub.f32 1.0, %v3693_v34  ;;  %v3670_v50 = vmul.f32 %v5397_v38, %v3669_v6  ;;  %v3724_v33 = vadd.f32 %v3722_v58, %v3554_v22 }
 0xbd5   : > { %v3719_v0 = vor.u32 1.1754944e-38, %v3718_v41  ;;  %vm3717_vm5 = vcmp.eq.f32.partialorder %v3716_v20, 8.507059e+37 }
 0xbd6   : > { %v3695_v54 = vmul.f32 %v5401_v36, %v3694_v51  ;;  %v3671_v30 = vadd.f32 %v5397_v38, %v3670_v50  ;;  %5404 = vtanh.f32 %v3724_v33 }
 0xbd8   : > { %v3696_v16 = vadd.f32 %v5401_v36, %v3695_v54  ;;  %v3675_v21 = vsel %vm3674_vm12, %v5397_v38, %v3671_v30  ;;  %v5287_v38 = vld [vmem:[#allocation2] ss:$0 sm:$0xff] }
 0xbd9   : > { %v5403_v47 = vpop.eup %5402  ;;  %v3680_v14 = vsel %vm3677_vm14, %v3679_v23, %v3675_v21 }
 0xbda   : > { %v3700_v19 = vsel %vm3699_vm15, %v5401_v36, %v3696_v16  ;;  %v3708_v46 = vmul.f32 %v5403_v47, %v3691_v3  ;;  %v3723_v61 = vmul.f32 %v3680_v14, %v3640_v5  ;;  %vm3713_vm2 = vweird.f32 %v5403_v47 }
 0xbdb   : > { %v3705_v18 = vsel %vm3702_vm1, %v3704_v57, %v3700_v19  ;;  %vm3714_vm4 = vmor %vm3712_vm3, %vm3713_vm2  ;;  %v5427_v3 = vmov 0  }
 0xbdc   : > { %v3709_v40 = vsub.f32 1.0, %v3708_v46  ;;  %v3725_v31 = vadd.f32 %v3723_v61, %v3556_v39  ;;  %v3728_v52 = vsub.f32 1.0, %v3705_v18  ;;  %v5405_v59 = vpop.eup %5404  ;;  %v3732_v24 = vmul.f32 %v3705_v18, %v8316_v25  ;;  %5286 = vset.pattern.permute.xlu0 %v5427_v3 }
 0xbde   : > { %v3710_v29 = vmul.f32 %v5403_v47, %v3709_v40  ;;  %5406 = vtanh.f32 %v3725_v31  ;;  %v3730_v8 = vmul.f32 %v5405_v59, %v3728_v52 }
 0xbe0   : > { %v3711_v1 = vadd.f32 %v5403_v47, %v3710_v29  ;;  %v3734_v13 = vadd.f32 %v3732_v24, %v3730_v8 }
 0xbe2   : > { %v3715_v53 = vsel %vm3714_vm4, %v5403_v47, %v3711_v1  ;;  %v3736_v26 = vmax.f32 %v3734_v13, 0.0 }
 0xbe3   : > { %v3720_v15 = vsel %vm3717_vm5, %v3719_v0, %v3715_v53 }
 0xbe4   : > { %v5407_v42 = vpop.eup %5406  ;;  %v3729_v37 = vsub.f32 1.0, %v3720_v15  ;;  %v3733_v10 = vmul.f32 %v3720_v15, %v8318_v11 }
 0xbe6   : > { %v3731_v7 = vmul.f32 %v5407_v42, %v3729_v37  ;;  %v3959_v42 = vld [vmem:[%s8511_s13] sm:$0x1] }
 0xbe8   : > { %v3735_v12 = vadd.f32 %v3733_v10, %v3731_v7 }
 0xbea   : > { %v3737_v43 = vmax.f32 %v3735_v12, 0.0 }
 0xbec   : > { %v3738_v56 = vpack.c.bf16 %v3737_v43, %v3736_v26 }
 0xbee   : > { %3815 = vmatmul.bf16.vlgmr.msrb.gmra.mxu0 %v3738_v56  ;;  %3934 = vmatmul.bf16.vlgmr.msra.gmra.mxu3 %v3738_v56 }
 0xc6b   : > { %v3816_v4 = vpop.f32.mrf.mxu0 }
 0xc6c   : > { %v3817_v45 = vadd.f32 %v5287_v38, %v3816_v4 }
 0xc6e   : > { %v3822_v2 = vsel %vm3821_vm0, %v3817_v45, -inf }
 0xc71   : > { %v3935_v40 = vpop.f32.mrf.mxu3 }
 0xc73   : > { %v3818_v55 = vpop.f32.mrf.mxu0 }
 0xc74   : > { %v3819_v63 = vadd.f32 %v5287_v38, %v3818_v55 }
 0xc76   : > { %v3823_v25 = vsel %vm3821_vm0, %v3819_v63, -inf }
 0xc77   : > { %v3824_v48 = vmax.f32 %v3822_v2, %v3823_v25 }
 0xc79   : > { %v3825_v17 = vrot.slane %v3824_v48, 4  ;;  %v3937_v41 = vpop.f32.mrf.mxu3 }
 0xc7b   : > { %v3826_v11 = vmax.f32 %v3824_v48, %v3825_v17 }
 0xc7d   : > { %v3827_v27 = vrot.slane %v3826_v11, 2 }
 0xc7f   : > { %v3828_v36 = vmax.f32 %v3826_v11, %v3827_v27 }
 0xc81   : > { %v3829_v44 = vrot.slane %v3828_v36, 1 }
 0xc83   : > { %v3830_v34 = vmax.f32 %v3828_v36, %v3829_v44 }
 0xc85   : > { %v3831_v58 = vsub.f32 %v3817_v45, %v3830_v34  ;;  %v3832_v6 = vsub.f32 %v3819_v63, %v3830_v34 }
 0xc87   : > { %v3833_v22 = vmul.f32 1.442695, %v3831_v58  ;;  %v3835_v28 = vmul.f32 1.442695, %v3832_v6 }
 0xc89   : > { %5408 = vpow2.f32 %v3833_v22 }
 0xc8a   : > { %5410 = vpow2.f32 %v3835_v28 }
 0xc8f   : > { %v5409_v62 = vpop.eup %5408 }
 0xc90   : > { %v5411_v51 = vpop.eup %5410  ;;  %v3837_v50 = vsel %vm3821_vm0, %v5409_v62, 0.0 }
 0xc91   : > { %v3838_v60 = vsel %vm3821_vm0, %v5411_v51, 0.0 }
 0xc92   : > { %v3839_v9 = vadd.f32 %v3838_v60, %v3837_v50 }
 0xc94   : > { %v3840_v35 = vrot.slane %v3839_v9, 4 }
 0xc96   : > { %v3841_v33 = vadd.f32 %v3840_v35, %v3839_v9 }
 0xc98   : > { %v3842_v32 = vrot.slane %v3841_v33, 2 }
 0xc9a   : > { %v3843_v54 = vadd.f32 %v3842_v32, %v3841_v33 }
 0xc9c   : > { %v3844_v49 = vrot.slane %v3843_v54, 1 }
 0xc9e   : > { %v3845_v30 = vadd.f32 %v3844_v49, %v3843_v54 }
 0xca0   : > { %5412 = vrcp.f32 %v3845_v30  ;;  %v3857_v21 = vand.u32 2147483648, %v3845_v30  ;;  %v3855_v39 = vand.u32 2147483647, %v3845_v30  ;;  %vm3851_vm7 = vweird.f32 %v3845_v30 }
 0xca2   : > { %v3858_v14 = vor.u32 1.1754944e-38, %v3857_v21  ;;  %vm3856_vm9 = vcmp.eq.f32.partialorder %v3855_v39, 8.507059e+37 }
 0xca6   : > { %v5413_v5 = vpop.eup %5412 }
 0xca7   : > { %v3847_v23 = vmul.f32 %v5413_v5, %v3845_v30  ;;  %vm3852_vm6 = vweird.f32 %v5413_v5 }
 0xca8   : > { %vm3853_vm8 = vmor %vm3851_vm7, %vm3852_vm6 }
 0xca9   : > { %v3848_v16 = vsub.f32 1.0, %v3847_v23 }
 0xcab   : > { %v3849_v47 = vmul.f32 %v5413_v5, %v3848_v16 }
 0xcad   : > { %v3850_v57 = vadd.f32 %v5413_v5, %v3849_v47 }
 0xcaf   : > { %v3854_v19 = vsel %vm3853_vm8, %v5413_v5, %v3850_v57 }
 0xcb0   : > { %v3859_v46 = vsel %vm3856_vm9, %v3858_v14, %v3854_v19 }
 0xcb1   : > { %v3860_v61 = vmul.f32 %v5409_v62, %v3859_v46  ;;  %v3861_v18 = vmul.f32 %v5411_v51, %v3859_v46 }
 0xcb3   : > { %3942 = vperm.xlu0 %5286, %v3860_v61  }
 0xcbb   : > { %3947 = vperm.xlu0 %5286, %v3861_v18  }
 0xd25   : > { %v3943_v31 = vpop.permute.xlu0 %3942 }
 0xd26   : > { %v3950_v52 = vmul.f32 %v3943_v31, %v3935_v40 }
 0xd2d   : > { %v3948_v20 = vpop.permute.xlu0 %3947 }
 0xd2e   : > { %v3951_v29 = vmul.f32 %v3948_v20, %v3937_v41 }
 0xd30   : > { %v3952_v59 = vadd.f32 %v3951_v29, %v3950_v52 }
 0xd32   : > { %v3953_v1 = vrot.slane %v3952_v59, 4 }
 0xd34   : > { %v3954_v0 = vadd.f32 %v3953_v1, %v3952_v59 }
 0xd36   : > { %v3955_v8 = vrot.slane %v3954_v0, 2 }
 0xd38   : > { %v3956_v53 = vadd.f32 %v3955_v8, %v3954_v0 }
 0xd3a   : > { %v3957_v15 = vrot.slane %v3956_v53, 1 }
 0xd3c   : > { %v3958_v37 = vadd.f32 %v3957_v15, %v3956_v53 }
 0xd3e   : > { %v3960_v24 = vadd.f32 %v3959_v42, %v3958_v37 }
 0xd40   : > { %v3961_v7 = vperm.slane %v3960_v24, 0 }
 0xd42   : > { %3962 = vst [vmem:[%s487_s24] sm:$0xff] %v3961_v7 }
 0xd43 PF: > { %s26_s15 = sadd.s32 1, %s5425_s15  }
 0xd44   : > { %p23_p4 = scmp.ge.s32.totalorder %s26_s15, 4  }
 0xd46   :  { %25 = sbr.rel (!%p23_p4) target bundleno = 3 (0x3), region = 109 }

</bundles_post_ra>
